<compile_context>
chip_gen: v7x
topology: tpu7x:2x2x1
jax: 0.10.0
libtpu: 0.0.40
codegen_flags: <defaults>
</compile_context>

<pallas_src>
import math
from functools import partial

import jax
import jax.numpy as jnp
from jax.experimental import pallas as pl
from jax.experimental.pallas import tpu as pltpu


def _round_up(a, b):
    return (a + b - 1) // b * b


def conv_output_size(image_size, kernel_size, stride, padding=0):
    return int((image_size - kernel_size + 2 * padding) / stride + 1)


# ----------------------------- Pallas kernels -----------------------------

def _linear_kernel(*refs, ln, gelu, res, eps):
    """(optional LayerNorm) -> x @ w + b -> (optional GELU) -> (optional + residual).

    Ref order: x, w, b, [gamma, beta], [residual], out.
    x tile (tm, K) with K = full feature dim; w (K, tn); b (1, tn);
    gamma/beta (1, K); residual/out (tm, tn).
    """
    it = iter(refs)
    x_ref = next(it)
    w_ref = next(it)
    b_ref = next(it)
    g_ref = next(it) if ln else None
    be_ref = next(it) if ln else None
    r_ref = next(it) if res else None
    o_ref = next(it)

    x = x_ref[...]
    if ln:
        xf = x.astype(jnp.float32)
        mu = jnp.mean(xf, axis=-1, keepdims=True)
        var = jnp.mean((xf - mu) ** 2, axis=-1, keepdims=True)
        x = (xf - mu) * jax.lax.rsqrt(var + eps) * g_ref[...] + be_ref[...]
    y = jnp.dot(x.astype(w_ref.dtype), w_ref[...],
                preferred_element_type=jnp.float32) + b_ref[...]
    if gelu:
        # TODO(synk): PyTorch nn.GELU() default is the exact erf formulation; the
        # tanh approximation is used here for a guaranteed Mosaic lowering.
        y = jax.nn.gelu(y, approximate=True)
    if res:
        y = y + r_ref[...]
    o_ref[...] = y.astype(o_ref.dtype)


def _attention_kernel(qkv_ref, o_ref, *, heads, dim_head, inner):
    """All heads of one batch element in a single grid step.

    qkv_ref: (1, N, 3*inner) bf16 with q already pre-scaled by dim_head**-0.5
    o_ref  : (1, N, inner) laid out exactly as the out-projection expects,
             so no post-attention transpose is needed.
    """
    qkv = qkv_ref[0]                                    # (N, 3*inner)
    outs = []
    for h in range(heads):
        q = qkv[:, h * dim_head:(h + 1) * dim_head].astype(jnp.bfloat16)
        k = qkv[:, inner + h * dim_head:inner + (h + 1) * dim_head].astype(jnp.bfloat16)
        v = qkv[:, 2 * inner + h * dim_head:2 * inner + (h + 1) * dim_head].astype(jnp.bfloat16)
        # contract last axes directly -- no explicit k.T / XLU transpose
        s = jax.lax.dot_general(q, k, (((1,), (1,)), ((), ())),
                                preferred_element_type=jnp.float32)
        s = s - jnp.max(s, axis=-1, keepdims=True)
        p = jnp.exp(s)
        p = p * pl.reciprocal(jnp.sum(p, axis=-1, keepdims=True), approx=True)
        outs.append(jnp.dot(p.astype(jnp.bfloat16), v,
                            preferred_element_type=jnp.float32))
    o_ref[0] = jnp.concatenate(outs, axis=-1).astype(o_ref.dtype)


def _pool_dw_kernel(p_ref, w_ref, b_ref, o0_ref, o1_ref):
    """Depthwise 3x3/s2 conv (groups=D, out=2D) for one batch element.

    p_ref : (1, 9, D, P)  im2col taps, spatial P on the lane axis
    w_ref : (D, 18)       columns [j=0: k0..k8 | j=1: k0..k8]  (j = oc % 2)
    b_ref : (D, 2)
    o0/o1 : (1, D, P)     even / odd output channels (no jnp.repeat of the input)
    """
    w = w_ref[...]
    b = b_ref[...]
    tap0 = p_ref[0, 0]
    acc0 = tap0 * w[:, 0:1]
    acc1 = tap0 * w[:, 9:10]
    for k in range(1, 9):
        tap = p_ref[0, k]                               # (D, P)
        acc0 = acc0 + tap * w[:, k:k + 1]
        acc1 = acc1 + tap * w[:, 9 + k:10 + k]
    o0_ref[0] = acc0 + b[:, 0:1]
    o1_ref[0] = acc1 + b[:, 1:2]


# ----------------------------- kernel wrappers -----------------------------

def linear(x2d, w, b=None, *, ln=None, gelu=False, residual=None,
           bf16=True, eps=1e-5, out_dtype=jnp.float32):
    """Tiled (M,K)@(K,N)+b with optional fused LayerNorm / GELU / residual.

    Grid over (M tiles, N tiles); K is whole per block (exact LN stats, no
    accumulator). N is padded to a lane-dense multiple of 128 and sliced back.
    `out_dtype=bf16` is used for intermediates that are only ever matmul inputs.
    """
    M, K = x2d.shape
    N = w.shape[1]
    if b is None:
        b = jnp.zeros((N,), jnp.float32)

    # tile sizes: sublane-aligned M, lane-dense (>=128, prefer 256/512-wide) N
    if M <= 256:
        Mp = _round_up(M, 8)
        tm = Mp
    else:
        Mp = _round_up(M, 256)
        tm = 256
    Np = _round_up(N, 128)
    if Np <= 512:
        tn = Np
    elif Np % 512 == 0:
        tn = 512
    elif Np % 256 == 0:
        tn = 256
    else:
        tn = 128

    w_dt = jnp.bfloat16 if bf16 else jnp.float32
    # keep activations f32 when LN is fused (f32 statistics); else feed MXU bf16
    x_dt = jnp.float32 if (ln is not None or not bf16) else jnp.bfloat16

    xp = x2d.astype(x_dt)
    if Mp != M:
        xp = jnp.pad(xp, ((0, Mp - M), (0, 0)))
    wp = w.astype(w_dt)
    bp = b.astype(jnp.float32)
    if Np != N:
        wp = jnp.pad(wp, ((0, 0), (0, Np - N)))
        bp = jnp.pad(bp, (0, Np - N))
    bp = bp.reshape(1, Np)

    in_specs = [pl.BlockSpec((tm, K), lambda i, j: (i, 0)),
                pl.BlockSpec((K, tn), lambda i, j: (0, j)),
                pl.BlockSpec((1, tn), lambda i, j: (0, j))]
    args = [xp, wp, bp]
    if ln is not None:
        g, beta = ln
        in_specs += [pl.BlockSpec((1, K), lambda i, j: (0, 0)),
                     pl.BlockSpec((1, K), lambda i, j: (0, 0))]
        args += [g.reshape(1, K).astype(jnp.float32),
                 beta.reshape(1, K).astype(jnp.float32)]
    if residual is not None:
        rp = residual.astype(jnp.float32)
        if (Mp != M) or (Np != N):
            rp = jnp.pad(rp, ((0, Mp - M), (0, Np - N)))
        in_specs += [pl.BlockSpec((tm, tn), lambda i, j: (i, j))]
        args += [rp]

    out = pl.pallas_call(
        partial(_linear_kernel, ln=ln is not None, gelu=gelu,
                res=residual is not None, eps=eps),
        grid=(Mp // tm, Np // tn),
        in_specs=in_specs,
        out_specs=pl.BlockSpec((tm, tn), lambda i, j: (i, j)),
        out_shape=jax.ShapeDtypeStruct((Mp, Np), out_dtype),
        compiler_params=pltpu.CompilerParams(
            dimension_semantics=("parallel", "parallel")),
    )(*args)
    if (Mp != M) or (Np != N):
        out = out[:M, :N]
    return out


def attention(qkv, heads, dim_head):
    """qkv: (B, N, 3*heads*dim_head) bf16 -> (B, N, heads*dim_head) bf16."""
    B, N, width = qkv.shape
    inner = heads * dim_head
    return pl.pallas_call(
        partial(_attention_kernel, heads=heads, dim_head=dim_head, inner=inner),
        grid=(B,),
        in_specs=[pl.BlockSpec((1, N, width), lambda b: (b, 0, 0))],
        out_specs=pl.BlockSpec((1, N, inner), lambda b: (b, 0, 0)),
        out_shape=jax.ShapeDtypeStruct((B, N, inner), jnp.bfloat16),
        compiler_params=pltpu.CompilerParams(dimension_semantics=("parallel",)),
    )(qkv)


def depthwise_conv(patches, w_dw2, b_dw2):
    """patches: (B, 9, D, P); w_dw2: (D, 18); b_dw2: (D, 2) -> (B, 2D, P)."""
    B, _, D, P = patches.shape
    spec_out = pl.BlockSpec((1, D, P), lambda i: (i, 0, 0))
    o0, o1 = pl.pallas_call(
        _pool_dw_kernel,
        grid=(B,),
        in_specs=[pl.BlockSpec((1, 9, D, P), lambda i: (i, 0, 0, 0)),
                  pl.BlockSpec((D, 18), lambda i: (0, 0)),
                  pl.BlockSpec((D, 2), lambda i: (0, 0))],
        out_specs=(spec_out, spec_out),
        out_shape=(jax.ShapeDtypeStruct((B, D, P), jnp.float32),
                   jax.ShapeDtypeStruct((B, D, P), jnp.float32)),
        compiler_params=pltpu.CompilerParams(dimension_semantics=("parallel",)),
    )(patches, w_dw2, b_dw2)
    # interleave: output channel 2c (from o0) then 2c+1 (from o1)
    return jnp.stack([o0, o1], axis=2).reshape(B, 2 * D, P)


# ----------------------------- parameter init -----------------------------

def xavier_normal(key, shape, fan_in, fan_out):
    std = math.sqrt(2.0 / (fan_in + fan_out))
    return std * jax.random.normal(key, shape, jnp.float32)


def make_params(key, *, img_size, patch_size, num_classes, dim, depth, heads,
                dim_head, mlp_dim_ratio):
    keys = iter(jax.random.split(key, 128))
    p = patch_size
    out_size = conv_output_size(img_size, p, p)
    num_patches = out_size ** 2

    params = {}
    w_pe = xavier_normal(next(keys), (dim, 3, p, p), 3 * p * p, dim * p * p)
    params['pe_w'] = w_pe.reshape(dim, 3 * p * p).T
    params['pe_b'] = jnp.zeros((dim,), jnp.float32)
    params['pos_emb'] = jax.random.normal(next(keys), (1, num_patches + 1, dim), jnp.float32)
    params['cls_token'] = jax.random.normal(next(keys), (1, 1, dim), jnp.float32)

    stages = []
    d = dim
    for ind, (layer_depth, layer_heads) in enumerate(zip(depth, heads)):
        inner = layer_heads * dim_head
        hidden = d * mlp_dim_ratio
        layers = []
        for _ in range(layer_depth):
            layers.append({
                'ln1_g': jnp.ones((d,), jnp.float32),
                'ln1_b': jnp.zeros((d,), jnp.float32),
                'w_qkv': xavier_normal(next(keys), (d, 3 * inner), d, 3 * inner),
                'w_out': xavier_normal(next(keys), (inner, d), inner, d),
                'b_out': jnp.zeros((d,), jnp.float32),
                'ln2_g': jnp.ones((d,), jnp.float32),
                'ln2_b': jnp.zeros((d,), jnp.float32),
                'w_ff1': xavier_normal(next(keys), (d, hidden), d, hidden),
                'b_ff1': jnp.zeros((hidden,), jnp.float32),
                'w_ff2': xavier_normal(next(keys), (hidden, d), hidden, d),
                'b_ff2': jnp.zeros((d,), jnp.float32),
            })
        stage = {'layers': layers}          # NOTE: no ints in the pytree (keeps jit happy)
        if ind < len(depth) - 1:
            stage['pool'] = {
                'dw_w': xavier_normal(next(keys), (2 * d, 1, 3, 3), 9, 2 * d * 9),
                'dw_b': jnp.zeros((2 * d,), jnp.float32),
                'pw_w': xavier_normal(next(keys), (2 * d, 2 * d), 2 * d, 2 * d),
                'pw_b': jnp.zeros((2 * d,), jnp.float32),
                'cls_w': xavier_normal(next(keys), (d, 2 * d), d, 2 * d),
                'cls_b': jnp.zeros((2 * d,), jnp.float32),
            }
            d *= 2
        stages.append(stage)
    params['stages'] = stages
    params['head_ln_g'] = jnp.ones((d,), jnp.float32)
    params['head_ln_b'] = jnp.zeros((d,), jnp.float32)
    params['head_w'] = xavier_normal(next(keys), (d, num_classes), d, num_classes)
    params['head_b'] = jnp.zeros((num_classes,), jnp.float32)
    return params


# ----------------------------- forward pass -----------------------------

def transformer_block(x, lp, heads, dim_head):
    B, N, D = x.shape
    inner = heads * dim_head
    x2 = x.reshape(B * N, D)

    # fused LN1 + qkv projection; attention scale folded into the q weight columns.
    # qkv is written to HBM in bf16 (it is only ever an MXU input downstream).
    scale = dim_head ** (-0.5)
    col_scale = jnp.concatenate([jnp.full((inner,), scale, jnp.float32),
                                 jnp.ones((2 * inner,), jnp.float32)])
    w_qkv = lp['w_qkv'] * col_scale[None, :]
    qkv = linear(x2, w_qkv, None, ln=(lp['ln1_g'], lp['ln1_b']),
                 out_dtype=jnp.bfloat16)                              # (B*N, 3*inner) bf16
    qkv = qkv.reshape(B, N, 3 * inner)

    o = attention(qkv, heads, dim_head)                               # (B, N, inner) bf16

    # out projection with residual fused in (residual stream stays f32)
    x2 = linear(o.reshape(B * N, inner), lp['w_out'], lp['b_out'], residual=x2)

    # fused LN2 + FF1 + GELU (bf16 hidden), then FF2 with residual fused in
    h = linear(x2, lp['w_ff1'], lp['b_ff1'], ln=(lp['ln2_g'], lp['ln2_b']),
               gelu=True, out_dtype=jnp.bfloat16)
    x2 = linear(h, lp['w_ff2'], lp['b_ff2'], residual=x2)
    return x2.reshape(B, N, D)


def pool_layer(x, pp):
    B, N, D = x.shape
    cls_tok, tokens = x[:, 0], x[:, 1:]                              # (B, D), (B, N-1, D)
    cls_out = linear(cls_tok, pp['cls_w'], pp['cls_b']).reshape(B, 1, 2 * D)

    h = int(round(math.sqrt(N - 1)))
    t = tokens.transpose(0, 2, 1).reshape(B, D, h, h)                # b (h w) c -> b c h w
    tp = jnp.pad(t, ((0, 0), (0, 0), (1, 1), (1, 1)))
    Ho = conv_output_size(h, 3, 2, 1)
    P = Ho * Ho
    # TODO(synk): im2col is still built host-side (9x HBM expansion); for large
    # resolutions the 9 taps could be taken in-kernel on the padded VMEM tile.
    taps = [tp[:, :, ky:ky + 2 * Ho:2, kx:kx + 2 * Ho:2]
            for ky in range(3) for kx in range(3)]
    patches = jnp.stack(taps, axis=1).reshape(B, 9, D, P)            # spatial P on lanes

    w_dw2 = pp['dw_w'].reshape(D, 2, 9).reshape(D, 18)               # per input-channel weights
    b_dw2 = pp['dw_b'].reshape(D, 2)
    dw = depthwise_conv(patches, w_dw2, b_dw2)                       # (B, 2D, P), no repeat

    # pointwise 1x1 conv == linear over channels; output already b (h w) c
    dwt = dw.transpose(0, 2, 1).reshape(B * P, 2 * D)
    pw = linear(dwt, pp['pw_w'], pp['pw_b']).reshape(B, P, 2 * D)
    return jnp.concatenate([cls_out, pw], axis=1)


def pit_forward(params, img, *, patch_size, heads, dim_head):
    B, C, H, W = img.shape
    p = patch_size
    Ho, Wo = H // p, W // p
    # patch embedding (Conv2d k=p, s=p) as flattened-patch matmul
    xr = (img.reshape(B, C, Ho, p, Wo, p)
             .transpose(0, 2, 4, 1, 3, 5)
             .reshape(B * Ho * Wo, C * p * p))
    x = linear(xr, params['pe_w'], params['pe_b']).reshape(B, Ho * Wo, -1)
    D = x.shape[-1]

    cls = jnp.broadcast_to(params['cls_token'], (B, 1, D))
    x = jnp.concatenate([cls, x], axis=1)
    x = x + params['pos_emb']
    # emb_dropout is identity in eval / p=0

    for si, stage in enumerate(params['stages']):
        for lp in stage['layers']:
            x = transformer_block(x, lp, heads[si], dim_head)
        if 'pool' in stage:
            x = pool_layer(x, stage['pool'])

    cls_out = x[:, 0]                                                # (B, D_final)
    # final LayerNorm fused into the classification head (kept in f32)
    return linear(cls_out, params['head_w'], params['head_b'],
                  ln=(params['head_ln_g'], params['head_ln_b']), bf16=False)


# ----------------------------- main -----------------------------

if __name__ == "__main__":
    cfg = dict(img_size=16, patch_size=4, num_classes=10, dim=32,
               depth=(1, 1), heads=(2, 2), dim_head=16, mlp_dim_ratio=2)

    key = jax.random.PRNGKey(0)
    pkey, xkey = jax.random.split(key)
    params = make_params(pkey, **cfg)
    img = jax.random.normal(xkey, (2, 3, cfg['img_size'], cfg['img_size']), jnp.float32)

    fwd = jax.jit(partial(pit_forward, patch_size=cfg['patch_size'],
                          heads=cfg['heads'], dim_head=cfg['dim_head']))
    logits = fwd(params, img)
    jax.block_until_ready(logits)
    assert logits.shape == (2, cfg['num_classes'])
    assert bool(jnp.all(jnp.isfinite(logits)))
    print("KERNEL_OK")
</pallas_src>

<mosaic_0001>
module attributes {stable_mosaic.version = 11 : i64} {
  func.func @_linear_kernel(%arg0: i32, %arg1: i32, %arg2: memref<32x48xbf16, #tpu.memory_space<vmem>>, %arg3: memref<48x128xbf16, #tpu.memory_space<vmem>>, %arg4: memref<1x128xf32, #tpu.memory_space<vmem>>, %arg5: memref<32x128xf32, #tpu.memory_space<vmem>>) attributes {dimension_semantics = [#tpu.dimension_semantics<parallel>, #tpu.dimension_semantics<parallel>], iteration_bounds = array<i64: 1, 1>, scalar_prefetch = 0 : i64, scratch_operands = 0 : i64, tpu.core_type = #tpu.core_type<tc>, window_params = [{transform_indices = @transform_0, window_bounds = array<i64: 32, 48>}, {transform_indices = @transform_1, window_bounds = array<i64: 48, 128>}, {transform_indices = @transform_2, window_bounds = array<i64: 1, 128>}, {transform_indices = @transform_3, window_bounds = array<i64: 32, 128>}]} {
    %c0 = arith.constant 0 : index
    %c0_0 = arith.constant 0 : index
    %0 = vector.load %arg2[%c0, %c0_0] : memref<32x48xbf16, #tpu.memory_space<vmem>>, vector<32x48xbf16>
    %c0_1 = arith.constant 0 : index
    %c0_2 = arith.constant 0 : index
    %1 = vector.load %arg3[%c0_1, %c0_2] : memref<48x128xbf16, #tpu.memory_space<vmem>>, vector<48x128xbf16>
    %cst = arith.constant dense<0.000000e+00> : vector<32x128xf32>
    %2 = tpu.matmul %0, %1, %cst {dimension_numbers = #tpu.dot_dimension_numbers<[1], [0], [0], [1], [0, 0, 1, 1], [], []>} : vector<32x48xbf16>, vector<48x128xbf16>, vector<32x128xf32> -> vector<32x128xf32>
    %c0_3 = arith.constant 0 : index
    %c0_4 = arith.constant 0 : index
    %3 = vector.load %arg4[%c0_3, %c0_4] : memref<1x128xf32, #tpu.memory_space<vmem>>, vector<1x128xf32>
    %4 = vector.broadcast %3 : vector<1x128xf32> to vector<32x128xf32>
    %5 = arith.addf %2, %4 : vector<32x128xf32>
    %c0_5 = arith.constant 0 : index
    %c0_6 = arith.constant 0 : index
    %6 = vector.load %arg5[%c0_5, %c0_6] : memref<32x128xf32, #tpu.memory_space<vmem>>, vector<32x128xf32>
    tpu.vector_store %arg5[%c0_5, %c0_6], %5 {strides = array<i32>} : memref<32x128xf32, #tpu.memory_space<vmem>>, vector<32x128xf32>,
    return
  }
  func.func @transform_0(%arg0: i32, %arg1: i32) -> (i32, i32) {
    %c0_i32 = arith.constant 0 : i32
    %c0_i32_0 = arith.constant 0 : i32
    return %arg0, %c0_i32 : i32, i32
  }
  func.func @transform_1(%arg0: i32, %arg1: i32) -> (i32, i32) {
    %c0_i32 = arith.constant 0 : i32
    %c0_i32_0 = arith.constant 0 : i32
    return %c0_i32, %arg1 : i32, i32
  }
  func.func @transform_2(%arg0: i32, %arg1: i32) -> (i32, i32) {
    %c0_i32 = arith.constant 0 : i32
    %c0_i32_0 = arith.constant 0 : i32
    return %c0_i32, %arg1 : i32, i32
  }
  func.func @transform_3(%arg0: i32, %arg1: i32) -> (i32, i32) {
    %c0_i32 = arith.constant 0 : i32
    return %arg0, %arg1 : i32, i32
  }
}

module attributes {stable_mosaic.version = 11 : i64} {
  func.func @_linear_kernel(%arg0: i32, %arg1: i32, %arg2: memref<40x32xf32, #tpu.memory_space<vmem>>, %arg3: memref<32x128xbf16, #tpu.memory_space<vmem>>, %arg4: memref<1x128xf32, #tpu.memory_space<vmem>>, %arg5: memref<1x32xf32, #tpu.memory_space<vmem>>, %arg6: memref<1x32xf32, #tpu.memory_space<vmem>>, %arg7: memref<40x128xbf16, #tpu.memory_space<vmem>>) attributes {dimension_semantics = [#tpu.dimension_semantics<parallel>, #tpu.dimension_semantics<parallel>], iteration_bounds = array<i64: 1, 1>, scalar_prefetch = 0 : i64, scratch_operands = 0 : i64, tpu.core_type = #tpu.core_type<tc>, window_params = [{transform_indices = @transform_0, window_bounds = array<i64: 40, 32>}, {transform_indices = @transform_1, window_bounds = array<i64: 32, 128>}, {transform_indices = @transform_2, window_bounds = array<i64: 1, 128>}, {pipeline_mode = #tpu.pipeline_mode<synchronous>, transform_indices = @transform_3, window_bounds = array<i64: 1, 32>}, {pipeline_mode = #tpu.pipeline_mode<synchronous>, transform_indices = @transform_4, window_bounds = array<i64: 1, 32>}, {transform_indices = @transform_5, window_bounds = array<i64: 40, 128>}]} {
    %c0 = arith.constant 0 : index
    %c0_0 = arith.constant 0 : index
    %0 = vector.load %arg2[%c0, %c0_0] : memref<40x32xf32, #tpu.memory_space<vmem>>, vector<40x32xf32>
    %cst = arith.constant dense<0.000000e+00> : vector<40xf32>
    %1 = vector.multi_reduction <add>, %0, %cst [1] : vector<40x32xf32> to vector<40xf32>
    %2 = vector.shape_cast %1 : vector<40xf32> to vector<40x1xf32>
    %cst_1 = arith.constant 3.200000e+01 : f32
    %3 = vector.broadcast %cst_1 : f32 to vector<40x1xf32>
    %4 = arith.divf %2, %3 : vector<40x1xf32>
    %5 = vector.broadcast %4 : vector<40x1xf32> to vector<40x32xf32>
    %6 = arith.subf %0, %5 : vector<40x32xf32>
    %7 = arith.mulf %6, %6 : vector<40x32xf32>
    %cst_2 = arith.constant dense<0.000000e+00> : vector<40xf32>
    %8 = vector.multi_reduction <add>, %7, %cst_2 [1] : vector<40x32xf32> to vector<40xf32>
    %9 = vector.shape_cast %8 : vector<40xf32> to vector<40x1xf32>
    %cst_3 = arith.constant 3.200000e+01 : f32
    %10 = vector.broadcast %cst_3 : f32 to vector<40x1xf32>
    %11 = arith.divf %9, %10 : vector<40x1xf32>
    %12 = vector.broadcast %4 : vector<40x1xf32> to vector<40x32xf32>
    %13 = arith.subf %0, %12 : vector<40x32xf32>
    %cst_4 = arith.constant 9.99999974E-6 : f32
    %14 = vector.broadcast %cst_4 : f32 to vector<40x1xf32>
    %15 = arith.addf %11, %14 : vector<40x1xf32>
    %16 = math.rsqrt %15 : vector<40x1xf32>
    %17 = vector.broadcast %16 : vector<40x1xf32> to vector<40x32xf32>
    %18 = arith.mulf %13, %17 : vector<40x32xf32>
    %c0_5 = arith.constant 0 : index
    %c0_6 = arith.constant 0 : index
    %19 = vector.load %arg5[%c0_5, %c0_6] : memref<1x32xf32, #tpu.memory_space<vmem>>, vector<1x32xf32>
    %20 = vector.broadcast %19 : vector<1x32xf32> to vector<40x32xf32>
    %21 = arith.mulf %18, %20 : vector<40x32xf32>
    %c0_7 = arith.constant 0 : index
    %c0_8 = arith.constant 0 : index
    %22 = vector.load %arg6[%c0_7, %c0_8] : memref<1x32xf32, #tpu.memory_space<vmem>>, vector<1x32xf32>
    %23 = vector.broadcast %22 : vector<1x32xf32> to vector<40x32xf32>
    %24 = arith.addf %21, %23 : vector<40x32xf32>
    %25 = arith.truncf %24 : vector<40x32xf32> to vector<40x32xbf16>
    %c0_9 = arith.constant 0 : index
    %c0_10 = arith.constant 0 : index
    %26 = vector.load %arg3[%c0_9, %c0_10] : memref<32x128xbf16, #tpu.memory_space<vmem>>, vector<32x128xbf16>
    %cst_11 = arith.constant dense<0.000000e+00> : vector<40x128xf32>
    %27 = tpu.matmul %25, %26, %cst_11 {dimension_numbers = #tpu.dot_dimension_numbers<[1], [0], [0], [1], [0, 0, 1, 1], [], []>} : vector<40x32xbf16>, vector<32x128xbf16>, vector<40x128xf32> -> vector<40x128xf32>
    %c0_12 = arith.constant 0 : index
    %c0_13 = arith.constant 0 : index
    %28 = vector.load %arg4[%c0_12, %c0_13] : memref<1x128xf32, #tpu.memory_space<vmem>>, vector<1x128xf32>
    %29 = vector.broadcast %28 : vector<1x128xf32> to vector<40x128xf32>
    %30 = arith.addf %27, %29 : vector<40x128xf32>
    %31 = arith.truncf %30 : vector<40x128xf32> to vector<40x128xbf16>
    %c0_14 = arith.constant 0 : index
    %c0_15 = arith.constant 0 : index
    %32 = vector.load %arg7[%c0_14, %c0_15] : memref<40x128xbf16, #tpu.memory_space<vmem>>, vector<40x128xbf16>
    tpu.vector_store %arg7[%c0_14, %c0_15], %31 {strides = array<i32>} : memref<40x128xbf16, #tpu.memory_space<vmem>>, vector<40x128xbf16>,
    return
  }
  func.func @transform_0(%arg0: i32, %arg1: i32) -> (i32, i32) {
    %c0_i32 = arith.constant 0 : i32
    %c0_i32_0 = arith.constant 0 : i32
    return %arg0, %c0_i32 : i32, i32
  }
  func.func @transform_1(%arg0: i32, %arg1: i32) -> (i32, i32) {
    %c0_i32 = arith.constant 0 : i32
    %c0_i32_0 = arith.constant 0 : i32
    return %c0_i32, %arg1 : i32, i32
  }
  func.func @transform_2(%arg0: i32, %arg1: i32) -> (i32, i32) {
    %c0_i32 = arith.constant 0 : i32
    %c0_i32_0 = arith.constant 0 : i32
    return %c0_i32, %arg1 : i32, i32
  }
  func.func @transform_3(%arg0: i32, %arg1: i32) -> (i32, i32) {
    %c0_i32 = arith.constant 0 : i32
    %c0_i32_0 = arith.constant 0 : i32
    %c0_i32_1 = arith.constant 0 : i32
    return %c0_i32, %c0_i32_0 : i32, i32
  }
  func.func @transform_4(%arg0: i32, %arg1: i32) -> (i32, i32) {
    %c0_i32 = arith.constant 0 : i32
    %c0_i32_0 = arith.constant 0 : i32
    %c0_i32_1 = arith.constant 0 : i32
    return %c0_i32, %c0_i32_0 : i32, i32
  }
  func.func @transform_5(%arg0: i32, %arg1: i32) -> (i32, i32) {
    %c0_i32 = arith.constant 0 : i32
    return %arg0, %arg1 : i32, i32
  }
}

module attributes {stable_mosaic.version = 11 : i64} {
  func.func @_attention_kernel(%arg0: i32, %arg1: memref<1x17x96xbf16, #tpu.memory_space<vmem>>, %arg2: memref<1x17x32xbf16, #tpu.memory_space<vmem>>) attributes {dimension_semantics = [#tpu.dimension_semantics<parallel>], iteration_bounds = array<i64: 2>, scalar_prefetch = 0 : i64, scratch_operands = 0 : i64, tpu.core_type = #tpu.core_type<tc>, window_params = [{transform_indices = @transform_0, window_bounds = array<i64: 1, 17, 96>}, {transform_indices = @transform_1, window_bounds = array<i64: 1, 17, 32>}]} {
    %c0 = arith.constant 0 : index
    %c0_0 = arith.constant 0 : index
    %c0_1 = arith.constant 0 : index
    %0 = vector.load %arg1[%c0, %c0_0, %c0_1] : memref<1x17x96xbf16, #tpu.memory_space<vmem>>, vector<1x17x96xbf16>
    %1 = vector.shape_cast %0 : vector<1x17x96xbf16> to vector<17x96xbf16>
    %2 = vector.extract_strided_slice %1 {offsets = [0, 0], sizes = [17, 16], strides = [1, 1]} : vector<17x96xbf16> to vector<17x16xbf16>
    %3 = vector.extract_strided_slice %1 {offsets = [0, 32], sizes = [17, 16], strides = [1, 1]} : vector<17x96xbf16> to vector<17x16xbf16>
    %4 = vector.extract_strided_slice %1 {offsets = [0, 64], sizes = [17, 16], strides = [1, 1]} : vector<17x96xbf16> to vector<17x16xbf16>
    %cst = arith.constant dense<0.000000e+00> : vector<17x17xf32>
    %5 = tpu.matmul %2, %3, %cst {dimension_numbers = #tpu.dot_dimension_numbers<[1], [1], [0], [0], [0, 0, 1, 0], [], []>} : vector<17x16xbf16>, vector<17x16xbf16>, vector<17x17xf32> -> vector<17x17xf32>
    %cst_2 = arith.constant dense<0xFF800000> : vector<17xf32>
    %6 = vector.multi_reduction <maximumf>, %5, %cst_2 [1] : vector<17x17xf32> to vector<17xf32>
    %7 = vector.shape_cast %6 : vector<17xf32> to vector<17x1xf32>
    %8 = vector.broadcast %7 : vector<17x1xf32> to vector<17x17xf32>
    %9 = arith.subf %5, %8 : vector<17x17xf32>
    %10 = math.exp %9 : vector<17x17xf32>
    %cst_3 = arith.constant dense<0.000000e+00> : vector<17xf32>
    %11 = vector.multi_reduction <add>, %10, %cst_3 [1] : vector<17x17xf32> to vector<17xf32>
    %12 = vector.shape_cast %11 : vector<17xf32> to vector<17x1xf32>
    %13 = tpu.reciprocal %12 {approx = true} : vector<17x1xf32> -> vector<17x1xf32>
    %14 = vector.broadcast %13 : vector<17x1xf32> to vector<17x17xf32>
    %15 = arith.mulf %10, %14 : vector<17x17xf32>
    %16 = arith.truncf %15 : vector<17x17xf32> to vector<17x17xbf16>
    %cst_4 = arith.constant dense<0.000000e+00> : vector<17x16xf32>
    %17 = tpu.matmul %16, %4, %cst_4 {dimension_numbers = #tpu.dot_dimension_numbers<[1], [0], [0], [1], [0, 0, 1, 1], [], []>} : vector<17x17xbf16>, vector<17x16xbf16>, vector<17x16xf32> -> vector<17x16xf32>
    %18 = vector.extract_strided_slice %1 {offsets = [0, 16], sizes = [17, 16], strides = [1, 1]} : vector<17x96xbf16> to vector<17x16xbf16>
    %19 = vector.extract_strided_slice %1 {offsets = [0, 48], sizes = [17, 16], strides = [1, 1]} : vector<17x96xbf16> to vector<17x16xbf16>
    %20 = vector.extract_strided_slice %1 {offsets = [0, 80], sizes = [17, 16], strides = [1, 1]} : vector<17x96xbf16> to vector<17x16xbf16>
    %cst_5 = arith.constant dense<0.000000e+00> : vector<17x17xf32>
    %21 = tpu.matmul %18, %19, %cst_5 {dimension_numbers = #tpu.dot_dimension_numbers<[1], [1], [0], [0], [0, 0, 1, 0], [], []>} : vector<17x16xbf16>, vector<17x16xbf16>, vector<17x17xf32> -> vector<17x17xf32>
    %cst_6 = arith.constant dense<0xFF800000> : vector<17xf32>
    %22 = vector.multi_reduction <maximumf>, %21, %cst_6 [1] : vector<17x17xf32> to vector<17xf32>
    %23 = vector.shape_cast %22 : vector<17xf32> to vector<17x1xf32>
    %24 = vector.broadcast %23 : vector<17x1xf32> to vector<17x17xf32>
    %25 = arith.subf %21, %24 : vector<17x17xf32>
    %26 = math.exp %25 : vector<17x17xf32>
    %cst_7 = arith.constant dense<0.000000e+00> : vector<17xf32>
    %27 = vector.multi_reduction <add>, %26, %cst_7 [1] : vector<17x17xf32> to vector<17xf32>
    %28 = vector.shape_cast %27 : vector<17xf32> to vector<17x1xf32>
    %29 = tpu.reciprocal %28 {approx = true} : vector<17x1xf32> -> vector<17x1xf32>
    %30 = vector.broadcast %29 : vector<17x1xf32> to vector<17x17xf32>
    %31 = arith.mulf %26, %30 : vector<17x17xf32>
    %32 = arith.truncf %31 : vector<17x17xf32> to vector<17x17xbf16>
    %cst_8 = arith.constant dense<0.000000e+00> : vector<17x16xf32>
    %33 = tpu.matmul %32, %20, %cst_8 {dimension_numbers = #tpu.dot_dimension_numbers<[1], [0], [0], [1], [0, 0, 1, 1], [], []>} : vector<17x17xbf16>, vector<17x16xbf16>, vector<17x16xf32> -> vector<17x16xf32>
    %34 = tpu.concatenate %17, %33 in 1 : vector<17x16xf32>, vector<17x16xf32> -> vector<17x32xf32>
    %35 = arith.truncf %34 : vector<17x32xf32> to vector<17x32xbf16>
    %c0_9 = arith.constant 0 : index
    %c0_10 = arith.constant 0 : index
    %c0_11 = arith.constant 0 : index
    %36 = vector.load %arg2[%c0_9, %c0_10, %c0_11] : memref<1x17x32xbf16, #tpu.memory_space<vmem>>, vector<1x17x32xbf16>
    %37 = vector.shape_cast %36 : vector<1x17x32xbf16> to vector<17x32xbf16>
    %38 = vector.shape_cast %35 : vector<17x32xbf16> to vector<1x17x32xbf16>
    tpu.vector_store %arg2[%c0_9, %c0_10, %c0_11], %38 {strides = array<i32>} : memref<1x17x32xbf16, #tpu.memory_space<vmem>>, vector<1x17x32xbf16>,
    return
  }
  func.func @transform_0(%arg0: i32) -> (i32, i32, i32) {
    %c0_i32 = arith.constant 0 : i32
    %c0_i32_0 = arith.constant 0 : i32
    %c0_i32_1 = arith.constant 0 : i32
    return %arg0, %c0_i32, %c0_i32_0 : i32, i32, i32
  }
  func.func @transform_1(%arg0: i32) -> (i32, i32, i32) {
    %c0_i32 = arith.constant 0 : i32
    %c0_i32_0 = arith.constant 0 : i32
    %c0_i32_1 = arith.constant 0 : i32
    return %arg0, %c0_i32, %c0_i32_0 : i32, i32, i32
  }
}

module attributes {stable_mosaic.version = 11 : i64} {
  func.func @_linear_kernel(%arg0: i32, %arg1: i32, %arg2: memref<40x32xbf16, #tpu.memory_space<vmem>>, %arg3: memref<32x128xbf16, #tpu.memory_space<vmem>>, %arg4: memref<1x128xf32, #tpu.memory_space<vmem>>, %arg5: memref<40x128xf32, #tpu.memory_space<vmem>>, %arg6: memref<40x128xf32, #tpu.memory_space<vmem>>) attributes {dimension_semantics = [#tpu.dimension_semantics<parallel>, #tpu.dimension_semantics<parallel>], iteration_bounds = array<i64: 1, 1>, scalar_prefetch = 0 : i64, scratch_operands = 0 : i64, tpu.core_type = #tpu.core_type<tc>, window_params = [{transform_indices = @transform_0, window_bounds = array<i64: 40, 32>}, {transform_indices = @transform_1, window_bounds = array<i64: 32, 128>}, {transform_indices = @transform_2, window_bounds = array<i64: 1, 128>}, {transform_indices = @transform_3, window_bounds = array<i64: 40, 128>}, {transform_indices = @transform_4, window_bounds = array<i64: 40, 128>}]} {
    %c0 = arith.constant 0 : index
    %c0_0 = arith.constant 0 : index
    %0 = vector.load %arg2[%c0, %c0_0] : memref<40x32xbf16, #tpu.memory_space<vmem>>, vector<40x32xbf16>
    %c0_1 = arith.constant 0 : index
    %c0_2 = arith.constant 0 : index
    %1 = vector.load %arg3[%c0_1, %c0_2] : memref<32x128xbf16, #tpu.memory_space<vmem>>, vector<32x128xbf16>
    %cst = arith.constant dense<0.000000e+00> : vector<40x128xf32>
    %2 = tpu.matmul %0, %1, %cst {dimension_numbers = #tpu.dot_dimension_numbers<[1], [0], [0], [1], [0, 0, 1, 1], [], []>} : vector<40x32xbf16>, vector<32x128xbf16>, vector<40x128xf32> -> vector<40x128xf32>
    %c0_3 = arith.constant 0 : index
    %c0_4 = arith.constant 0 : index
    %3 = vector.load %arg4[%c0_3, %c0_4] : memref<1x128xf32, #tpu.memory_space<vmem>>, vector<1x128xf32>
    %4 = vector.broadcast %3 : vector<1x128xf32> to vector<40x128xf32>
    %5 = arith.addf %2, %4 : vector<40x128xf32>
    %c0_5 = arith.constant 0 : index
    %c0_6 = arith.constant 0 : index
    %6 = vector.load %arg5[%c0_5, %c0_6] : memref<40x128xf32, #tpu.memory_space<vmem>>, vector<40x128xf32>
    %7 = arith.addf %5, %6 : vector<40x128xf32>
    %c0_7 = arith.constant 0 : index
    %c0_8 = arith.constant 0 : index
    %8 = vector.load %arg6[%c0_7, %c0_8] : memref<40x128xf32, #tpu.memory_space<vmem>>, vector<40x128xf32>
    tpu.vector_store %arg6[%c0_7, %c0_8], %7 {strides = array<i32>} : memref<40x128xf32, #tpu.memory_space<vmem>>, vector<40x128xf32>,
    return
  }
  func.func @transform_0(%arg0: i32, %arg1: i32) -> (i32, i32) {
    %c0_i32 = arith.constant 0 : i32
    %c0_i32_0 = arith.constant 0 : i32
    return %arg0, %c0_i32 : i32, i32
  }
  func.func @transform_1(%arg0: i32, %arg1: i32) -> (i32, i32) {
    %c0_i32 = arith.constant 0 : i32
    %c0_i32_0 = arith.constant 0 : i32
    return %c0_i32, %arg1 : i32, i32
  }
  func.func @transform_2(%arg0: i32, %arg1: i32) -> (i32, i32) {
    %c0_i32 = arith.constant 0 : i32
    %c0_i32_0 = arith.constant 0 : i32
    return %c0_i32, %arg1 : i32, i32
  }
  func.func @transform_3(%arg0: i32, %arg1: i32) -> (i32, i32) {
    %c0_i32 = arith.constant 0 : i32
    return %arg0, %arg1 : i32, i32
  }
  func.func @transform_4(%arg0: i32, %arg1: i32) -> (i32, i32) {
    %c0_i32 = arith.constant 0 : i32
    return %arg0, %arg1 : i32, i32
  }
}

module attributes {stable_mosaic.version = 11 : i64} {
  func.func @_linear_kernel(%arg0: i32, %arg1: i32, %arg2: memref<40x32xf32, #tpu.memory_space<vmem>>, %arg3: memref<32x128xbf16, #tpu.memory_space<vmem>>, %arg4: memref<1x128xf32, #tpu.memory_space<vmem>>, %arg5: memref<1x32xf32, #tpu.memory_space<vmem>>, %arg6: memref<1x32xf32, #tpu.memory_space<vmem>>, %arg7: memref<40x128xbf16, #tpu.memory_space<vmem>>) attributes {dimension_semantics = [#tpu.dimension_semantics<parallel>, #tpu.dimension_semantics<parallel>], iteration_bounds = array<i64: 1, 1>, scalar_prefetch = 0 : i64, scratch_operands = 0 : i64, tpu.core_type = #tpu.core_type<tc>, window_params = [{transform_indices = @transform_0, window_bounds = array<i64: 40, 32>}, {transform_indices = @transform_1, window_bounds = array<i64: 32, 128>}, {transform_indices = @transform_2, window_bounds = array<i64: 1, 128>}, {pipeline_mode = #tpu.pipeline_mode<synchronous>, transform_indices = @transform_3, window_bounds = array<i64: 1, 32>}, {pipeline_mode = #tpu.pipeline_mode<synchronous>, transform_indices = @transform_4, window_bounds = array<i64: 1, 32>}, {transform_indices = @transform_5, window_bounds = array<i64: 40, 128>}]} {
    %c0 = arith.constant 0 : index
    %c0_0 = arith.constant 0 : index
    %0 = vector.load %arg2[%c0, %c0_0] : memref<40x32xf32, #tpu.memory_space<vmem>>, vector<40x32xf32>
    %cst = arith.constant dense<0.000000e+00> : vector<40xf32>
    %1 = vector.multi_reduction <add>, %0, %cst [1] : vector<40x32xf32> to vector<40xf32>
    %2 = vector.shape_cast %1 : vector<40xf32> to vector<40x1xf32>
    %cst_1 = arith.constant 3.200000e+01 : f32
    %3 = vector.broadcast %cst_1 : f32 to vector<40x1xf32>
    %4 = arith.divf %2, %3 : vector<40x1xf32>
    %5 = vector.broadcast %4 : vector<40x1xf32> to vector<40x32xf32>
    %6 = arith.subf %0, %5 : vector<40x32xf32>
    %7 = arith.mulf %6, %6 : vector<40x32xf32>
    %cst_2 = arith.constant dense<0.000000e+00> : vector<40xf32>
    %8 = vector.multi_reduction <add>, %7, %cst_2 [1] : vector<40x32xf32> to vector<40xf32>
    %9 = vector.shape_cast %8 : vector<40xf32> to vector<40x1xf32>
    %cst_3 = arith.constant 3.200000e+01 : f32
    %10 = vector.broadcast %cst_3 : f32 to vector<40x1xf32>
    %11 = arith.divf %9, %10 : vector<40x1xf32>
    %12 = vector.broadcast %4 : vector<40x1xf32> to vector<40x32xf32>
    %13 = arith.subf %0, %12 : vector<40x32xf32>
    %cst_4 = arith.constant 9.99999974E-6 : f32
    %14 = vector.broadcast %cst_4 : f32 to vector<40x1xf32>
    %15 = arith.addf %11, %14 : vector<40x1xf32>
    %16 = math.rsqrt %15 : vector<40x1xf32>
    %17 = vector.broadcast %16 : vector<40x1xf32> to vector<40x32xf32>
    %18 = arith.mulf %13, %17 : vector<40x32xf32>
    %c0_5 = arith.constant 0 : index
    %c0_6 = arith.constant 0 : index
    %19 = vector.load %arg5[%c0_5, %c0_6] : memref<1x32xf32, #tpu.memory_space<vmem>>, vector<1x32xf32>
    %20 = vector.broadcast %19 : vector<1x32xf32> to vector<40x32xf32>
    %21 = arith.mulf %18, %20 : vector<40x32xf32>
    %c0_7 = arith.constant 0 : index
    %c0_8 = arith.constant 0 : index
    %22 = vector.load %arg6[%c0_7, %c0_8] : memref<1x32xf32, #tpu.memory_space<vmem>>, vector<1x32xf32>
    %23 = vector.broadcast %22 : vector<1x32xf32> to vector<40x32xf32>
    %24 = arith.addf %21, %23 : vector<40x32xf32>
    %25 = arith.truncf %24 : vector<40x32xf32> to vector<40x32xbf16>
    %c0_9 = arith.constant 0 : index
    %c0_10 = arith.constant 0 : index
    %26 = vector.load %arg3[%c0_9, %c0_10] : memref<32x128xbf16, #tpu.memory_space<vmem>>, vector<32x128xbf16>
    %cst_11 = arith.constant dense<0.000000e+00> : vector<40x128xf32>
    %27 = tpu.matmul %25, %26, %cst_11 {dimension_numbers = #tpu.dot_dimension_numbers<[1], [0], [0], [1], [0, 0, 1, 1], [], []>} : vector<40x32xbf16>, vector<32x128xbf16>, vector<40x128xf32> -> vector<40x128xf32>
    %c0_12 = arith.constant 0 : index
    %c0_13 = arith.constant 0 : index
    %28 = vector.load %arg4[%c0_12, %c0_13] : memref<1x128xf32, #tpu.memory_space<vmem>>, vector<1x128xf32>
    %29 = vector.broadcast %28 : vector<1x128xf32> to vector<40x128xf32>
    %30 = arith.addf %27, %29 : vector<40x128xf32>
    %31 = arith.mulf %30, %30 : vector<40x128xf32>
    %32 = arith.mulf %30, %31 : vector<40x128xf32>
    %cst_14 = arith.constant 4.471500e-02 : f32
    %33 = vector.broadcast %cst_14 : f32 to vector<40x128xf32>
    %34 = arith.mulf %33, %32 : vector<40x128xf32>
    %35 = arith.addf %30, %34 : vector<40x128xf32>
    %cst_15 = arith.constant 0.797884583 : f32
    %36 = vector.broadcast %cst_15 : f32 to vector<40x128xf32>
    %37 = arith.mulf %36, %35 : vector<40x128xf32>
    %38 = math.tanh %37 : vector<40x128xf32>
    %cst_16 = arith.constant 1.000000e+00 : f32
    %39 = vector.broadcast %cst_16 : f32 to vector<40x128xf32>
    %40 = arith.addf %39, %38 : vector<40x128xf32>
    %cst_17 = arith.constant 5.000000e-01 : f32
    %41 = vector.broadcast %cst_17 : f32 to vector<40x128xf32>
    %42 = arith.mulf %41, %40 : vector<40x128xf32>
    %43 = arith.mulf %30, %42 : vector<40x128xf32>
    %44 = arith.truncf %43 : vector<40x128xf32> to vector<40x128xbf16>
    %c0_18 = arith.constant 0 : index
    %c0_19 = arith.constant 0 : index
    %45 = vector.load %arg7[%c0_18, %c0_19] : memref<40x128xbf16, #tpu.memory_space<vmem>>, vector<40x128xbf16>
    tpu.vector_store %arg7[%c0_18, %c0_19], %44 {strides = array<i32>} : memref<40x128xbf16, #tpu.memory_space<vmem>>, vector<40x128xbf16>,
    return
  }
  func.func @transform_0(%arg0: i32, %arg1: i32) -> (i32, i32) {
    %c0_i32 = arith.constant 0 : i32
    %c0_i32_0 = arith.constant 0 : i32
    return %arg0, %c0_i32 : i32, i32
  }
  func.func @transform_1(%arg0: i32, %arg1: i32) -> (i32, i32) {
    %c0_i32 = arith.constant 0 : i32
    %c0_i32_0 = arith.constant 0 : i32
    return %c0_i32, %arg1 : i32, i32
  }
  func.func @transform_2(%arg0: i32, %arg1: i32) -> (i32, i32) {
    %c0_i32 = arith.constant 0 : i32
    %c0_i32_0 = arith.constant 0 : i32
    return %c0_i32, %arg1 : i32, i32
  }
  func.func @transform_3(%arg0: i32, %arg1: i32) -> (i32, i32) {
    %c0_i32 = arith.constant 0 : i32
    %c0_i32_0 = arith.constant 0 : i32
    %c0_i32_1 = arith.constant 0 : i32
    return %c0_i32, %c0_i32_0 : i32, i32
  }
  func.func @transform_4(%arg0: i32, %arg1: i32) -> (i32, i32) {
    %c0_i32 = arith.constant 0 : i32
    %c0_i32_0 = arith.constant 0 : i32
    %c0_i32_1 = arith.constant 0 : i32
    return %c0_i32, %c0_i32_0 : i32, i32
  }
  func.func @transform_5(%arg0: i32, %arg1: i32) -> (i32, i32) {
    %c0_i32 = arith.constant 0 : i32
    return %arg0, %arg1 : i32, i32
  }
}

module attributes {stable_mosaic.version = 11 : i64} {
  func.func @_linear_kernel(%arg0: i32, %arg1: i32, %arg2: memref<40x64xbf16, #tpu.memory_space<vmem>>, %arg3: memref<64x128xbf16, #tpu.memory_space<vmem>>, %arg4: memref<1x128xf32, #tpu.memory_space<vmem>>, %arg5: memref<40x128xf32, #tpu.memory_space<vmem>>, %arg6: memref<40x128xf32, #tpu.memory_space<vmem>>) attributes {dimension_semantics = [#tpu.dimension_semantics<parallel>, #tpu.dimension_semantics<parallel>], iteration_bounds = array<i64: 1, 1>, scalar_prefetch = 0 : i64, scratch_operands = 0 : i64, tpu.core_type = #tpu.core_type<tc>, window_params = [{transform_indices = @transform_0, window_bounds = array<i64: 40, 64>}, {transform_indices = @transform_1, window_bounds = array<i64: 64, 128>}, {transform_indices = @transform_2, window_bounds = array<i64: 1, 128>}, {transform_indices = @transform_3, window_bounds = array<i64: 40, 128>}, {transform_indices = @transform_4, window_bounds = array<i64: 40, 128>}]} {
    %c0 = arith.constant 0 : index
    %c0_0 = arith.constant 0 : index
    %0 = vector.load %arg2[%c0, %c0_0] : memref<40x64xbf16, #tpu.memory_space<vmem>>, vector<40x64xbf16>
    %c0_1 = arith.constant 0 : index
    %c0_2 = arith.constant 0 : index
    %1 = vector.load %arg3[%c0_1, %c0_2] : memref<64x128xbf16, #tpu.memory_space<vmem>>, vector<64x128xbf16>
    %cst = arith.constant dense<0.000000e+00> : vector<40x128xf32>
    %2 = tpu.matmul %0, %1, %cst {dimension_numbers = #tpu.dot_dimension_numbers<[1], [0], [0], [1], [0, 0, 1, 1], [], []>} : vector<40x64xbf16>, vector<64x128xbf16>, vector<40x128xf32> -> vector<40x128xf32>
    %c0_3 = arith.constant 0 : index
    %c0_4 = arith.constant 0 : index
    %3 = vector.load %arg4[%c0_3, %c0_4] : memref<1x128xf32, #tpu.memory_space<vmem>>, vector<1x128xf32>
    %4 = vector.broadcast %3 : vector<1x128xf32> to vector<40x128xf32>
    %5 = arith.addf %2, %4 : vector<40x128xf32>
    %c0_5 = arith.constant 0 : index
    %c0_6 = arith.constant 0 : index
    %6 = vector.load %arg5[%c0_5, %c0_6] : memref<40x128xf32, #tpu.memory_space<vmem>>, vector<40x128xf32>
    %7 = arith.addf %5, %6 : vector<40x128xf32>
    %c0_7 = arith.constant 0 : index
    %c0_8 = arith.constant 0 : index
    %8 = vector.load %arg6[%c0_7, %c0_8] : memref<40x128xf32, #tpu.memory_space<vmem>>, vector<40x128xf32>
    tpu.vector_store %arg6[%c0_7, %c0_8], %7 {strides = array<i32>} : memref<40x128xf32, #tpu.memory_space<vmem>>, vector<40x128xf32>,
    return
  }
  func.func @transform_0(%arg0: i32, %arg1: i32) -> (i32, i32) {
    %c0_i32 = arith.constant 0 : i32
    %c0_i32_0 = arith.constant 0 : i32
    return %arg0, %c0_i32 : i32, i32
  }
  func.func @transform_1(%arg0: i32, %arg1: i32) -> (i32, i32) {
    %c0_i32 = arith.constant 0 : i32
    %c0_i32_0 = arith.constant 0 : i32
    return %c0_i32, %arg1 : i32, i32
  }
  func.func @transform_2(%arg0: i32, %arg1: i32) -> (i32, i32) {
    %c0_i32 = arith.constant 0 : i32
    %c0_i32_0 = arith.constant 0 : i32
    return %c0_i32, %arg1 : i32, i32
  }
  func.func @transform_3(%arg0: i32, %arg1: i32) -> (i32, i32) {
    %c0_i32 = arith.constant 0 : i32
    return %arg0, %arg1 : i32, i32
  }
  func.func @transform_4(%arg0: i32, %arg1: i32) -> (i32, i32) {
    %c0_i32 = arith.constant 0 : i32
    return %arg0, %arg1 : i32, i32
  }
}

module attributes {stable_mosaic.version = 11 : i64} {
  func.func @_pool_dw_kernel(%arg0: i32, %arg1: memref<1x9x32x4xf32, #tpu.memory_space<vmem>>, %arg2: memref<32x18xf32, #tpu.memory_space<vmem>>, %arg3: memref<32x2xf32, #tpu.memory_space<vmem>>, %arg4: memref<1x32x4xf32, #tpu.memory_space<vmem>>, %arg5: memref<1x32x4xf32, #tpu.memory_space<vmem>>) attributes {dimension_semantics = [#tpu.dimension_semantics<parallel>], iteration_bounds = array<i64: 2>, scalar_prefetch = 0 : i64, scratch_operands = 0 : i64, tpu.core_type = #tpu.core_type<tc>, window_params = [{transform_indices = @transform_0, window_bounds = array<i64: 1, 9, 32, 4>}, {pipeline_mode = #tpu.pipeline_mode<synchronous>, transform_indices = @transform_1, window_bounds = array<i64: 32, 18>}, {pipeline_mode = #tpu.pipeline_mode<synchronous>, transform_indices = @transform_2, window_bounds = array<i64: 32, 2>}, {transform_indices = @transform_3, window_bounds = array<i64: 1, 32, 4>}, {transform_indices = @transform_4, window_bounds = array<i64: 1, 32, 4>}]} {
    %c0 = arith.constant 0 : index
    %c0_0 = arith.constant 0 : index
    %0 = vector.load %arg2[%c0, %c0_0] : memref<32x18xf32, #tpu.memory_space<vmem>>, vector<32x18xf32>
    %c0_1 = arith.constant 0 : index
    %c0_2 = arith.constant 0 : index
    %1 = vector.load %arg3[%c0_1, %c0_2] : memref<32x2xf32, #tpu.memory_space<vmem>>, vector<32x2xf32>
    %c0_3 = arith.constant 0 : index
    %c0_4 = arith.constant 0 : index
    %c0_5 = arith.constant 0 : index
    %c0_6 = arith.constant 0 : index
    %2 = vector.load %arg1[%c0_3, %c0_4, %c0_5, %c0_6] : memref<1x9x32x4xf32, #tpu.memory_space<vmem>>, vector<1x1x32x4xf32>
    %3 = vector.shape_cast %2 : vector<1x1x32x4xf32> to vector<32x4xf32>
    %4 = vector.extract_strided_slice %0 {offsets = [0, 0], sizes = [32, 1], strides = [1, 1]} : vector<32x18xf32> to vector<32x1xf32>
    %5 = vector.broadcast %4 : vector<32x1xf32> to vector<32x4xf32>
    %6 = arith.mulf %3, %5 : vector<32x4xf32>
    %7 = vector.extract_strided_slice %0 {offsets = [0, 9], sizes = [32, 1], strides = [1, 1]} : vector<32x18xf32> to vector<32x1xf32>
    %8 = vector.broadcast %7 : vector<32x1xf32> to vector<32x4xf32>
    %9 = arith.mulf %3, %8 : vector<32x4xf32>
    %c0_7 = arith.constant 0 : index
    %c1 = arith.constant 1 : index
    %c0_8 = arith.constant 0 : index
    %c0_9 = arith.constant 0 : index
    %10 = vector.load %arg1[%c0_7, %c1, %c0_8, %c0_9] : memref<1x9x32x4xf32, #tpu.memory_space<vmem>>, vector<1x1x32x4xf32>
    %11 = vector.shape_cast %10 : vector<1x1x32x4xf32> to vector<32x4xf32>
    %12 = vector.extract_strided_slice %0 {offsets = [0, 1], sizes = [32, 1], strides = [1, 1]} : vector<32x18xf32> to vector<32x1xf32>
    %13 = vector.broadcast %12 : vector<32x1xf32> to vector<32x4xf32>
    %14 = arith.mulf %11, %13 : vector<32x4xf32>
    %15 = arith.addf %6, %14 : vector<32x4xf32>
    %16 = vector.extract_strided_slice %0 {offsets = [0, 10], sizes = [32, 1], strides = [1, 1]} : vector<32x18xf32> to vector<32x1xf32>
    %17 = vector.broadcast %16 : vector<32x1xf32> to vector<32x4xf32>
    %18 = arith.mulf %11, %17 : vector<32x4xf32>
    %19 = arith.addf %9, %18 : vector<32x4xf32>
    %c0_10 = arith.constant 0 : index
    %c2 = arith.constant 2 : index
    %c0_11 = arith.constant 0 : index
    %c0_12 = arith.constant 0 : index
    %20 = vector.load %arg1[%c0_10, %c2, %c0_11, %c0_12] : memref<1x9x32x4xf32, #tpu.memory_space<vmem>>, vector<1x1x32x4xf32>
    %21 = vector.shape_cast %20 : vector<1x1x32x4xf32> to vector<32x4xf32>
    %22 = vector.extract_strided_slice %0 {offsets = [0, 2], sizes = [32, 1], strides = [1, 1]} : vector<32x18xf32> to vector<32x1xf32>
    %23 = vector.broadcast %22 : vector<32x1xf32> to vector<32x4xf32>
    %24 = arith.mulf %21, %23 : vector<32x4xf32>
    %25 = arith.addf %15, %24 : vector<32x4xf32>
    %26 = vector.extract_strided_slice %0 {offsets = [0, 11], sizes = [32, 1], strides = [1, 1]} : vector<32x18xf32> to vector<32x1xf32>
    %27 = vector.broadcast %26 : vector<32x1xf32> to vector<32x4xf32>
    %28 = arith.mulf %21, %27 : vector<32x4xf32>
    %29 = arith.addf %19, %28 : vector<32x4xf32>
    %c0_13 = arith.constant 0 : index
    %c3 = arith.constant 3 : index
    %c0_14 = arith.constant 0 : index
    %c0_15 = arith.constant 0 : index
    %30 = vector.load %arg1[%c0_13, %c3, %c0_14, %c0_15] : memref<1x9x32x4xf32, #tpu.memory_space<vmem>>, vector<1x1x32x4xf32>
    %31 = vector.shape_cast %30 : vector<1x1x32x4xf32> to vector<32x4xf32>
    %32 = vector.extract_strided_slice %0 {offsets = [0, 3], sizes = [32, 1], strides = [1, 1]} : vector<32x18xf32> to vector<32x1xf32>
    %33 = vector.broadcast %32 : vector<32x1xf32> to vector<32x4xf32>
    %34 = arith.mulf %31, %33 : vector<32x4xf32>
    %35 = arith.addf %25, %34 : vector<32x4xf32>
    %36 = vector.extract_strided_slice %0 {offsets = [0, 12], sizes = [32, 1], strides = [1, 1]} : vector<32x18xf32> to vector<32x1xf32>
    %37 = vector.broadcast %36 : vector<32x1xf32> to vector<32x4xf32>
    %38 = arith.mulf %31, %37 : vector<32x4xf32>
    %39 = arith.addf %29, %38 : vector<32x4xf32>
    %c0_16 = arith.constant 0 : index
    %c4 = arith.constant 4 : index
    %c0_17 = arith.constant 0 : index
    %c0_18 = arith.constant 0 : index
    %40 = vector.load %arg1[%c0_16, %c4, %c0_17, %c0_18] : memref<1x9x32x4xf32, #tpu.memory_space<vmem>>, vector<1x1x32x4xf32>
    %41 = vector.shape_cast %40 : vector<1x1x32x4xf32> to vector<32x4xf32>
    %42 = vector.extract_strided_slice %0 {offsets = [0, 4], sizes = [32, 1], strides = [1, 1]} : vector<32x18xf32> to vector<32x1xf32>
    %43 = vector.broadcast %42 : vector<32x1xf32> to vector<32x4xf32>
    %44 = arith.mulf %41, %43 : vector<32x4xf32>
    %45 = arith.addf %35, %44 : vector<32x4xf32>
    %46 = vector.extract_strided_slice %0 {offsets = [0, 13], sizes = [32, 1], strides = [1, 1]} : vector<32x18xf32> to vector<32x1xf32>
    %47 = vector.broadcast %46 : vector<32x1xf32> to vector<32x4xf32>
    %48 = arith.mulf %41, %47 : vector<32x4xf32>
    %49 = arith.addf %39, %48 : vector<32x4xf32>
    %c0_19 = arith.constant 0 : index
    %c5 = arith.constant 5 : index
    %c0_20 = arith.constant 0 : index
    %c0_21 = arith.constant 0 : index
    %50 = vector.load %arg1[%c0_19, %c5, %c0_20, %c0_21] : memref<1x9x32x4xf32, #tpu.memory_space<vmem>>, vector<1x1x32x4xf32>
    %51 = vector.shape_cast %50 : vector<1x1x32x4xf32> to vector<32x4xf32>
    %52 = vector.extract_strided_slice %0 {offsets = [0, 5], sizes = [32, 1], strides = [1, 1]} : vector<32x18xf32> to vector<32x1xf32>
    %53 = vector.broadcast %52 : vector<32x1xf32> to vector<32x4xf32>
    %54 = arith.mulf %51, %53 : vector<32x4xf32>
    %55 = arith.addf %45, %54 : vector<32x4xf32>
    %56 = vector.extract_strided_slice %0 {offsets = [0, 14], sizes = [32, 1], strides = [1, 1]} : vector<32x18xf32> to vector<32x1xf32>
    %57 = vector.broadcast %56 : vector<32x1xf32> to vector<32x4xf32>
    %58 = arith.mulf %51, %57 : vector<32x4xf32>
    %59 = arith.addf %49, %58 : vector<32x4xf32>
    %c0_22 = arith.constant 0 : index
    %c6 = arith.constant 6 : index
    %c0_23 = arith.constant 0 : index
    %c0_24 = arith.constant 0 : index
    %60 = vector.load %arg1[%c0_22, %c6, %c0_23, %c0_24] : memref<1x9x32x4xf32, #tpu.memory_space<vmem>>, vector<1x1x32x4xf32>
    %61 = vector.shape_cast %60 : vector<1x1x32x4xf32> to vector<32x4xf32>
    %62 = vector.extract_strided_slice %0 {offsets = [0, 6], sizes = [32, 1], strides = [1, 1]} : vector<32x18xf32> to vector<32x1xf32>
    %63 = vector.broadcast %62 : vector<32x1xf32> to vector<32x4xf32>
    %64 = arith.mulf %61, %63 : vector<32x4xf32>
    %65 = arith.addf %55, %64 : vector<32x4xf32>
    %66 = vector.extract_strided_slice %0 {offsets = [0, 15], sizes = [32, 1], strides = [1, 1]} : vector<32x18xf32> to vector<32x1xf32>
    %67 = vector.broadcast %66 : vector<32x1xf32> to vector<32x4xf32>
    %68 = arith.mulf %61, %67 : vector<32x4xf32>
    %69 = arith.addf %59, %68 : vector<32x4xf32>
    %c0_25 = arith.constant 0 : index
    %c7 = arith.constant 7 : index
    %c0_26 = arith.constant 0 : index
    %c0_27 = arith.constant 0 : index
    %70 = vector.load %arg1[%c0_25, %c7, %c0_26, %c0_27] : memref<1x9x32x4xf32, #tpu.memory_space<vmem>>, vector<1x1x32x4xf32>
    %71 = vector.shape_cast %70 : vector<1x1x32x4xf32> to vector<32x4xf32>
    %72 = vector.extract_strided_slice %0 {offsets = [0, 7], sizes = [32, 1], strides = [1, 1]} : vector<32x18xf32> to vector<32x1xf32>
    %73 = vector.broadcast %72 : vector<32x1xf32> to vector<32x4xf32>
    %74 = arith.mulf %71, %73 : vector<32x4xf32>
    %75 = arith.addf %65, %74 : vector<32x4xf32>
    %76 = vector.extract_strided_slice %0 {offsets = [0, 16], sizes = [32, 1], strides = [1, 1]} : vector<32x18xf32> to vector<32x1xf32>
    %77 = vector.broadcast %76 : vector<32x1xf32> to vector<32x4xf32>
    %78 = arith.mulf %71, %77 : vector<32x4xf32>
    %79 = arith.addf %69, %78 : vector<32x4xf32>
    %c0_28 = arith.constant 0 : index
    %c8 = arith.constant 8 : index
    %c0_29 = arith.constant 0 : index
    %c0_30 = arith.constant 0 : index
    %80 = vector.load %arg1[%c0_28, %c8, %c0_29, %c0_30] : memref<1x9x32x4xf32, #tpu.memory_space<vmem>>, vector<1x1x32x4xf32>
    %81 = vector.shape_cast %80 : vector<1x1x32x4xf32> to vector<32x4xf32>
    %82 = vector.extract_strided_slice %0 {offsets = [0, 8], sizes = [32, 1], strides = [1, 1]} : vector<32x18xf32> to vector<32x1xf32>
    %83 = vector.broadcast %82 : vector<32x1xf32> to vector<32x4xf32>
    %84 = arith.mulf %81, %83 : vector<32x4xf32>
    %85 = arith.addf %75, %84 : vector<32x4xf32>
    %86 = vector.extract_strided_slice %0 {offsets = [0, 17], sizes = [32, 1], strides = [1, 1]} : vector<32x18xf32> to vector<32x1xf32>
    %87 = vector.broadcast %86 : vector<32x1xf32> to vector<32x4xf32>
    %88 = arith.mulf %81, %87 : vector<32x4xf32>
    %89 = arith.addf %79, %88 : vector<32x4xf32>
    %90 = vector.extract_strided_slice %1 {offsets = [0, 0], sizes = [32, 1], strides = [1, 1]} : vector<32x2xf32> to vector<32x1xf32>
    %91 = vector.broadcast %90 : vector<32x1xf32> to vector<32x4xf32>
    %92 = arith.addf %85, %91 : vector<32x4xf32>
    %c0_31 = arith.constant 0 : index
    %c0_32 = arith.constant 0 : index
    %c0_33 = arith.constant 0 : index
    %93 = vector.load %arg4[%c0_31, %c0_32, %c0_33] : memref<1x32x4xf32, #tpu.memory_space<vmem>>, vector<1x32x4xf32>
    %94 = vector.shape_cast %93 : vector<1x32x4xf32> to vector<32x4xf32>
    %95 = vector.shape_cast %92 : vector<32x4xf32> to vector<1x32x4xf32>
    tpu.vector_store %arg4[%c0_31, %c0_32, %c0_33], %95 {strides = array<i32>} : memref<1x32x4xf32, #tpu.memory_space<vmem>>, vector<1x32x4xf32>,
    %96 = vector.extract_strided_slice %1 {offsets = [0, 1], sizes = [32, 1], strides = [1, 1]} : vector<32x2xf32> to vector<32x1xf32>
    %97 = vector.broadcast %96 : vector<32x1xf32> to vector<32x4xf32>
    %98 = arith.addf %89, %97 : vector<32x4xf32>
    %c0_34 = arith.constant 0 : index
    %c0_35 = arith.constant 0 : index
    %c0_36 = arith.constant 0 : index
    %99 = vector.load %arg5[%c0_34, %c0_35, %c0_36] : memref<1x32x4xf32, #tpu.memory_space<vmem>>, vector<1x32x4xf32>
    %100 = vector.shape_cast %99 : vector<1x32x4xf32> to vector<32x4xf32>
    %101 = vector.shape_cast %98 : vector<32x4xf32> to vector<1x32x4xf32>
    tpu.vector_store %arg5[%c0_34, %c0_35, %c0_36], %101 {strides = array<i32>} : memref<1x32x4xf32, #tpu.memory_space<vmem>>, vector<1x32x4xf32>,
    return
  }
  func.func @transform_0(%arg0: i32) -> (i32, i32, i32, i32) {
    %c0_i32 = arith.constant 0 : i32
    %c0_i32_0 = arith.constant 0 : i32
    %c0_i32_1 = arith.constant 0 : i32
    %c0_i32_2 = arith.constant 0 : i32
    return %arg0, %c0_i32, %c0_i32_0, %c0_i32_1 : i32, i32, i32, i32
  }
  func.func @transform_1(%arg0: i32) -> (i32, i32) {
    %c0_i32 = arith.constant 0 : i32
    %c0_i32_0 = arith.constant 0 : i32
    %c0_i32_1 = arith.constant 0 : i32
    return %c0_i32, %c0_i32_0 : i32, i32
  }
  func.func @transform_2(%arg0: i32) -> (i32, i32) {
    %c0_i32 = arith.constant 0 : i32
    %c0_i32_0 = arith.constant 0 : i32
    %c0_i32_1 = arith.constant 0 : i32
    return %c0_i32, %c0_i32_0 : i32, i32
  }
  func.func @transform_3(%arg0: i32) -> (i32, i32, i32) {
    %c0_i32 = arith.constant 0 : i32
    %c0_i32_0 = arith.constant 0 : i32
    %c0_i32_1 = arith.constant 0 : i32
    return %arg0, %c0_i32, %c0_i32_0 : i32, i32, i32
  }
  func.func @transform_4(%arg0: i32) -> (i32, i32, i32) {
    %c0_i32 = arith.constant 0 : i32
    %c0_i32_0 = arith.constant 0 : i32
    %c0_i32_1 = arith.constant 0 : i32
    return %arg0, %c0_i32, %c0_i32_0 : i32, i32, i32
  }
}

module attributes {stable_mosaic.version = 11 : i64} {
  func.func @_linear_kernel(%arg0: i32, %arg1: i32, %arg2: memref<8x64xbf16, #tpu.memory_space<vmem>>, %arg3: memref<64x128xbf16, #tpu.memory_space<vmem>>, %arg4: memref<1x128xf32, #tpu.memory_space<vmem>>, %arg5: memref<8x128xf32, #tpu.memory_space<vmem>>) attributes {dimension_semantics = [#tpu.dimension_semantics<parallel>, #tpu.dimension_semantics<parallel>], iteration_bounds = array<i64: 1, 1>, scalar_prefetch = 0 : i64, scratch_operands = 0 : i64, tpu.core_type = #tpu.core_type<tc>, window_params = [{transform_indices = @transform_0, window_bounds = array<i64: 8, 64>}, {transform_indices = @transform_1, window_bounds = array<i64: 64, 128>}, {transform_indices = @transform_2, window_bounds = array<i64: 1, 128>}, {transform_indices = @transform_3, window_bounds = array<i64: 8, 128>}]} {
    %c0 = arith.constant 0 : index
    %c0_0 = arith.constant 0 : index
    %0 = vector.load %arg2[%c0, %c0_0] : memref<8x64xbf16, #tpu.memory_space<vmem>>, vector<8x64xbf16>
    %c0_1 = arith.constant 0 : index
    %c0_2 = arith.constant 0 : index
    %1 = vector.load %arg3[%c0_1, %c0_2] : memref<64x128xbf16, #tpu.memory_space<vmem>>, vector<64x128xbf16>
    %cst = arith.constant dense<0.000000e+00> : vector<8x128xf32>
    %2 = tpu.matmul %0, %1, %cst {dimension_numbers = #tpu.dot_dimension_numbers<[1], [0], [0], [1], [0, 0, 1, 1], [], []>} : vector<8x64xbf16>, vector<64x128xbf16>, vector<8x128xf32> -> vector<8x128xf32>
    %c0_3 = arith.constant 0 : index
    %c0_4 = arith.constant 0 : index
    %3 = vector.load %arg4[%c0_3, %c0_4] : memref<1x128xf32, #tpu.memory_space<vmem>>, vector<1x128xf32>
    %4 = vector.broadcast %3 : vector<1x128xf32> to vector<8x128xf32>
    %5 = arith.addf %2, %4 : vector<8x128xf32>
    %c0_5 = arith.constant 0 : index
    %c0_6 = arith.constant 0 : index
    %6 = vector.load %arg5[%c0_5, %c0_6] : memref<8x128xf32, #tpu.memory_space<vmem>>, vector<8x128xf32>
    tpu.vector_store %arg5[%c0_5, %c0_6], %5 {strides = array<i32>} : memref<8x128xf32, #tpu.memory_space<vmem>>, vector<8x128xf32>,
    return
  }
  func.func @transform_0(%arg0: i32, %arg1: i32) -> (i32, i32) {
    %c0_i32 = arith.constant 0 : i32
    %c0_i32_0 = arith.constant 0 : i32
    return %arg0, %c0_i32 : i32, i32
  }
  func.func @transform_1(%arg0: i32, %arg1: i32) -> (i32, i32) {
    %c0_i32 = arith.constant 0 : i32
    %c0_i32_0 = arith.constant 0 : i32
    return %c0_i32, %arg1 : i32, i32
  }
  func.func @transform_2(%arg0: i32, %arg1: i32) -> (i32, i32) {
    %c0_i32 = arith.constant 0 : i32
    %c0_i32_0 = arith.constant 0 : i32
    return %c0_i32, %arg1 : i32, i32
  }
  func.func @transform_3(%arg0: i32, %arg1: i32) -> (i32, i32) {
    %c0_i32 = arith.constant 0 : i32
    return %arg0, %arg1 : i32, i32
  }
}

module attributes {stable_mosaic.version = 11 : i64} {
  func.func @_linear_kernel(%arg0: i32, %arg1: i32, %arg2: memref<8x32xbf16, #tpu.memory_space<vmem>>, %arg3: memref<32x128xbf16, #tpu.memory_space<vmem>>, %arg4: memref<1x128xf32, #tpu.memory_space<vmem>>, %arg5: memref<8x128xf32, #tpu.memory_space<vmem>>) attributes {dimension_semantics = [#tpu.dimension_semantics<parallel>, #tpu.dimension_semantics<parallel>], iteration_bounds = array<i64: 1, 1>, scalar_prefetch = 0 : i64, scratch_operands = 0 : i64, tpu.core_type = #tpu.core_type<tc>, window_params = [{transform_indices = @transform_0, window_bounds = array<i64: 8, 32>}, {transform_indices = @transform_1, window_bounds = array<i64: 32, 128>}, {transform_indices = @transform_2, window_bounds = array<i64: 1, 128>}, {transform_indices = @transform_3, window_bounds = array<i64: 8, 128>}]} {
    %c0 = arith.constant 0 : index
    %c0_0 = arith.constant 0 : index
    %0 = vector.load %arg2[%c0, %c0_0] : memref<8x32xbf16, #tpu.memory_space<vmem>>, vector<8x32xbf16>
    %c0_1 = arith.constant 0 : index
    %c0_2 = arith.constant 0 : index
    %1 = vector.load %arg3[%c0_1, %c0_2] : memref<32x128xbf16, #tpu.memory_space<vmem>>, vector<32x128xbf16>
    %cst = arith.constant dense<0.000000e+00> : vector<8x128xf32>
    %2 = tpu.matmul %0, %1, %cst {dimension_numbers = #tpu.dot_dimension_numbers<[1], [0], [0], [1], [0, 0, 1, 1], [], []>} : vector<8x32xbf16>, vector<32x128xbf16>, vector<8x128xf32> -> vector<8x128xf32>
    %c0_3 = arith.constant 0 : index
    %c0_4 = arith.constant 0 : index
    %3 = vector.load %arg4[%c0_3, %c0_4] : memref<1x128xf32, #tpu.memory_space<vmem>>, vector<1x128xf32>
    %4 = vector.broadcast %3 : vector<1x128xf32> to vector<8x128xf32>
    %5 = arith.addf %2, %4 : vector<8x128xf32>
    %c0_5 = arith.constant 0 : index
    %c0_6 = arith.constant 0 : index
    %6 = vector.load %arg5[%c0_5, %c0_6] : memref<8x128xf32, #tpu.memory_space<vmem>>, vector<8x128xf32>
    tpu.vector_store %arg5[%c0_5, %c0_6], %5 {strides = array<i32>} : memref<8x128xf32, #tpu.memory_space<vmem>>, vector<8x128xf32>,
    return
  }
  func.func @transform_0(%arg0: i32, %arg1: i32) -> (i32, i32) {
    %c0_i32 = arith.constant 0 : i32
    %c0_i32_0 = arith.constant 0 : i32
    return %arg0, %c0_i32 : i32, i32
  }
  func.func @transform_1(%arg0: i32, %arg1: i32) -> (i32, i32) {
    %c0_i32 = arith.constant 0 : i32
    %c0_i32_0 = arith.constant 0 : i32
    return %c0_i32, %arg1 : i32, i32
  }
  func.func @transform_2(%arg0: i32, %arg1: i32) -> (i32, i32) {
    %c0_i32 = arith.constant 0 : i32
    %c0_i32_0 = arith.constant 0 : i32
    return %c0_i32, %arg1 : i32, i32
  }
  func.func @transform_3(%arg0: i32, %arg1: i32) -> (i32, i32) {
    %c0_i32 = arith.constant 0 : i32
    return %arg0, %arg1 : i32, i32
  }
}

module attributes {stable_mosaic.version = 11 : i64} {
  func.func @_linear_kernel(%arg0: i32, %arg1: i32, %arg2: memref<16x64xf32, #tpu.memory_space<vmem>>, %arg3: memref<64x128xbf16, #tpu.memory_space<vmem>>, %arg4: memref<1x128xf32, #tpu.memory_space<vmem>>, %arg5: memref<1x64xf32, #tpu.memory_space<vmem>>, %arg6: memref<1x64xf32, #tpu.memory_space<vmem>>, %arg7: memref<16x128xbf16, #tpu.memory_space<vmem>>) attributes {dimension_semantics = [#tpu.dimension_semantics<parallel>, #tpu.dimension_semantics<parallel>], iteration_bounds = array<i64: 1, 1>, scalar_prefetch = 0 : i64, scratch_operands = 0 : i64, tpu.core_type = #tpu.core_type<tc>, window_params = [{transform_indices = @transform_0, window_bounds = array<i64: 16, 64>}, {transform_indices = @transform_1, window_bounds = array<i64: 64, 128>}, {transform_indices = @transform_2, window_bounds = array<i64: 1, 128>}, {pipeline_mode = #tpu.pipeline_mode<synchronous>, transform_indices = @transform_3, window_bounds = array<i64: 1, 64>}, {pipeline_mode = #tpu.pipeline_mode<synchronous>, transform_indices = @transform_4, window_bounds = array<i64: 1, 64>}, {transform_indices = @transform_5, window_bounds = array<i64: 16, 128>}]} {
    %c0 = arith.constant 0 : index
    %c0_0 = arith.constant 0 : index
    %0 = vector.load %arg2[%c0, %c0_0] : memref<16x64xf32, #tpu.memory_space<vmem>>, vector<16x64xf32>
    %cst = arith.constant dense<0.000000e+00> : vector<16xf32>
    %1 = vector.multi_reduction <add>, %0, %cst [1] : vector<16x64xf32> to vector<16xf32>
    %2 = vector.shape_cast %1 : vector<16xf32> to vector<16x1xf32>
    %cst_1 = arith.constant 6.400000e+01 : f32
    %3 = vector.broadcast %cst_1 : f32 to vector<16x1xf32>
    %4 = arith.divf %2, %3 : vector<16x1xf32>
    %5 = vector.broadcast %4 : vector<16x1xf32> to vector<16x64xf32>
    %6 = arith.subf %0, %5 : vector<16x64xf32>
    %7 = arith.mulf %6, %6 : vector<16x64xf32>
    %cst_2 = arith.constant dense<0.000000e+00> : vector<16xf32>
    %8 = vector.multi_reduction <add>, %7, %cst_2 [1] : vector<16x64xf32> to vector<16xf32>
    %9 = vector.shape_cast %8 : vector<16xf32> to vector<16x1xf32>
    %cst_3 = arith.constant 6.400000e+01 : f32
    %10 = vector.broadcast %cst_3 : f32 to vector<16x1xf32>
    %11 = arith.divf %9, %10 : vector<16x1xf32>
    %12 = vector.broadcast %4 : vector<16x1xf32> to vector<16x64xf32>
    %13 = arith.subf %0, %12 : vector<16x64xf32>
    %cst_4 = arith.constant 9.99999974E-6 : f32
    %14 = vector.broadcast %cst_4 : f32 to vector<16x1xf32>
    %15 = arith.addf %11, %14 : vector<16x1xf32>
    %16 = math.rsqrt %15 : vector<16x1xf32>
    %17 = vector.broadcast %16 : vector<16x1xf32> to vector<16x64xf32>
    %18 = arith.mulf %13, %17 : vector<16x64xf32>
    %c0_5 = arith.constant 0 : index
    %c0_6 = arith.constant 0 : index
    %19 = vector.load %arg5[%c0_5, %c0_6] : memref<1x64xf32, #tpu.memory_space<vmem>>, vector<1x64xf32>
    %20 = vector.broadcast %19 : vector<1x64xf32> to vector<16x64xf32>
    %21 = arith.mulf %18, %20 : vector<16x64xf32>
    %c0_7 = arith.constant 0 : index
    %c0_8 = arith.constant 0 : index
    %22 = vector.load %arg6[%c0_7, %c0_8] : memref<1x64xf32, #tpu.memory_space<vmem>>, vector<1x64xf32>
    %23 = vector.broadcast %22 : vector<1x64xf32> to vector<16x64xf32>
    %24 = arith.addf %21, %23 : vector<16x64xf32>
    %25 = arith.truncf %24 : vector<16x64xf32> to vector<16x64xbf16>
    %c0_9 = arith.constant 0 : index
    %c0_10 = arith.constant 0 : index
    %26 = vector.load %arg3[%c0_9, %c0_10] : memref<64x128xbf16, #tpu.memory_space<vmem>>, vector<64x128xbf16>
    %cst_11 = arith.constant dense<0.000000e+00> : vector<16x128xf32>
    %27 = tpu.matmul %25, %26, %cst_11 {dimension_numbers = #tpu.dot_dimension_numbers<[1], [0], [0], [1], [0, 0, 1, 1], [], []>} : vector<16x64xbf16>, vector<64x128xbf16>, vector<16x128xf32> -> vector<16x128xf32>
    %c0_12 = arith.constant 0 : index
    %c0_13 = arith.constant 0 : index
    %28 = vector.load %arg4[%c0_12, %c0_13] : memref<1x128xf32, #tpu.memory_space<vmem>>, vector<1x128xf32>
    %29 = vector.broadcast %28 : vector<1x128xf32> to vector<16x128xf32>
    %30 = arith.addf %27, %29 : vector<16x128xf32>
    %31 = arith.truncf %30 : vector<16x128xf32> to vector<16x128xbf16>
    %c0_14 = arith.constant 0 : index
    %c0_15 = arith.constant 0 : index
    %32 = vector.load %arg7[%c0_14, %c0_15] : memref<16x128xbf16, #tpu.memory_space<vmem>>, vector<16x128xbf16>
    tpu.vector_store %arg7[%c0_14, %c0_15], %31 {strides = array<i32>} : memref<16x128xbf16, #tpu.memory_space<vmem>>, vector<16x128xbf16>,
    return
  }
  func.func @transform_0(%arg0: i32, %arg1: i32) -> (i32, i32) {
    %c0_i32 = arith.constant 0 : i32
    %c0_i32_0 = arith.constant 0 : i32
    return %arg0, %c0_i32 : i32, i32
  }
  func.func @transform_1(%arg0: i32, %arg1: i32) -> (i32, i32) {
    %c0_i32 = arith.constant 0 : i32
    %c0_i32_0 = arith.constant 0 : i32
    return %c0_i32, %arg1 : i32, i32
  }
  func.func @transform_2(%arg0: i32, %arg1: i32) -> (i32, i32) {
    %c0_i32 = arith.constant 0 : i32
    %c0_i32_0 = arith.constant 0 : i32
    return %c0_i32, %arg1 : i32, i32
  }
  func.func @transform_3(%arg0: i32, %arg1: i32) -> (i32, i32) {
    %c0_i32 = arith.constant 0 : i32
    %c0_i32_0 = arith.constant 0 : i32
    %c0_i32_1 = arith.constant 0 : i32
    return %c0_i32, %c0_i32_0 : i32, i32
  }
  func.func @transform_4(%arg0: i32, %arg1: i32) -> (i32, i32) {
    %c0_i32 = arith.constant 0 : i32
    %c0_i32_0 = arith.constant 0 : i32
    %c0_i32_1 = arith.constant 0 : i32
    return %c0_i32, %c0_i32_0 : i32, i32
  }
  func.func @transform_5(%arg0: i32, %arg1: i32) -> (i32, i32) {
    %c0_i32 = arith.constant 0 : i32
    return %arg0, %arg1 : i32, i32
  }
}

module attributes {stable_mosaic.version = 11 : i64} {
  func.func @_attention_kernel(%arg0: i32, %arg1: memref<1x5x96xbf16, #tpu.memory_space<vmem>>, %arg2: memref<1x5x32xbf16, #tpu.memory_space<vmem>>) attributes {dimension_semantics = [#tpu.dimension_semantics<parallel>], iteration_bounds = array<i64: 2>, scalar_prefetch = 0 : i64, scratch_operands = 0 : i64, tpu.core_type = #tpu.core_type<tc>, window_params = [{transform_indices = @transform_0, window_bounds = array<i64: 1, 5, 96>}, {transform_indices = @transform_1, window_bounds = array<i64: 1, 5, 32>}]} {
    %c0 = arith.constant 0 : index
    %c0_0 = arith.constant 0 : index
    %c0_1 = arith.constant 0 : index
    %0 = vector.load %arg1[%c0, %c0_0, %c0_1] : memref<1x5x96xbf16, #tpu.memory_space<vmem>>, vector<1x5x96xbf16>
    %1 = vector.shape_cast %0 : vector<1x5x96xbf16> to vector<5x96xbf16>
    %2 = vector.extract_strided_slice %1 {offsets = [0, 0], sizes = [5, 16], strides = [1, 1]} : vector<5x96xbf16> to vector<5x16xbf16>
    %3 = vector.extract_strided_slice %1 {offsets = [0, 32], sizes = [5, 16], strides = [1, 1]} : vector<5x96xbf16> to vector<5x16xbf16>
    %4 = vector.extract_strided_slice %1 {offsets = [0, 64], sizes = [5, 16], strides = [1, 1]} : vector<5x96xbf16> to vector<5x16xbf16>
    %cst = arith.constant dense<0.000000e+00> : vector<5x5xf32>
    %5 = tpu.matmul %2, %3, %cst {dimension_numbers = #tpu.dot_dimension_numbers<[1], [1], [0], [0], [0, 0, 1, 0], [], []>} : vector<5x16xbf16>, vector<5x16xbf16>, vector<5x5xf32> -> vector<5x5xf32>
    %cst_2 = arith.constant dense<0xFF800000> : vector<5xf32>
    %6 = vector.multi_reduction <maximumf>, %5, %cst_2 [1] : vector<5x5xf32> to vector<5xf32>
    %7 = vector.shape_cast %6 : vector<5xf32> to vector<5x1xf32>
    %8 = vector.broadcast %7 : vector<5x1xf32> to vector<5x5xf32>
    %9 = arith.subf %5, %8 : vector<5x5xf32>
    %10 = math.exp %9 : vector<5x5xf32>
    %cst_3 = arith.constant dense<0.000000e+00> : vector<5xf32>
    %11 = vector.multi_reduction <add>, %10, %cst_3 [1] : vector<5x5xf32> to vector<5xf32>
    %12 = vector.shape_cast %11 : vector<5xf32> to vector<5x1xf32>
    %13 = tpu.reciprocal %12 {approx = true} : vector<5x1xf32> -> vector<5x1xf32>
    %14 = vector.broadcast %13 : vector<5x1xf32> to vector<5x5xf32>
    %15 = arith.mulf %10, %14 : vector<5x5xf32>
    %16 = arith.truncf %15 : vector<5x5xf32> to vector<5x5xbf16>
    %cst_4 = arith.constant dense<0.000000e+00> : vector<5x16xf32>
    %17 = tpu.matmul %16, %4, %cst_4 {dimension_numbers = #tpu.dot_dimension_numbers<[1], [0], [0], [1], [0, 0, 1, 1], [], []>} : vector<5x5xbf16>, vector<5x16xbf16>, vector<5x16xf32> -> vector<5x16xf32>
    %18 = vector.extract_strided_slice %1 {offsets = [0, 16], sizes = [5, 16], strides = [1, 1]} : vector<5x96xbf16> to vector<5x16xbf16>
    %19 = vector.extract_strided_slice %1 {offsets = [0, 48], sizes = [5, 16], strides = [1, 1]} : vector<5x96xbf16> to vector<5x16xbf16>
    %20 = vector.extract_strided_slice %1 {offsets = [0, 80], sizes = [5, 16], strides = [1, 1]} : vector<5x96xbf16> to vector<5x16xbf16>
    %cst_5 = arith.constant dense<0.000000e+00> : vector<5x5xf32>
    %21 = tpu.matmul %18, %19, %cst_5 {dimension_numbers = #tpu.dot_dimension_numbers<[1], [1], [0], [0], [0, 0, 1, 0], [], []>} : vector<5x16xbf16>, vector<5x16xbf16>, vector<5x5xf32> -> vector<5x5xf32>
    %cst_6 = arith.constant dense<0xFF800000> : vector<5xf32>
    %22 = vector.multi_reduction <maximumf>, %21, %cst_6 [1] : vector<5x5xf32> to vector<5xf32>
    %23 = vector.shape_cast %22 : vector<5xf32> to vector<5x1xf32>
    %24 = vector.broadcast %23 : vector<5x1xf32> to vector<5x5xf32>
    %25 = arith.subf %21, %24 : vector<5x5xf32>
    %26 = math.exp %25 : vector<5x5xf32>
    %cst_7 = arith.constant dense<0.000000e+00> : vector<5xf32>
    %27 = vector.multi_reduction <add>, %26, %cst_7 [1] : vector<5x5xf32> to vector<5xf32>
    %28 = vector.shape_cast %27 : vector<5xf32> to vector<5x1xf32>
    %29 = tpu.reciprocal %28 {approx = true} : vector<5x1xf32> -> vector<5x1xf32>
    %30 = vector.broadcast %29 : vector<5x1xf32> to vector<5x5xf32>
    %31 = arith.mulf %26, %30 : vector<5x5xf32>
    %32 = arith.truncf %31 : vector<5x5xf32> to vector<5x5xbf16>
    %cst_8 = arith.constant dense<0.000000e+00> : vector<5x16xf32>
    %33 = tpu.matmul %32, %20, %cst_8 {dimension_numbers = #tpu.dot_dimension_numbers<[1], [0], [0], [1], [0, 0, 1, 1], [], []>} : vector<5x5xbf16>, vector<5x16xbf16>, vector<5x16xf32> -> vector<5x16xf32>
    %34 = tpu.concatenate %17, %33 in 1 : vector<5x16xf32>, vector<5x16xf32> -> vector<5x32xf32>
    %35 = arith.truncf %34 : vector<5x32xf32> to vector<5x32xbf16>
    %c0_9 = arith.constant 0 : index
    %c0_10 = arith.constant 0 : index
    %c0_11 = arith.constant 0 : index
    %36 = vector.load %arg2[%c0_9, %c0_10, %c0_11] : memref<1x5x32xbf16, #tpu.memory_space<vmem>>, vector<1x5x32xbf16>
    %37 = vector.shape_cast %36 : vector<1x5x32xbf16> to vector<5x32xbf16>
    %38 = vector.shape_cast %35 : vector<5x32xbf16> to vector<1x5x32xbf16>
    tpu.vector_store %arg2[%c0_9, %c0_10, %c0_11], %38 {strides = array<i32>} : memref<1x5x32xbf16, #tpu.memory_space<vmem>>, vector<1x5x32xbf16>,
    return
  }
  func.func @transform_0(%arg0: i32) -> (i32, i32, i32) {
    %c0_i32 = arith.constant 0 : i32
    %c0_i32_0 = arith.constant 0 : i32
    %c0_i32_1 = arith.constant 0 : i32
    return %arg0, %c0_i32, %c0_i32_0 : i32, i32, i32
  }
  func.func @transform_1(%arg0: i32) -> (i32, i32, i32) {
    %c0_i32 = arith.constant 0 : i32
    %c0_i32_0 = arith.constant 0 : i32
    %c0_i32_1 = arith.constant 0 : i32
    return %arg0, %c0_i32, %c0_i32_0 : i32, i32, i32
  }
}

module attributes {stable_mosaic.version = 11 : i64} {
  func.func @_linear_kernel(%arg0: i32, %arg1: i32, %arg2: memref<16x32xbf16, #tpu.memory_space<vmem>>, %arg3: memref<32x128xbf16, #tpu.memory_space<vmem>>, %arg4: memref<1x128xf32, #tpu.memory_space<vmem>>, %arg5: memref<16x128xf32, #tpu.memory_space<vmem>>, %arg6: memref<16x128xf32, #tpu.memory_space<vmem>>) attributes {dimension_semantics = [#tpu.dimension_semantics<parallel>, #tpu.dimension_semantics<parallel>], iteration_bounds = array<i64: 1, 1>, scalar_prefetch = 0 : i64, scratch_operands = 0 : i64, tpu.core_type = #tpu.core_type<tc>, window_params = [{transform_indices = @transform_0, window_bounds = array<i64: 16, 32>}, {transform_indices = @transform_1, window_bounds = array<i64: 32, 128>}, {transform_indices = @transform_2, window_bounds = array<i64: 1, 128>}, {transform_indices = @transform_3, window_bounds = array<i64: 16, 128>}, {transform_indices = @transform_4, window_bounds = array<i64: 16, 128>}]} {
    %c0 = arith.constant 0 : index
    %c0_0 = arith.constant 0 : index
    %0 = vector.load %arg2[%c0, %c0_0] : memref<16x32xbf16, #tpu.memory_space<vmem>>, vector<16x32xbf16>
    %c0_1 = arith.constant 0 : index
    %c0_2 = arith.constant 0 : index
    %1 = vector.load %arg3[%c0_1, %c0_2] : memref<32x128xbf16, #tpu.memory_space<vmem>>, vector<32x128xbf16>
    %cst = arith.constant dense<0.000000e+00> : vector<16x128xf32>
    %2 = tpu.matmul %0, %1, %cst {dimension_numbers = #tpu.dot_dimension_numbers<[1], [0], [0], [1], [0, 0, 1, 1], [], []>} : vector<16x32xbf16>, vector<32x128xbf16>, vector<16x128xf32> -> vector<16x128xf32>
    %c0_3 = arith.constant 0 : index
    %c0_4 = arith.constant 0 : index
    %3 = vector.load %arg4[%c0_3, %c0_4] : memref<1x128xf32, #tpu.memory_space<vmem>>, vector<1x128xf32>
    %4 = vector.broadcast %3 : vector<1x128xf32> to vector<16x128xf32>
    %5 = arith.addf %2, %4 : vector<16x128xf32>
    %c0_5 = arith.constant 0 : index
    %c0_6 = arith.constant 0 : index
    %6 = vector.load %arg5[%c0_5, %c0_6] : memref<16x128xf32, #tpu.memory_space<vmem>>, vector<16x128xf32>
    %7 = arith.addf %5, %6 : vector<16x128xf32>
    %c0_7 = arith.constant 0 : index
    %c0_8 = arith.constant 0 : index
    %8 = vector.load %arg6[%c0_7, %c0_8] : memref<16x128xf32, #tpu.memory_space<vmem>>, vector<16x128xf32>
    tpu.vector_store %arg6[%c0_7, %c0_8], %7 {strides = array<i32>} : memref<16x128xf32, #tpu.memory_space<vmem>>, vector<16x128xf32>,
    return
  }
  func.func @transform_0(%arg0: i32, %arg1: i32) -> (i32, i32) {
    %c0_i32 = arith.constant 0 : i32
    %c0_i32_0 = arith.constant 0 : i32
    return %arg0, %c0_i32 : i32, i32
  }
  func.func @transform_1(%arg0: i32, %arg1: i32) -> (i32, i32) {
    %c0_i32 = arith.constant 0 : i32
    %c0_i32_0 = arith.constant 0 : i32
    return %c0_i32, %arg1 : i32, i32
  }
  func.func @transform_2(%arg0: i32, %arg1: i32) -> (i32, i32) {
    %c0_i32 = arith.constant 0 : i32
    %c0_i32_0 = arith.constant 0 : i32
    return %c0_i32, %arg1 : i32, i32
  }
  func.func @transform_3(%arg0: i32, %arg1: i32) -> (i32, i32) {
    %c0_i32 = arith.constant 0 : i32
    return %arg0, %arg1 : i32, i32
  }
  func.func @transform_4(%arg0: i32, %arg1: i32) -> (i32, i32) {
    %c0_i32 = arith.constant 0 : i32
    return %arg0, %arg1 : i32, i32
  }
}

module attributes {stable_mosaic.version = 11 : i64} {
  func.func @_linear_kernel(%arg0: i32, %arg1: i32, %arg2: memref<16x64xf32, #tpu.memory_space<vmem>>, %arg3: memref<64x128xbf16, #tpu.memory_space<vmem>>, %arg4: memref<1x128xf32, #tpu.memory_space<vmem>>, %arg5: memref<1x64xf32, #tpu.memory_space<vmem>>, %arg6: memref<1x64xf32, #tpu.memory_space<vmem>>, %arg7: memref<16x128xbf16, #tpu.memory_space<vmem>>) attributes {dimension_semantics = [#tpu.dimension_semantics<parallel>, #tpu.dimension_semantics<parallel>], iteration_bounds = array<i64: 1, 1>, scalar_prefetch = 0 : i64, scratch_operands = 0 : i64, tpu.core_type = #tpu.core_type<tc>, window_params = [{transform_indices = @transform_0, window_bounds = array<i64: 16, 64>}, {transform_indices = @transform_1, window_bounds = array<i64: 64, 128>}, {transform_indices = @transform_2, window_bounds = array<i64: 1, 128>}, {pipeline_mode = #tpu.pipeline_mode<synchronous>, transform_indices = @transform_3, window_bounds = array<i64: 1, 64>}, {pipeline_mode = #tpu.pipeline_mode<synchronous>, transform_indices = @transform_4, window_bounds = array<i64: 1, 64>}, {transform_indices = @transform_5, window_bounds = array<i64: 16, 128>}]} {
    %c0 = arith.constant 0 : index
    %c0_0 = arith.constant 0 : index
    %0 = vector.load %arg2[%c0, %c0_0] : memref<16x64xf32, #tpu.memory_space<vmem>>, vector<16x64xf32>
    %cst = arith.constant dense<0.000000e+00> : vector<16xf32>
    %1 = vector.multi_reduction <add>, %0, %cst [1] : vector<16x64xf32> to vector<16xf32>
    %2 = vector.shape_cast %1 : vector<16xf32> to vector<16x1xf32>
    %cst_1 = arith.constant 6.400000e+01 : f32
    %3 = vector.broadcast %cst_1 : f32 to vector<16x1xf32>
    %4 = arith.divf %2, %3 : vector<16x1xf32>
    %5 = vector.broadcast %4 : vector<16x1xf32> to vector<16x64xf32>
    %6 = arith.subf %0, %5 : vector<16x64xf32>
    %7 = arith.mulf %6, %6 : vector<16x64xf32>
    %cst_2 = arith.constant dense<0.000000e+00> : vector<16xf32>
    %8 = vector.multi_reduction <add>, %7, %cst_2 [1] : vector<16x64xf32> to vector<16xf32>
    %9 = vector.shape_cast %8 : vector<16xf32> to vector<16x1xf32>
    %cst_3 = arith.constant 6.400000e+01 : f32
    %10 = vector.broadcast %cst_3 : f32 to vector<16x1xf32>
    %11 = arith.divf %9, %10 : vector<16x1xf32>
    %12 = vector.broadcast %4 : vector<16x1xf32> to vector<16x64xf32>
    %13 = arith.subf %0, %12 : vector<16x64xf32>
    %cst_4 = arith.constant 9.99999974E-6 : f32
    %14 = vector.broadcast %cst_4 : f32 to vector<16x1xf32>
    %15 = arith.addf %11, %14 : vector<16x1xf32>
    %16 = math.rsqrt %15 : vector<16x1xf32>
    %17 = vector.broadcast %16 : vector<16x1xf32> to vector<16x64xf32>
    %18 = arith.mulf %13, %17 : vector<16x64xf32>
    %c0_5 = arith.constant 0 : index
    %c0_6 = arith.constant 0 : index
    %19 = vector.load %arg5[%c0_5, %c0_6] : memref<1x64xf32, #tpu.memory_space<vmem>>, vector<1x64xf32>
    %20 = vector.broadcast %19 : vector<1x64xf32> to vector<16x64xf32>
    %21 = arith.mulf %18, %20 : vector<16x64xf32>
    %c0_7 = arith.constant 0 : index
    %c0_8 = arith.constant 0 : index
    %22 = vector.load %arg6[%c0_7, %c0_8] : memref<1x64xf32, #tpu.memory_space<vmem>>, vector<1x64xf32>
    %23 = vector.broadcast %22 : vector<1x64xf32> to vector<16x64xf32>
    %24 = arith.addf %21, %23 : vector<16x64xf32>
    %25 = arith.truncf %24 : vector<16x64xf32> to vector<16x64xbf16>
    %c0_9 = arith.constant 0 : index
    %c0_10 = arith.constant 0 : index
    %26 = vector.load %arg3[%c0_9, %c0_10] : memref<64x128xbf16, #tpu.memory_space<vmem>>, vector<64x128xbf16>
    %cst_11 = arith.constant dense<0.000000e+00> : vector<16x128xf32>
    %27 = tpu.matmul %25, %26, %cst_11 {dimension_numbers = #tpu.dot_dimension_numbers<[1], [0], [0], [1], [0, 0, 1, 1], [], []>} : vector<16x64xbf16>, vector<64x128xbf16>, vector<16x128xf32> -> vector<16x128xf32>
    %c0_12 = arith.constant 0 : index
    %c0_13 = arith.constant 0 : index
    %28 = vector.load %arg4[%c0_12, %c0_13] : memref<1x128xf32, #tpu.memory_space<vmem>>, vector<1x128xf32>
    %29 = vector.broadcast %28 : vector<1x128xf32> to vector<16x128xf32>
    %30 = arith.addf %27, %29 : vector<16x128xf32>
    %31 = arith.mulf %30, %30 : vector<16x128xf32>
    %32 = arith.mulf %30, %31 : vector<16x128xf32>
    %cst_14 = arith.constant 4.471500e-02 : f32
    %33 = vector.broadcast %cst_14 : f32 to vector<16x128xf32>
    %34 = arith.mulf %33, %32 : vector<16x128xf32>
    %35 = arith.addf %30, %34 : vector<16x128xf32>
    %cst_15 = arith.constant 0.797884583 : f32
    %36 = vector.broadcast %cst_15 : f32 to vector<16x128xf32>
    %37 = arith.mulf %36, %35 : vector<16x128xf32>
    %38 = math.tanh %37 : vector<16x128xf32>
    %cst_16 = arith.constant 1.000000e+00 : f32
    %39 = vector.broadcast %cst_16 : f32 to vector<16x128xf32>
    %40 = arith.addf %39, %38 : vector<16x128xf32>
    %cst_17 = arith.constant 5.000000e-01 : f32
    %41 = vector.broadcast %cst_17 : f32 to vector<16x128xf32>
    %42 = arith.mulf %41, %40 : vector<16x128xf32>
    %43 = arith.mulf %30, %42 : vector<16x128xf32>
    %44 = arith.truncf %43 : vector<16x128xf32> to vector<16x128xbf16>
    %c0_18 = arith.constant 0 : index
    %c0_19 = arith.constant 0 : index
    %45 = vector.load %arg7[%c0_18, %c0_19] : memref<16x128xbf16, #tpu.memory_space<vmem>>, vector<16x128xbf16>
    tpu.vector_store %arg7[%c0_18, %c0_19], %44 {strides = array<i32>} : memref<16x128xbf16, #tpu.memory_space<vmem>>, vector<16x128xbf16>,
    return
  }
  func.func @transform_0(%arg0: i32, %arg1: i32) -> (i32, i32) {
    %c0_i32 = arith.constant 0 : i32
    %c0_i32_0 = arith.constant 0 : i32
    return %arg0, %c0_i32 : i32, i32
  }
  func.func @transform_1(%arg0: i32, %arg1: i32) -> (i32, i32) {
    %c0_i32 = arith.constant 0 : i32
    %c0_i32_0 = arith.constant 0 : i32
    return %c0_i32, %arg1 : i32, i32
  }
  func.func @transform_2(%arg0: i32, %arg1: i32) -> (i32, i32) {
    %c0_i32 = arith.constant 0 : i32
    %c0_i32_0 = arith.constant 0 : i32
    return %c0_i32, %arg1 : i32, i32
  }
  func.func @transform_3(%arg0: i32, %arg1: i32) -> (i32, i32) {
    %c0_i32 = arith.constant 0 : i32
    %c0_i32_0 = arith.constant 0 : i32
    %c0_i32_1 = arith.constant 0 : i32
    return %c0_i32, %c0_i32_0 : i32, i32
  }
  func.func @transform_4(%arg0: i32, %arg1: i32) -> (i32, i32) {
    %c0_i32 = arith.constant 0 : i32
    %c0_i32_0 = arith.constant 0 : i32
    %c0_i32_1 = arith.constant 0 : i32
    return %c0_i32, %c0_i32_0 : i32, i32
  }
  func.func @transform_5(%arg0: i32, %arg1: i32) -> (i32, i32) {
    %c0_i32 = arith.constant 0 : i32
    return %arg0, %arg1 : i32, i32
  }
}

module attributes {stable_mosaic.version = 11 : i64} {
  func.func @_linear_kernel(%arg0: i32, %arg1: i32, %arg2: memref<16x128xbf16, #tpu.memory_space<vmem>>, %arg3: memref<128x128xbf16, #tpu.memory_space<vmem>>, %arg4: memref<1x128xf32, #tpu.memory_space<vmem>>, %arg5: memref<16x128xf32, #tpu.memory_space<vmem>>, %arg6: memref<16x128xf32, #tpu.memory_space<vmem>>) attributes {dimension_semantics = [#tpu.dimension_semantics<parallel>, #tpu.dimension_semantics<parallel>], iteration_bounds = array<i64: 1, 1>, scalar_prefetch = 0 : i64, scratch_operands = 0 : i64, tpu.core_type = #tpu.core_type<tc>, window_params = [{transform_indices = @transform_0, window_bounds = array<i64: 16, 128>}, {transform_indices = @transform_1, window_bounds = array<i64: 128, 128>}, {transform_indices = @transform_2, window_bounds = array<i64: 1, 128>}, {transform_indices = @transform_3, window_bounds = array<i64: 16, 128>}, {transform_indices = @transform_4, window_bounds = array<i64: 16, 128>}]} {
    %c0 = arith.constant 0 : index
    %c0_0 = arith.constant 0 : index
    %0 = vector.load %arg2[%c0, %c0_0] : memref<16x128xbf16, #tpu.memory_space<vmem>>, vector<16x128xbf16>
    %c0_1 = arith.constant 0 : index
    %c0_2 = arith.constant 0 : index
    %1 = vector.load %arg3[%c0_1, %c0_2] : memref<128x128xbf16, #tpu.memory_space<vmem>>, vector<128x128xbf16>
    %cst = arith.constant dense<0.000000e+00> : vector<16x128xf32>
    %2 = tpu.matmul %0, %1, %cst {dimension_numbers = #tpu.dot_dimension_numbers<[1], [0], [0], [1], [0, 0, 1, 1], [], []>} : vector<16x128xbf16>, vector<128x128xbf16>, vector<16x128xf32> -> vector<16x128xf32>
    %c0_3 = arith.constant 0 : index
    %c0_4 = arith.constant 0 : index
    %3 = vector.load %arg4[%c0_3, %c0_4] : memref<1x128xf32, #tpu.memory_space<vmem>>, vector<1x128xf32>
    %4 = vector.broadcast %3 : vector<1x128xf32> to vector<16x128xf32>
    %5 = arith.addf %2, %4 : vector<16x128xf32>
    %c0_5 = arith.constant 0 : index
    %c0_6 = arith.constant 0 : index
    %6 = vector.load %arg5[%c0_5, %c0_6] : memref<16x128xf32, #tpu.memory_space<vmem>>, vector<16x128xf32>
    %7 = arith.addf %5, %6 : vector<16x128xf32>
    %c0_7 = arith.constant 0 : index
    %c0_8 = arith.constant 0 : index
    %8 = vector.load %arg6[%c0_7, %c0_8] : memref<16x128xf32, #tpu.memory_space<vmem>>, vector<16x128xf32>
    tpu.vector_store %arg6[%c0_7, %c0_8], %7 {strides = array<i32>} : memref<16x128xf32, #tpu.memory_space<vmem>>, vector<16x128xf32>,
    return
  }
  func.func @transform_0(%arg0: i32, %arg1: i32) -> (i32, i32) {
    %c0_i32 = arith.constant 0 : i32
    %c0_i32_0 = arith.constant 0 : i32
    return %arg0, %c0_i32 : i32, i32
  }
  func.func @transform_1(%arg0: i32, %arg1: i32) -> (i32, i32) {
    %c0_i32 = arith.constant 0 : i32
    %c0_i32_0 = arith.constant 0 : i32
    return %c0_i32, %arg1 : i32, i32
  }
  func.func @transform_2(%arg0: i32, %arg1: i32) -> (i32, i32) {
    %c0_i32 = arith.constant 0 : i32
    %c0_i32_0 = arith.constant 0 : i32
    return %c0_i32, %arg1 : i32, i32
  }
  func.func @transform_3(%arg0: i32, %arg1: i32) -> (i32, i32) {
    %c0_i32 = arith.constant 0 : i32
    return %arg0, %arg1 : i32, i32
  }
  func.func @transform_4(%arg0: i32, %arg1: i32) -> (i32, i32) {
    %c0_i32 = arith.constant 0 : i32
    return %arg0, %arg1 : i32, i32
  }
}

module attributes {stable_mosaic.version = 11 : i64} {
  func.func @_linear_kernel(%arg0: i32, %arg1: i32, %arg2: memref<8x64xf32, #tpu.memory_space<vmem>>, %arg3: memref<64x128xf32, #tpu.memory_space<vmem>>, %arg4: memref<1x128xf32, #tpu.memory_space<vmem>>, %arg5: memref<1x64xf32, #tpu.memory_space<vmem>>, %arg6: memref<1x64xf32, #tpu.memory_space<vmem>>, %arg7: memref<8x128xf32, #tpu.memory_space<vmem>>) attributes {dimension_semantics = [#tpu.dimension_semantics<parallel>, #tpu.dimension_semantics<parallel>], iteration_bounds = array<i64: 1, 1>, scalar_prefetch = 0 : i64, scratch_operands = 0 : i64, tpu.core_type = #tpu.core_type<tc>, window_params = [{transform_indices = @transform_0, window_bounds = array<i64: 8, 64>}, {transform_indices = @transform_1, window_bounds = array<i64: 64, 128>}, {transform_indices = @transform_2, window_bounds = array<i64: 1, 128>}, {pipeline_mode = #tpu.pipeline_mode<synchronous>, transform_indices = @transform_3, window_bounds = array<i64: 1, 64>}, {pipeline_mode = #tpu.pipeline_mode<synchronous>, transform_indices = @transform_4, window_bounds = array<i64: 1, 64>}, {transform_indices = @transform_5, window_bounds = array<i64: 8, 128>}]} {
    %c0 = arith.constant 0 : index
    %c0_0 = arith.constant 0 : index
    %0 = vector.load %arg2[%c0, %c0_0] : memref<8x64xf32, #tpu.memory_space<vmem>>, vector<8x64xf32>
    %cst = arith.constant dense<0.000000e+00> : vector<8xf32>
    %1 = vector.multi_reduction <add>, %0, %cst [1] : vector<8x64xf32> to vector<8xf32>
    %2 = vector.shape_cast %1 : vector<8xf32> to vector<8x1xf32>
    %cst_1 = arith.constant 6.400000e+01 : f32
    %3 = vector.broadcast %cst_1 : f32 to vector<8x1xf32>
    %4 = arith.divf %2, %3 : vector<8x1xf32>
    %5 = vector.broadcast %4 : vector<8x1xf32> to vector<8x64xf32>
    %6 = arith.subf %0, %5 : vector<8x64xf32>
    %7 = arith.mulf %6, %6 : vector<8x64xf32>
    %cst_2 = arith.constant dense<0.000000e+00> : vector<8xf32>
    %8 = vector.multi_reduction <add>, %7, %cst_2 [1] : vector<8x64xf32> to vector<8xf32>
    %9 = vector.shape_cast %8 : vector<8xf32> to vector<8x1xf32>
    %cst_3 = arith.constant 6.400000e+01 : f32
    %10 = vector.broadcast %cst_3 : f32 to vector<8x1xf32>
    %11 = arith.divf %9, %10 : vector<8x1xf32>
    %12 = vector.broadcast %4 : vector<8x1xf32> to vector<8x64xf32>
    %13 = arith.subf %0, %12 : vector<8x64xf32>
    %cst_4 = arith.constant 9.99999974E-6 : f32
    %14 = vector.broadcast %cst_4 : f32 to vector<8x1xf32>
    %15 = arith.addf %11, %14 : vector<8x1xf32>
    %16 = math.rsqrt %15 : vector<8x1xf32>
    %17 = vector.broadcast %16 : vector<8x1xf32> to vector<8x64xf32>
    %18 = arith.mulf %13, %17 : vector<8x64xf32>
    %c0_5 = arith.constant 0 : index
    %c0_6 = arith.constant 0 : index
    %19 = vector.load %arg5[%c0_5, %c0_6] : memref<1x64xf32, #tpu.memory_space<vmem>>, vector<1x64xf32>
    %20 = vector.broadcast %19 : vector<1x64xf32> to vector<8x64xf32>
    %21 = arith.mulf %18, %20 : vector<8x64xf32>
    %c0_7 = arith.constant 0 : index
    %c0_8 = arith.constant 0 : index
    %22 = vector.load %arg6[%c0_7, %c0_8] : memref<1x64xf32, #tpu.memory_space<vmem>>, vector<1x64xf32>
    %23 = vector.broadcast %22 : vector<1x64xf32> to vector<8x64xf32>
    %24 = arith.addf %21, %23 : vector<8x64xf32>
    %c0_9 = arith.constant 0 : index
    %c0_10 = arith.constant 0 : index
    %25 = vector.load %arg3[%c0_9, %c0_10] : memref<64x128xf32, #tpu.memory_space<vmem>>, vector<64x128xf32>
    %cst_11 = arith.constant dense<0.000000e+00> : vector<8x128xf32>
    %26 = tpu.matmul %24, %25, %cst_11 {dimension_numbers = #tpu.dot_dimension_numbers<[1], [0], [0], [1], [0, 0, 1, 1], [], []>} : vector<8x64xf32>, vector<64x128xf32>, vector<8x128xf32> -> vector<8x128xf32>
    %c0_12 = arith.constant 0 : index
    %c0_13 = arith.constant 0 : index
    %27 = vector.load %arg4[%c0_12, %c0_13] : memref<1x128xf32, #tpu.memory_space<vmem>>, vector<1x128xf32>
    %28 = vector.broadcast %27 : vector<1x128xf32> to vector<8x128xf32>
    %29 = arith.addf %26, %28 : vector<8x128xf32>
    %c0_14 = arith.constant 0 : index
    %c0_15 = arith.constant 0 : index
    %30 = vector.load %arg7[%c0_14, %c0_15] : memref<8x128xf32, #tpu.memory_space<vmem>>, vector<8x128xf32>
    tpu.vector_store %arg7[%c0_14, %c0_15], %29 {strides = array<i32>} : memref<8x128xf32, #tpu.memory_space<vmem>>, vector<8x128xf32>,
    return
  }
  func.func @transform_0(%arg0: i32, %arg1: i32) -> (i32, i32) {
    %c0_i32 = arith.constant 0 : i32
    %c0_i32_0 = arith.constant 0 : i32
    return %arg0, %c0_i32 : i32, i32
  }
  func.func @transform_1(%arg0: i32, %arg1: i32) -> (i32, i32) {
    %c0_i32 = arith.constant 0 : i32
    %c0_i32_0 = arith.constant 0 : i32
    return %c0_i32, %arg1 : i32, i32
  }
  func.func @transform_2(%arg0: i32, %arg1: i32) -> (i32, i32) {
    %c0_i32 = arith.constant 0 : i32
    %c0_i32_0 = arith.constant 0 : i32
    return %c0_i32, %arg1 : i32, i32
  }
  func.func @transform_3(%arg0: i32, %arg1: i32) -> (i32, i32) {
    %c0_i32 = arith.constant 0 : i32
    %c0_i32_0 = arith.constant 0 : i32
    %c0_i32_1 = arith.constant 0 : i32
    return %c0_i32, %c0_i32_0 : i32, i32
  }
  func.func @transform_4(%arg0: i32, %arg1: i32) -> (i32, i32) {
    %c0_i32 = arith.constant 0 : i32
    %c0_i32_0 = arith.constant 0 : i32
    %c0_i32_1 = arith.constant 0 : i32
    return %c0_i32, %c0_i32_0 : i32, i32
  }
  func.func @transform_5(%arg0: i32, %arg1: i32) -> (i32, i32) {
    %c0_i32 = arith.constant 0 : i32
    return %arg0, %arg1 : i32, i32
  }
}

</mosaic_0001>

<bundles_post_ra>
// kernel: pit_forward.15
= control target key start
LH: loop header
LB: loop body
LE: loop exit
PB: predicated region body
PF: predicated region fallthrough
CT: control target
= control target key end

     0   :  { %vm60_vm0 = vcmask 392192   ;;  %s202_s1 = inlined_call_operand.vmem [shape: bf16[48,128], index: 1, kind: input, shape index: {}]   ;;  %s203_s0 = inlined_call_operand.vmem [shape: bf16[32,48], index: 0, kind: input, shape index: {}]   ;;  %s204_s2 = inlined_call_operand.vmem [shape: f32[1,128], index: 2, kind: input, shape index: {}]   ;;  %s205_s3 = inlined_call_operand.vmem [shape: f32[32,128], index: 3, kind: output, shape index: {}]  }
   0x1   :  { %v147_v0 = vld [vmem:[%s202_s1] sm:$0xff]   ;;  %v148_v1 = vld [vmem:[%s202_s1 + $0x8] sm:$0xff]   ;;  %v149_v3 = vld [vmem:[%s202_s1 + $0x10] sm:$0xff]  }
   0x2   :  { %137 = vmatprep.subr.bf16.mxu0 %v147_v0  ;;  %v150_v2 = vld [vmem:[%s203_s0] sm:$0xff]   ;;  %v151_v4 = vld [vmem:[%s203_s0 + $0x8] sm:$0xff]  }
   0x3   :  { %138 = vmatpush3.bf16.msra.mxu0 %v147_v0  ;;  %143 = vmatprep.mubr.msk.bf16.mxu0 %vm60_vm0, %v150_v2  ;;  %v124_v5 = vld [vmem:[%s204_s2] ss:$0 sm:$0xff] }
   0x4   :  { %139 = vmatprep.subr.bf16.mxu0 %v148_v1 }
   0x7   :  { %140 = vmatpush3.bf16.msra.mxu0 %v148_v1 }
   0x8   :  { %141 = vmatprep.subr.bf16.mxu0 %v149_v3 }
   0xb   :  { %142 = vmatpush3.bf16.msra.mxu0 %v149_v3 }
   0xe   :  { %144 = vmatmul.mubr.msk.bf16.vlgmr.msra.gmra.mrb[0].mxu0 %vm60_vm0, %v151_v4 }
  0xe1   :  { %v145_v6 = vpop.f32.mrb[0].mxu0 }
  0xe2   :  { %v110_v7 = vadd.f32 %v145_v6, %v124_v5  ;;  %v101_v8 = vpop.f32.mrb[1].mxu0 }
  0xe3   :  { %v102_v9 = vadd.f32 %v124_v5, %v101_v8  ;;  %v146_v10 = vpop.f32.mrb[2].mxu0 }
  0xe4   :  { %118 = vst [vmem:[%s205_s3 + $0x10] sm:$0xff] %v110_v7  ;;  %v113_v11 = vadd.f32 %v146_v10, %v124_v5  ;;  %v104_v12 = vpop.f32.mrb[3].mxu0 }
  0xe5   :  { %116 = vst [vmem:[%s205_s3] sm:$0xff] %v102_v9  ;;  %v105_v13 = vadd.f32 %v124_v5, %v104_v12 }
  0xe6   :  { %119 = vst [vmem:[%s205_s3 + $0x18] sm:$0xff] %v113_v11 }
  0xe7   :  { %117 = vst [vmem:[%s205_s3 + $0x8] sm:$0xff] %v105_v13 }

// kernel: pit_forward.16
= control target key start
LH: loop header
LB: loop body
LE: loop exit
PB: predicated region body
PF: predicated region fallthrough
CT: control target
= control target key end

     0   :  { %vm26_vm0 = vcmask 261120   ;;  %v306_v36 = vmov 0.0   ;;  %vm307_vm1 = vmmov 0   ;;  %s408_s0 = inlined_call_operand.vmem [shape: f32[40,32], index: 0, kind: input, shape index: {}]   ;;  %s409_s1 = inlined_call_operand.vmem [shape: bf16[32,128], index: 1, kind: input, shape index: {}]   ;;  %s410_s3 = inlined_call_operand.vmem [shape: f32[1,32], index: 3, kind: input, shape index: {}]   ;;  %s411_s4 = inlined_call_operand.vmem [shape: f32[1,32], index: 4, kind: input, shape index: {}]   ;;  %s412_s2 = inlined_call_operand.vmem [shape: f32[1,128], index: 2, kind: input, shape index: {}]   ;;  %s413_s5 = inlined_call_operand.vmem [shape: bf16[40,128], index: 5, kind: output, shape index: {}]  }
   0x1   :  { %v23_v0 = vld [vmem:[%s408_s0 + $0x10] sm:$0xff]  ;;  %v24_v1 = vld [vmem:[%s408_s0 + $0x18] sm:$0xff]  ;;  %v21_v2 = vld [vmem:[%s408_s0] sm:$0xff]  ;;  %288 = vmatprep.subr.bf16.mxu1 %v306_v36  ;;  %272 = vmatprep.subr.bf16.mxu0 %v306_v36 }
   0x2   :  { %v33_v3 = vsel %vm26_vm0, %v23_v0, 0.0  ;;  %v27_v4 = vsel %vm26_vm0, %v21_v2, 0.0  ;;  %v22_v5 = vld [vmem:[%s408_s0 + $0x8] sm:$0xff]  ;;  %v36_v6 = vsel %vm26_vm0, %v24_v1, 0.0  ;;  %v25_v8 = vld [vmem:[%s408_s0 + $0x20] sm:$0xff]  ;;  %280 = vmatprep.mubr.msk.bf16.mxu1 %vm307_vm1, %v306_v36  ;;  %276 = vmatprep.mubr.msk.bf16.mxu0 %vm307_vm1, %v306_v36 }
   0x3   :  { %34 = vadd.xlane.f32.xlu0 %v33_v3  ;;  %28 = vadd.xlane.f32.xlu1 %v27_v4  ;;  %v30_v7 = vsel %vm26_vm0, %v22_v5, 0.0  ;;  %v39_v9 = vsel %vm26_vm0, %v25_v8, 0.0  ;;  %v294_v35 = vld [vmem:[%s409_s1] sm:$0xff]   ;;  %v295_v37 = vld [vmem:[%s409_s1 + $0x8] sm:$0xff]  }
   0x4   :  { %290 = vmatpush3.bf16.msra.mxu1 %v294_v35  ;;  %273 = vmatpush3.bf16.msra.mxu0 %v294_v35  ;;  %v238_v55 = vld [vmem:[%s410_s3] ss:$0 sm:$0xff] }
   0x5   :  { %289 = vmatprep.subr.bf16.mxu1 %v306_v36  ;;  %274 = vmatprep.subr.bf16.mxu0 %v306_v36  ;;  %v239_v61 = vld [vmem:[%s411_s4] ss:$0 sm:$0xff] }
   0x7   :  { %37 = vadd.xlane.f32.xlu0 %v36_v6  ;;  %31 = vadd.xlane.f32.xlu1 %v30_v7 }
   0x8   :  { %291 = vmatpush3.bf16.msra.mxu1 %v295_v37  ;;  %275 = vmatpush3.bf16.msra.mxu0 %v295_v37 }
   0xb   :  { %40 = vadd.xlane.f32.xlu0 %v39_v9 }
  0x90   :  { %v35_v10 = vpop.xlane.xlu0 %34  ;;  %v29_v11 = vpop.xlane.xlu1 %28 }
  0x91   :  { %v45_v12 = vmul.f32 0.03125, %v35_v10  ;;  %v43_v13 = vmul.f32 0.03125, %v29_v11 }
  0x93   :  { %v358_v14 = vsub.f32 %v23_v0, %v45_v12  ;;  %v360_v15 = vsub.f32 %v21_v2, %v43_v13 }
  0x94   :  { %v38_v16 = vpop.xlane.xlu0 %37  ;;  %v32_v17 = vpop.xlane.xlu1 %31 }
  0x95   :  { %v46_v18 = vmul.f32 0.03125, %v38_v16  ;;  %v55_v19 = vmul.f32 %v358_v14, %v358_v14  ;;  %v44_v20 = vmul.f32 0.03125, %v32_v17  ;;  %v53_v21 = vmul.f32 %v360_v15, %v360_v15 }
  0x97   :  { %v51_v22 = vsub.f32 %v24_v1, %v46_v18  ;;  %v64_v23 = vsel %vm26_vm0, %v55_v19, 0.0  ;;  %v367_v24 = vsub.f32 %v22_v5, %v44_v20  ;;  %v58_v28 = vsel %vm26_vm0, %v53_v21, 0.0 }
  0x98   :  { %v41_v25 = vpop.xlane.xlu0 %40  ;;  %65 = vadd.xlane.f32.xlu1 %v64_v23 }
  0x99   :  { %v47_v26 = vmul.f32 0.03125, %v41_v25  ;;  %v56_v27 = vmul.f32 %v51_v22, %v51_v22  ;;  %v54_v29 = vmul.f32 %v367_v24, %v367_v24 }
  0x9b   :  { %v52_v30 = vsub.f32 %v25_v8, %v47_v26  ;;  %v67_v31 = vsel %vm26_vm0, %v56_v27, 0.0  ;;  %v61_v33 = vsel %vm26_vm0, %v54_v29, 0.0 }
  0x9c   :  { %68 = vadd.xlane.f32.xlu0 %v67_v31  ;;  %59 = vadd.xlane.f32.xlu1 %v58_v28 }
  0x9d   :  { %v57_v32 = vmul.f32 %v52_v30, %v52_v30 }
  0x9f   :  { %v70_v34 = vsel %vm26_vm0, %v57_v32, 0.0 }
  0xa0   :  { %71 = vadd.xlane.f32.xlu1 %v70_v34  ;;  %62 = vadd.xlane.f32.xlu0 %v61_v33 }
 0x125   :  { %v66_v38 = vpop.xlane.xlu1 %65 }
 0x126   :  { %v75_v39 = vmul.f32 0.03125, %v66_v38 }
 0x128   :  { %v80_v40 = vadd.f32 1e-05, %v75_v39 }
 0x129   :  { %v69_v41 = vpop.xlane.xlu0 %68  ;;  %v60_v42 = vpop.xlane.xlu1 %59 }
 0x12a   :  { %296 = vrsqrt.f32 %v80_v40  ;;  %v76_v43 = vmul.f32 0.03125, %v69_v41  ;;  %v73_v44 = vmul.f32 0.03125, %v60_v42 }
 0x12c   :  { %v81_v45 = vadd.f32 1e-05, %v76_v43  ;;  %v78_v46 = vadd.f32 1e-05, %v73_v44 }
 0x12d   :  { %v63_v47 = vpop.xlane.xlu0 %62  ;;  %v72_v48 = vpop.xlane.xlu1 %71 }
 0x12e   :  { %298 = vrsqrt.f32 %v81_v45  ;;  %v74_v49 = vmul.f32 0.03125, %v63_v47  ;;  %v77_v50 = vmul.f32 0.03125, %v72_v48 }
 0x12f   :  { %300 = vrsqrt.f32 %v78_v46 }
 0x130   :  { %v79_v51 = vadd.f32 1e-05, %v74_v49  ;;  %v82_v52 = vadd.f32 1e-05, %v77_v50 }
 0x132   :  { %302 = vrsqrt.f32 %v79_v51 }
 0x133   :  { %304 = vrsqrt.f32 %v82_v52 }
 0x134   :  { %v297_v53 = vpop.eup %296 }
 0x135   :  { %v90_v54 = vmul.f32 %v297_v53, %v358_v14  ;;  %v240_v14 = vld [vmem:[%s412_s2] ss:$0 sm:$0xff] }
 0x137   :  { %v102_v59 = vmul.f32 %v238_v55, %v90_v54 }
 0x138   :  { %v299_v56 = vpop.eup %298 }
 0x139   :  { %v301_v57 = vpop.eup %300  ;;  %v91_v58 = vmul.f32 %v299_v56, %v51_v22  ;;  %v114_v2 = vadd.f32 %v239_v61, %v102_v59 }
 0x13a   :  { %v88_v60 = vmul.f32 %v301_v57, %v360_v15 }
 0x13b   :  { %v103_v62 = vmul.f32 %v238_v55, %v91_v58 }
 0x13c   :  { %v303_v63 = vpop.eup %302  ;;  %v100_v4 = vmul.f32 %v238_v55, %v88_v60 }
 0x13d   :  { %v305_v0 = vpop.eup %304  ;;  %v89_v1 = vmul.f32 %v303_v63, %v367_v24  ;;  %v115_v3 = vadd.f32 %v239_v61, %v103_v62 }
 0x13e   :  { %v92_v5 = vmul.f32 %v305_v0, %v52_v30  ;;  %v112_v9 = vadd.f32 %v239_v61, %v100_v4 }
 0x13f   :  { %v118_v6 = vpack.c.bf16 %v115_v3, %v114_v2  ;;  %v101_v7 = vmul.f32 %v238_v55, %v89_v1 }
 0x140   :  { %v104_v8 = vmul.f32 %v238_v55, %v92_v5 }
 0x141   :  { %281 = vmatmul.mubr.msk.bf16.vlgmr.msra.gmra.mrb[0].mxu1 %vm26_vm0, %v118_v6  ;;  %v113_v10 = vadd.f32 %v239_v61, %v101_v7 }
 0x142   :  { %284 = vmatprep.mubr.msk.bf16.mxu1 %vm307_vm1, %v306_v36  ;;  %v116_v12 = vadd.f32 %v239_v61, %v104_v8 }
 0x143   :  { %v117_v11 = vpack.c.bf16 %v113_v10, %v112_v9 }
 0x144   :  { %v119_v13 = vpack.c.bf16 %v116_v12, %v116_v12 }
 0x145   :  { %277 = vmatmul.mubr.msk.bf16.vlgmr.msra.gmra.mrb[0].mxu0 %vm26_vm0, %v117_v11 }
 0x149   :  { %285 = vmatmul.mubr.msk.bf16.gmra.mrb[4].mxu1 %vm26_vm0, %v119_v13 }
 0x214   :  { %v194_v15 = vpop.f32.mrb[0].mxu1 }
 0x215   :  { %v282_v16 = vpop.f32.mrb[1].mxu1  ;;  %v195_v18 = vadd.f32 %v240_v14, %v194_v15 }
 0x216   :  { %v197_v17 = vpop.f32.mrb[2].mxu1 }
 0x217   :  { %v198_v19 = vadd.f32 %v240_v14, %v197_v17  ;;  %v283_v20 = vpop.f32.mrb[3].mxu1 }
 0x218   :  { %v186_v21 = vpop.f32.mrb[0].mxu0 }
 0x219   :  { %v264_v22 = vpack.c.bf16 %v198_v19, %v195_v18  ;;  %v278_v23 = vpop.f32.mrb[1].mxu0  ;;  %v187_v25 = vadd.f32 %v240_v14, %v186_v21 }
 0x21a   :  { %v189_v24 = vpop.f32.mrb[2].mxu0 }
 0x21b   :  { %266 = vst [vmem:[%s413_s5 + $0x8] sm:$0xff] %v264_v22   ;;  %v190_v26 = vadd.f32 %v240_v14, %v189_v24  ;;  %v279_v27 = vpop.f32.mrb[3].mxu0 }
 0x21c   :  { %v202_v28 = vpop.f32.mrb[4].mxu1 }
 0x21d   :  { %v259_v29 = vpack.c.bf16 %v190_v26, %v187_v25  ;;  %v203_v30 = vadd.f32 %v240_v14, %v202_v28  ;;  %v286_v31 = vpop.f32.mrb[5].mxu1 }
 0x21e   :  { %v205_v32 = vpop.f32.mrb[6].mxu1 }
 0x21f   :  { %260 = vst [vmem:[%s413_s5] sm:$0xff] %v259_v29   ;;  %v255_v33 = vpack.c.bf16 %v203_v30, %v203_v30  ;;  %v287_v34 = vpop.f32.mrb[7].mxu1 }
 0x221   :  { %233 = vst [vmem:[%s413_s5 + $0x10] sm:$0xf] %v255_v33 }

// kernel: pit_forward.17
= control target key start
LH: loop header
LB: loop body
LE: loop exit
PB: predicated region body
PF: predicated region fallthrough
CT: control target
= control target key end

     0   :  { %s702_s6 = smov 0   ;;  %s786_s0 = inlined_call_operand.vmem [shape: bf16[2,17,96], index: 0, kind: input, shape index: {}]   ;;  %s787_s1 = inlined_call_operand.vmem [shape: bf16[2,17,32], index: 1, kind: output, shape index: {}]  }
   0x1 LB: > { %s553_s7 = sadd.s32 4294967295, %s683_s6   ;;  %p557_p0 = scmp.ge.s32.totalorder %s683_s6, 1  ;;  %s683_s6 = sphi %s702_s6, %s11_s6  }
   0x2   : > { %p87_p1 = scmp.lt.s32.totalorder %s683_s6, 3 }
   0x4   : > { %p88_p2 = pnand %p557_p0, %p87_p1 }
   0x5   : > { %p107_p3 = scmp.lt.s32.totalorder (!%p88_p2), %s553_s7, 1  ;;  %vm133_vm0 = vcmask (!%p88_p2), 130048   ;;  %s685_s12 = smov (!%p88_p2), 96   ;;  %vm201_vm1 = vcmask (!%p88_p2), 131072   ;;  %vm194_vm2 = vcmask (!%p88_p2), 138240   ;;  %vm242_vm3 = vcmask (!%p88_p2), 1040384  }
   0x6   : > { %91 = sbr.rel (%p88_p2) target bundleno = 1578 (0x62a), region = 24  ;;  %s686_s13 = smov (!%p88_p2), 64   ;;  %v689_v32 = vmov (!%p88_p2), 0   ;;  %vm492_vm4 = vcmask (!%p88_p2), 253952   ;;  %vm493_vm5 = vsmask.f32 (!%p88_p2), 256 }
   0x7   : > { %s687_s14 = smov (!%p88_p2), 80   ;;  %s688_s15 = smov (!%p88_p2), 112   ;;  %v744_v33 = vsel (!%p88_p2), %vm242_vm3, 65535, %v689_v32  ;;  %vm489_vm6 = vcmask (!%p88_p2), 257024   ;;  %vm494_vm7 = vmand (!%p88_p2), %vm492_vm4, %vm493_vm5 }
   0x8   : > { %s690_s16 = smov (!%p88_p2), 48   ;;  %s691_s17 = smov (!%p88_p2), 16  }
   0xd   : > { %s789_s7 = smov (!%p107_p3, %s553_s7), 1 }
   0xe   : > { %s630_s8 = smul.u32 12, %s789_s7 }
  0x10   : > { %s111_s11 = scalar_lea.vmem %s786_s0, %s630_s8  ;;  %s116_s20 = scalar_lea.vmem %s787_s1, %s630_s8 }
  0x11   : > { %v718_v0 = vld [vmem:[%s111_s11] sm:$0xff]   ;;  %v721_v1 = vld [vmem:[%s111_s11 + $0x8] ss:$0 sps:$4 sm:$0x11]  }
  0x12   : > { %129 = vrot.lane.b32.xlu0 %v718_v0, %s685_s12  ;;  %598 = vmatprep.mubr.msk.bf16.mxu0 %vm133_vm0, %v718_v0 }
  0x16   : > { %131 = vrot.lane.b32.xlu0 %v721_v1, %s685_s12 }
  0x84   : > { %v130_v2 = vpop.permute.xlu0 %129 }
  0x85   : > { %626 = vmatprep.subr.msk.bf16.mxu0 %vm133_vm0, %v130_v2  ;;  %v141_v3 = vsel %vm133_vm0, %v130_v2, 0 }
  0x86   : > { %595 = vmatpush3.bf16.xpose.msra.mxu0 %v141_v3 }
  0x88   : > { %v132_v4 = vpop.permute.xlu0 %131 }
  0x89   : > { %627 = vmatprep.subr.msk.bf16.mxu0 %vm133_vm0, %v132_v4  ;;  %v144_v5 = vsel %vm133_vm0, %v132_v4, 0 }
  0x8e   : > { %597 = vmatpush3.bf16.xpose.msra.mxu0 %v144_v5 }
  0x95   : > { %599 = vmatmul.mubr.msk.bf16.vlgmr.msra.gmra.mrb[0].mxu0 %vm133_vm0, %v721_v1 }
 0x168   : > { %v600_v6 = vpop.f32.mrb[0].mxu0 }
 0x169   : > { %v180_v7 = vpop.f32.mrb[1].mxu0  ;;  %v202_v8 = vsel %vm201_vm1, %v600_v6, -inf }
 0x16a   : > { %203 = vmax.xlane.f32.xlu0 %v202_v8  ;;  %v601_v9 = vpop.f32.mrb[2].mxu0  ;;  %v195_v10 = vsel %vm194_vm2, %v180_v7, -inf }
 0x16b   : > { %196 = vmax.xlane.f32.xlu1 %v195_v10  ;;  %v183_v11 = vpop.f32.mrb[3].mxu0 }
 0x16c   : > { %v198_v12 = vsel %vm194_vm2, %v183_v11, -inf }
 0x16f   : > { %199 = vmax.xlane.f32.xlu1 %v198_v12 }
 0x180   : > { %231 = vrot.lane.b32.xlu1 %v718_v0, %s686_s13  ;;  %300 = vrot.lane.b32.xlu0 %v718_v0, %s687_s14 }
 0x1f7   : > { %v204_v13 = vpop.xlane.xlu0 %203 }
 0x1f8   : > { %v207_v14 = vsub.f32 %v600_v6, %v204_v13  ;;  %v197_v15 = vpop.xlane.xlu1 %196 }
 0x1f9   : > { %v205_v16 = vsub.f32 %v180_v7, %v197_v15 }
 0x1fa   : > { %v212_v17 = vmul.f32 1.442695, %v207_v14 }
 0x1fb   : > { %v208_v18 = vmul.f32 1.442695, %v205_v16  ;;  %v301_v36 = vpop.permute.xlu0 %300 }
 0x1fc   : > { %653 = vpow2.f32 %v212_v17  ;;  %v200_v19 = vpop.xlane.xlu1 %199  ;;  %v311_v45 = vsel %vm133_vm0, %v301_v36, 0 }
 0x1fd   : > { %v206_v20 = vsub.f32 %v183_v11, %v200_v19  ;;  %655 = vpow2.f32 %v208_v18 }
 0x1ff   : > { %v210_v21 = vmul.f32 1.442695, %v206_v20 }
 0x200   : > { %v232_v22 = vpop.permute.xlu1 %231 }
 0x201   : > { %602 = vmatprep.subr.bf16.mxu1 %v232_v22  ;;  %657 = vpow2.f32 %v210_v21 }
 0x202   : > { %603 = vmatpush3.bf16.msra.mxu1 %v232_v22 }
 0x206   : > { %v654_v23 = vpop.eup %653 }
 0x207   : > { %v220_v24 = vsel %vm201_vm1, %v654_v23, 0.0  ;;  %v656_v25 = vpop.eup %655 }
 0x208   : > { %221 = vadd.xlane.f32.xlu1 %v220_v24  ;;  %v214_v26 = vsel %vm194_vm2, %v656_v25, 0.0 }
 0x20b   : > { %v658_v27 = vpop.eup %657 }
 0x20c   : > { %215 = vadd.xlane.f32.xlu1 %v214_v26  ;;  %v217_v28 = vsel %vm194_vm2, %v658_v27, 0.0 }
 0x210   : > { %218 = vadd.xlane.f32.xlu1 %v217_v28 }
 0x221   : > { %233 = vrot.lane.b32.xlu1 %v721_v1, %s686_s13 }
 0x225   : > { %302 = vrot.lane.b32.xlu1 %v721_v1, %s687_s14 }
 0x229   : > { %296 = vrot.lane.b32.xlu1 %v718_v0, %s688_s15 }
 0x22d   : > { %298 = vrot.lane.b32.xlu1 %v721_v1, %s688_s15 }
 0x295   : > { %v222_v29 = vpop.xlane.xlu1 %221 }
 0x296   : > { %659 = vrcp.f32 %v222_v29 }
 0x299   : > { %v216_v30 = vpop.xlane.xlu1 %215 }
 0x29a   : > { %661 = vrcp.f32 %v216_v30 }
 0x29d   : > { %v219_v31 = vpop.xlane.xlu1 %218 }
 0x29e   : > { %663 = vrcp.f32 %v219_v31 }
 0x2a0   : > { %v660_v37 = vpop.eup %659 }
 0x2a1   : > { %v234_v34 = vpop.permute.xlu1 %233  ;;  %v228_v41 = vmul.f32 %v660_v37, %v654_v23 }
 0x2a2   : > { %v246_v35 = vand.u32 %v744_v33, %v234_v34 }
 0x2a3   : > { %v230_v46 = vpack.c.bf16 %v228_v41, %v228_v41 }
 0x2a4   : > { %604 = vmatprep.subr.bf16.mxu1 %v246_v35  ;;  %v662_v38 = vpop.eup %661 }
 0x2a5   : > { %605 = vmatpush3.bf16.msra.mxu1 %v246_v35  ;;  %v303_v39 = vpop.permute.xlu1 %302  ;;  %v226_v42 = vmul.f32 %v662_v38, %v656_v25 }
 0x2a6   : > { %628 = vmatprep.subr.msk.bf16.mxu1 %vm133_vm0, %v301_v36  ;;  %v314_v48 = vsel %vm133_vm0, %v303_v39, 0  ;;  %v495_v36 = vld [vmem:[%s116_s20 + $0x8] sm:$0x1] }
 0x2a8   : > { %v664_v40 = vpop.eup %663 }
 0x2a9   : > { %v227_v43 = vmul.f32 %v664_v40, %v658_v27  ;;  %v297_v47 = vpop.permute.xlu1 %296 }
 0x2ab   : > { %v229_v44 = vpack.c.bf16 %v227_v43, %v226_v42 }
 0x2ad   : > { %606 = vmatprep.mubr.msk.bf16.mxu1 %vm194_vm2, %v229_v44  ;;  %v299_v49 = vpop.permute.xlu1 %298 }
 0x2ae   : > { %607 = vmatmul.mubr.msk.bf16.vlgmr.msra.gmra.mrb[0].mxu1 %vm194_vm2, %v230_v46 }
 0x2af   : > { %611 = vmatpush3.bf16.xpose.msra.mxu1 %v311_v45  ;;  %614 = vmatprep.mubr.msk.bf16.mxu1 %vm133_vm0, %v297_v47 }
 0x2b0   : > { %629 = vmatprep.subr.msk.bf16.mxu1 %vm133_vm0, %v303_v39 }
 0x2b7   : > { %613 = vmatpush3.bf16.xpose.msra.mxu1 %v314_v48 }
 0x2be   : > { %615 = vmatmul.mubr.msk.bf16.vlgmr.msra.gmra.mrb[4].mxu1 %vm133_vm0, %v299_v49 }
 0x381   : > { %v755_v50 = vpop.f32.mrb[0].mxu1 }
 0x382   : > { %v757_v51 = vpop.f32.mrb[1].mxu1 }
 0x383   : > { %v609_v52 = vpop.f32.mrb[2].mxu1 }
 0x384   : > { %v759_v53 = vpop.f32.mrb[3].mxu1 }
 0x391   : > { %v616_v54 = vpop.f32.mrb[4].mxu1 }
 0x392   : > { %v350_v55 = vpop.f32.mrb[5].mxu1  ;;  %v370_v60 = vsel %vm201_vm1, %v616_v54, -inf }
 0x393   : > { %v617_v56 = vpop.f32.mrb[6].mxu1  ;;  %v364_v57 = vsel %vm194_vm2, %v350_v55, -inf }
 0x394   : > { %365 = vmax.xlane.f32.xlu1 %v364_v57  ;;  %v353_v58 = vpop.f32.mrb[7].mxu1 }
 0x395   : > { %v367_v59 = vsel %vm194_vm2, %v353_v58, -inf }
 0x396   : > { %368 = vmax.xlane.f32.xlu0 %v367_v59 }
 0x398   : > { %371 = vmax.xlane.f32.xlu1 %v370_v60 }
 0x421   : > { %v366_v61 = vpop.xlane.xlu1 %365 }
 0x422   : > { %v373_v63 = vsub.f32 %v350_v55, %v366_v61 }
 0x423   : > { %v369_v62 = vpop.xlane.xlu0 %368 }
 0x424   : > { %v374_v2 = vsub.f32 %v353_v58, %v369_v62  ;;  %v376_v6 = vmul.f32 1.442695, %v373_v63 }
 0x425   : > { %v372_v3 = vpop.xlane.xlu1 %371 }
 0x426   : > { %v378_v4 = vmul.f32 1.442695, %v374_v2  ;;  %v375_v5 = vsub.f32 %v616_v54, %v372_v3 }
 0x428   : > { %665 = vpow2.f32 %v378_v4  ;;  %v380_v7 = vmul.f32 1.442695, %v375_v5 }
 0x42a   : > { %667 = vpow2.f32 %v380_v7 }
 0x42b   : > { %669 = vpow2.f32 %v376_v6 }
 0x432   : > { %v666_v8 = vpop.eup %665 }
 0x433   : > { %v385_v9 = vsel %vm194_vm2, %v666_v8, 0.0 }
 0x434   : > { %v668_v10 = vpop.eup %667  ;;  %386 = vadd.xlane.f32.xlu1 %v385_v9 }
 0x435   : > { %v388_v11 = vsel %vm201_vm1, %v668_v10, 0.0  ;;  %v670_v12 = vpop.eup %669 }
 0x436   : > { %389 = vadd.xlane.f32.xlu0 %v388_v11  ;;  %v382_v13 = vsel %vm194_vm2, %v670_v12, 0.0 }
 0x43a   : > { %383 = vadd.xlane.f32.xlu0 %v382_v13 }
 0x445   : > { %399 = vrot.lane.b32.xlu1 %v718_v0, %s690_s16 }
 0x450   : > { %401 = vrot.lane.b32.xlu0 %v721_v1, %s690_s16 }
 0x4c1   : > { %v387_v14 = vpop.xlane.xlu1 %386 }
 0x4c3   : > { %v390_v15 = vpop.xlane.xlu0 %389 }
 0x4c4   : > { %671 = vrcp.f32 %v390_v15 }
 0x4c5   : > { %v400_v16 = vpop.permute.xlu1 %399  ;;  %673 = vrcp.f32 %v387_v14 }
 0x4c6   : > { %618 = vmatprep.subr.bf16.mxu0 %v400_v16 }
 0x4c7   : > { %v384_v17 = vpop.xlane.xlu0 %383  ;;  %619 = vmatpush3.bf16.msra.mxu0 %v400_v16 }
 0x4c8   : > { %675 = vrcp.f32 %v384_v17 }
 0x4cb   : > { %v402_v18 = vpop.permute.xlu0 %401 }
 0x4cc   : > { %v411_v19 = vand.u32 %v402_v18, %v744_v33 }
 0x4ce   : > { %620 = vmatprep.subr.bf16.mxu0 %v411_v19  ;;  %v672_v20 = vpop.eup %671 }
 0x4cf   : > { %621 = vmatpush3.bf16.msra.mxu0 %v411_v19  ;;  %v674_v21 = vpop.eup %673  ;;  %v396_v0 = vmul.f32 %v672_v20, %v668_v10 }
 0x4d0   : > { %v395_v23 = vmul.f32 %v674_v21, %v666_v8 }
 0x4d1   : > { %v398_v25 = vpack.c.bf16 %v396_v0, %v396_v0 }
 0x4d2   : > { %v676_v22 = vpop.eup %675 }
 0x4d3   : > { %v394_v1 = vmul.f32 %v676_v22, %v670_v12 }
 0x4d5   : > { %v397_v24 = vpack.c.bf16 %v395_v23, %v394_v1 }
 0x4d7   : > { %622 = vmatprep.mubr.msk.bf16.mxu0 %vm194_vm2, %v397_v24 }
 0x4d8   : > { %623 = vmatmul.mubr.msk.bf16.vlgmr.msra.gmra.mrb[4].mxu0 %vm194_vm2, %v398_v25 }
 0x5ab   : > { %v624_v26 = vpop.f32.mrb[4].mxu0 }
 0x5ac   : > { %v447_v27 = vpop.f32.mrb[5].mxu0 }
 0x5ad   : > { %v646_v28 = vpack.i.bf16 %v447_v27, %v624_v26  ;;  %v625_v29 = vpop.f32.mrb[6].mxu0 }
 0x5ae   : > { %v450_v30 = vpop.f32.mrb[7].mxu0 }
 0x5af   : > { %647 = vrot.lane.b32.xlu1 %v646_v28, %s691_s17 }
 0x5b3   : > { %466 = vrot.lane.b32.xlu1 %v450_v30, %s691_s17 }
 0x621   : > { %v648_v31 = vpop.permute.xlu1 %647 }
 0x622   : > { %v650_v32 = vunpack.i.h.bf16 %v648_v31  ;;  %v649_v33 = vunpack.i.l.bf16 %v648_v31 }
 0x624   : > { %v473_v34 = vsel %vm133_vm0, %v757_v51, %v650_v32  ;;  %v475_v35 = vsel %vm133_vm0, %v755_v50, %v649_v33 }
 0x625   : > { %v575_v37 = vpack.c.bf16 %v473_v34, %v473_v34  ;;  %v577_v38 = vpack.c.bf16 %v475_v35, %v475_v35  ;;  %v467_v39 = vpop.permute.xlu1 %466 }
 0x626   : > { %v474_v40 = vsel %vm133_vm0, %v759_v53, %v467_v39 }
 0x627   : > { %490 = vst.msk [vmem:[%s116_s20] sm:$0xf] %vm489_vm6, %v575_v37  ;;  %v496_v41 = vsel %vm494_vm7, %v577_v38, %v495_v36  ;;  %v576_v42 = vpack.c.bf16 %v474_v40, %v474_v40 }
 0x628   : > { %497 = vst [vmem:[%s116_s20 + $0x8] sm:$0x1] %v496_v41 }
 0x629   : > { %491 = vst.msk [vmem:[%s116_s20 + $0x4] sm:$0xf] %vm489_vm6, %v576_v42 }
 0x62a PF: > { %s11_s6 = sadd.s32 1, %s683_s6  }
 0x62b   : > { %p8_p4 = scmp.ge.s32.totalorder %s11_s6, 4  }
 0x62d   :  { %10 = sbr.rel (!%p8_p4) target bundleno = 1 (0x1), region = 54 }

// kernel: pit_forward.18
= control target key start
LH: loop header
LB: loop body
LE: loop exit
PB: predicated region body
PF: predicated region fallthrough
CT: control target
= control target key end

     0   :  { %v185_v0 = vmov 0.0   ;;  %vm186_vm0 = vmmov 0   ;;  %vm59_vm1 = vcmask 261120   ;;  %s263_s1 = inlined_call_operand.vmem [shape: bf16[32,128], index: 1, kind: input, shape index: {}]   ;;  %s264_s0 = inlined_call_operand.vmem [shape: bf16[40,32], index: 0, kind: input, shape index: {}]   ;;  %s265_s2 = inlined_call_operand.vmem [shape: f32[1,128], index: 2, kind: input, shape index: {}]   ;;  %s266_s3 = inlined_call_operand.vmem [shape: f32[40,128], index: 3, kind: input, shape index: {}]   ;;  %s267_s4 = inlined_call_operand.vmem [shape: f32[40,128], index: 4, kind: output, shape index: {}]  }
   0x1   :  { %174 = vmatprep.subr.bf16.mxu1 %v185_v0  ;;  %v180_v1 = vld [vmem:[%s263_s1] sm:$0xff]   ;;  %158 = vmatprep.subr.bf16.mxu0 %v185_v0  ;;  %v181_v2 = vld [vmem:[%s263_s1 + $0x8] sm:$0xff]   ;;  %v184_v5 = vld [vmem:[%s264_s0 + $0x10] ss:$0 sps:$4 sm:$0xff]  }
   0x2   :  { %166 = vmatprep.mubr.msk.bf16.mxu1 %vm186_vm0, %v185_v0  ;;  %162 = vmatprep.mubr.msk.bf16.mxu0 %vm186_vm0, %v185_v0  ;;  %v182_v3 = vld [vmem:[%s264_s0 + $0x8] sm:$0xff]   ;;  %v183_v4 = vld [vmem:[%s264_s0] sm:$0xff]   ;;  %v127_v8 = vld [vmem:[%s266_s3 + $0x10] sm:$0xff] }
   0x3   :  { %176 = vmatpush3.bf16.msra.mxu1 %v180_v1  ;;  %159 = vmatpush3.bf16.msra.mxu0 %v180_v1  ;;  %v144_v6 = vld [vmem:[%s265_s2] ss:$0 sm:$0xff]  ;;  %v128_v16 = vld [vmem:[%s266_s3 + $0x18] sm:$0xff]  ;;  %v126_v18 = vld [vmem:[%s266_s3 + $0x8] sm:$0xff] }
   0x4   :  { %175 = vmatprep.subr.bf16.mxu1 %v185_v0  ;;  %160 = vmatprep.subr.bf16.mxu0 %v185_v0  ;;  %v125_v10 = vld [vmem:[%s266_s3] sm:$0xff] }
   0x5   :  { %v129_v28 = vld [vmem:[%s266_s3 + $0x20] sm:$0xff] }
   0x7   :  { %177 = vmatpush3.bf16.msra.mxu1 %v181_v2  ;;  %161 = vmatpush3.bf16.msra.mxu0 %v181_v2 }
   0xa   :  { %167 = vmatmul.mubr.msk.bf16.vlgmr.msra.gmra.mrb[0].mxu1 %vm59_vm1, %v182_v3  ;;  %163 = vmatmul.mubr.msk.bf16.vlgmr.msra.gmra.mrb[0].mxu0 %vm59_vm1, %v183_v4 }
   0xb   :  { %170 = vmatprep.mubr.msk.bf16.mxu1 %vm186_vm0, %v185_v0 }
  0x12   :  { %171 = vmatmul.mubr.msk.bf16.gmra.mrb[4].mxu1 %vm59_vm1, %v184_v5 }
  0xdd   :  { %v111_v7 = vpop.f32.mrb[0].mxu1  ;;  %v103_v9 = vpop.f32.mrb[0].mxu0 }
  0xde   :  { %v112_v11 = vadd.f32 %v144_v6, %v111_v7  ;;  %v168_v12 = vpop.f32.mrb[1].mxu1  ;;  %v104_v13 = vadd.f32 %v144_v6, %v103_v9  ;;  %v164_v14 = vpop.f32.mrb[1].mxu0 }
  0xdf   :  { %v114_v15 = vpop.f32.mrb[2].mxu1  ;;  %v106_v17 = vpop.f32.mrb[2].mxu0 }
  0xe0   :  { %v132_v19 = vadd.f32 %v127_v8, %v112_v11  ;;  %v115_v20 = vadd.f32 %v144_v6, %v114_v15  ;;  %v130_v21 = vadd.f32 %v125_v10, %v104_v13  ;;  %v169_v22 = vpop.f32.mrb[3].mxu1  ;;  %v107_v23 = vadd.f32 %v144_v6, %v106_v17  ;;  %v165_v24 = vpop.f32.mrb[3].mxu0 }
  0xe2   :  { %137 = vst [vmem:[%s267_s4 + $0x10] sm:$0xff] %v132_v19  ;;  %v133_v25 = vadd.f32 %v128_v16, %v115_v20  ;;  %135 = vst [vmem:[%s267_s4] sm:$0xff] %v130_v21  ;;  %v131_v26 = vadd.f32 %v126_v18, %v107_v23 }
  0xe4   :  { %138 = vst [vmem:[%s267_s4 + $0x18] sm:$0xff] %v133_v25  ;;  %136 = vst [vmem:[%s267_s4 + $0x8] sm:$0xff] %v131_v26 }
  0xe5   :  { %v119_v27 = vpop.f32.mrb[4].mxu1 }
  0xe6   :  { %v120_v29 = vadd.f32 %v144_v6, %v119_v27  ;;  %v172_v30 = vpop.f32.mrb[5].mxu1 }
  0xe7   :  { %v122_v31 = vpop.f32.mrb[6].mxu1 }
  0xe8   :  { %v134_v32 = vadd.f32 %v129_v28, %v120_v29  ;;  %v173_v33 = vpop.f32.mrb[7].mxu1 }
  0xea   :  { %139 = vst [vmem:[%s267_s4 + $0x20] sm:$0xff] %v134_v32 }

// kernel: pit_forward.20
= control target key start
LH: loop header
LB: loop body
LE: loop exit
PB: predicated region body
PF: predicated region fallthrough
CT: control target
= control target key end

     0   :  { %v215_v0 = vmov 0.0   ;;  %vm216_vm0 = vmmov 0   ;;  %vm75_vm1 = vcmask 523264   ;;  %s299_s1 = inlined_call_operand.vmem [shape: bf16[64,128], index: 1, kind: input, shape index: {}]   ;;  %s300_s0 = inlined_call_operand.vmem [shape: bf16[40,64], index: 0, kind: input, shape index: {}]   ;;  %s301_s2 = inlined_call_operand.vmem [shape: f32[1,128], index: 2, kind: input, shape index: {}]   ;;  %s302_s3 = inlined_call_operand.vmem [shape: f32[40,128], index: 3, kind: input, shape index: {}]   ;;  %s303_s4 = inlined_call_operand.vmem [shape: f32[40,128], index: 4, kind: output, shape index: {}]  }
   0x1   :  { %198 = vmatprep.subr.bf16.mxu1 %v215_v0  ;;  %v208_v1 = vld [vmem:[%s299_s1] sm:$0xff]   ;;  %178 = vmatprep.subr.bf16.mxu0 %v215_v0  ;;  %v209_v2 = vld [vmem:[%s299_s1 + $0x8] sm:$0xff]   ;;  %v210_v3 = vld [vmem:[%s299_s1 + $0x10] sm:$0xff]  }
   0x2   :  { %190 = vmatprep.mubr.msk.bf16.mxu1 %vm216_vm0, %v215_v0  ;;  %186 = vmatprep.mubr.msk.bf16.mxu0 %vm216_vm0, %v215_v0  ;;  %v211_v4 = vld [vmem:[%s299_s1 + $0x18] sm:$0xff]   ;;  %v212_v5 = vld [vmem:[%s300_s0 + $0x8] sm:$0xff]   ;;  %v213_v6 = vld [vmem:[%s300_s0] sm:$0xff]  }
   0x3   :  { %202 = vmatpush3.bf16.msra.mxu1 %v208_v1  ;;  %179 = vmatpush3.bf16.msra.mxu0 %v208_v1  ;;  %v214_v7 = vld [vmem:[%s300_s0 + $0x10] ss:$0 sps:$4 sm:$0xff]   ;;  %v160_v8 = vld [vmem:[%s301_s2] ss:$0 sm:$0xff]  ;;  %v144_v18 = vld [vmem:[%s302_s3 + $0x18] sm:$0xff] }
   0x4   :  { %199 = vmatprep.subr.bf16.mxu1 %v215_v0  ;;  %180 = vmatprep.subr.bf16.mxu0 %v215_v0  ;;  %v143_v10 = vld [vmem:[%s302_s3 + $0x10] sm:$0xff]  ;;  %v141_v12 = vld [vmem:[%s302_s3] sm:$0xff]  ;;  %v142_v20 = vld [vmem:[%s302_s3 + $0x8] sm:$0xff] }
   0x5   :  { %v145_v30 = vld [vmem:[%s302_s3 + $0x20] sm:$0xff] }
   0x7   :  { %203 = vmatpush3.bf16.msra.mxu1 %v209_v2  ;;  %181 = vmatpush3.bf16.msra.mxu0 %v209_v2 }
   0x8   :  { %200 = vmatprep.subr.bf16.mxu1 %v215_v0  ;;  %182 = vmatprep.subr.bf16.mxu0 %v215_v0 }
   0xb   :  { %204 = vmatpush3.bf16.msra.mxu1 %v210_v3  ;;  %183 = vmatpush3.bf16.msra.mxu0 %v210_v3 }
   0xc   :  { %201 = vmatprep.subr.bf16.mxu1 %v215_v0  ;;  %184 = vmatprep.subr.bf16.mxu0 %v215_v0 }
   0xf   :  { %205 = vmatpush3.bf16.msra.mxu1 %v211_v4  ;;  %185 = vmatpush3.bf16.msra.mxu0 %v211_v4 }
  0x12   :  { %191 = vmatmul.mubr.msk.bf16.vlgmr.msra.gmra.mrb[0].mxu1 %vm75_vm1, %v212_v5  ;;  %187 = vmatmul.mubr.msk.bf16.vlgmr.msra.gmra.mrb[0].mxu0 %vm75_vm1, %v213_v6 }
  0x13   :  { %194 = vmatprep.mubr.msk.bf16.mxu1 %vm216_vm0, %v215_v0 }
  0x1a   :  { %195 = vmatmul.mubr.msk.bf16.gmra.mrb[4].mxu1 %vm75_vm1, %v214_v7 }
  0xe5   :  { %v127_v9 = vpop.f32.mrb[0].mxu1  ;;  %v119_v11 = vpop.f32.mrb[0].mxu0 }
  0xe6   :  { %v128_v13 = vadd.f32 %v160_v8, %v127_v9  ;;  %v192_v14 = vpop.f32.mrb[1].mxu1  ;;  %v120_v15 = vadd.f32 %v160_v8, %v119_v11  ;;  %v188_v16 = vpop.f32.mrb[1].mxu0 }
  0xe7   :  { %v130_v17 = vpop.f32.mrb[2].mxu1  ;;  %v122_v19 = vpop.f32.mrb[2].mxu0 }
  0xe8   :  { %v148_v21 = vadd.f32 %v143_v10, %v128_v13  ;;  %v131_v22 = vadd.f32 %v160_v8, %v130_v17  ;;  %v146_v23 = vadd.f32 %v141_v12, %v120_v15  ;;  %v193_v24 = vpop.f32.mrb[3].mxu1  ;;  %v123_v25 = vadd.f32 %v160_v8, %v122_v19  ;;  %v189_v26 = vpop.f32.mrb[3].mxu0 }
  0xea   :  { %153 = vst [vmem:[%s303_s4 + $0x10] sm:$0xff] %v148_v21  ;;  %v149_v27 = vadd.f32 %v144_v18, %v131_v22  ;;  %151 = vst [vmem:[%s303_s4] sm:$0xff] %v146_v23  ;;  %v147_v28 = vadd.f32 %v142_v20, %v123_v25 }
  0xec   :  { %154 = vst [vmem:[%s303_s4 + $0x18] sm:$0xff] %v149_v27  ;;  %152 = vst [vmem:[%s303_s4 + $0x8] sm:$0xff] %v147_v28 }
  0xed   :  { %v135_v29 = vpop.f32.mrb[4].mxu1 }
  0xee   :  { %v136_v31 = vadd.f32 %v160_v8, %v135_v29  ;;  %v196_v32 = vpop.f32.mrb[5].mxu1 }
  0xef   :  { %v138_v33 = vpop.f32.mrb[6].mxu1 }
  0xf0   :  { %v150_v34 = vadd.f32 %v145_v30, %v136_v31  ;;  %v197_v35 = vpop.f32.mrb[7].mxu1 }
  0xf2   :  { %155 = vst [vmem:[%s303_s4 + $0x20] sm:$0xff] %v150_v34 }

// kernel: pit_forward.19
= control target key start
LH: loop header
LB: loop body
LE: loop exit
PB: predicated region body
PF: predicated region fallthrough
CT: control target
= control target key end

     0   :  { %vm26_vm0 = vcmask 261120   ;;  %v361_v36 = vmov 0.0   ;;  %vm362_vm1 = vmmov 0   ;;  %s463_s0 = inlined_call_operand.vmem [shape: f32[40,32], index: 0, kind: input, shape index: {}]   ;;  %s464_s1 = inlined_call_operand.vmem [shape: bf16[32,128], index: 1, kind: input, shape index: {}]   ;;  %s465_s3 = inlined_call_operand.vmem [shape: f32[1,32], index: 3, kind: input, shape index: {}]   ;;  %s466_s4 = inlined_call_operand.vmem [shape: f32[1,32], index: 4, kind: input, shape index: {}]   ;;  %s467_s2 = inlined_call_operand.vmem [shape: f32[1,128], index: 2, kind: input, shape index: {}]   ;;  %s468_s5 = inlined_call_operand.vmem [shape: bf16[40,128], index: 5, kind: output, shape index: {}]  }
   0x1   :  { %v23_v0 = vld [vmem:[%s463_s0 + $0x10] sm:$0xff]  ;;  %v24_v1 = vld [vmem:[%s463_s0 + $0x18] sm:$0xff]  ;;  %v21_v2 = vld [vmem:[%s463_s0] sm:$0xff]  ;;  %333 = vmatprep.subr.bf16.mxu1 %v361_v36  ;;  %317 = vmatprep.subr.bf16.mxu0 %v361_v36 }
   0x2   :  { %v33_v3 = vsel %vm26_vm0, %v23_v0, 0.0  ;;  %v27_v4 = vsel %vm26_vm0, %v21_v2, 0.0  ;;  %v22_v5 = vld [vmem:[%s463_s0 + $0x8] sm:$0xff]  ;;  %v36_v6 = vsel %vm26_vm0, %v24_v1, 0.0  ;;  %v25_v8 = vld [vmem:[%s463_s0 + $0x20] sm:$0xff]  ;;  %325 = vmatprep.mubr.msk.bf16.mxu1 %vm362_vm1, %v361_v36  ;;  %321 = vmatprep.mubr.msk.bf16.mxu0 %vm362_vm1, %v361_v36 }
   0x3   :  { %34 = vadd.xlane.f32.xlu0 %v33_v3  ;;  %28 = vadd.xlane.f32.xlu1 %v27_v4  ;;  %v30_v7 = vsel %vm26_vm0, %v22_v5, 0.0  ;;  %v39_v9 = vsel %vm26_vm0, %v25_v8, 0.0  ;;  %v339_v35 = vld [vmem:[%s464_s1] sm:$0xff]   ;;  %v340_v37 = vld [vmem:[%s464_s1 + $0x8] sm:$0xff]  }
   0x4   :  { %335 = vmatpush3.bf16.msra.mxu1 %v339_v35  ;;  %318 = vmatpush3.bf16.msra.mxu0 %v339_v35  ;;  %v283_v55 = vld [vmem:[%s465_s3] ss:$0 sm:$0xff] }
   0x5   :  { %334 = vmatprep.subr.bf16.mxu1 %v361_v36  ;;  %319 = vmatprep.subr.bf16.mxu0 %v361_v36  ;;  %v284_v61 = vld [vmem:[%s466_s4] ss:$0 sm:$0xff] }
   0x7   :  { %37 = vadd.xlane.f32.xlu0 %v36_v6  ;;  %31 = vadd.xlane.f32.xlu1 %v30_v7 }
   0x8   :  { %336 = vmatpush3.bf16.msra.mxu1 %v340_v37  ;;  %320 = vmatpush3.bf16.msra.mxu0 %v340_v37 }
   0xb   :  { %40 = vadd.xlane.f32.xlu0 %v39_v9 }
  0x90   :  { %v35_v10 = vpop.xlane.xlu0 %34  ;;  %v29_v11 = vpop.xlane.xlu1 %28 }
  0x91   :  { %v45_v12 = vmul.f32 0.03125, %v35_v10  ;;  %v43_v13 = vmul.f32 0.03125, %v29_v11 }
  0x93   :  { %v413_v14 = vsub.f32 %v23_v0, %v45_v12  ;;  %v415_v15 = vsub.f32 %v21_v2, %v43_v13 }
  0x94   :  { %v38_v16 = vpop.xlane.xlu0 %37  ;;  %v32_v17 = vpop.xlane.xlu1 %31 }
  0x95   :  { %v46_v18 = vmul.f32 0.03125, %v38_v16  ;;  %v55_v19 = vmul.f32 %v413_v14, %v413_v14  ;;  %v44_v20 = vmul.f32 0.03125, %v32_v17  ;;  %v53_v21 = vmul.f32 %v415_v15, %v415_v15 }
  0x97   :  { %v51_v22 = vsub.f32 %v24_v1, %v46_v18  ;;  %v64_v23 = vsel %vm26_vm0, %v55_v19, 0.0  ;;  %v422_v24 = vsub.f32 %v22_v5, %v44_v20  ;;  %v58_v28 = vsel %vm26_vm0, %v53_v21, 0.0 }
  0x98   :  { %v41_v25 = vpop.xlane.xlu0 %40  ;;  %65 = vadd.xlane.f32.xlu1 %v64_v23 }
  0x99   :  { %v47_v26 = vmul.f32 0.03125, %v41_v25  ;;  %v56_v27 = vmul.f32 %v51_v22, %v51_v22  ;;  %v54_v29 = vmul.f32 %v422_v24, %v422_v24 }
  0x9b   :  { %v52_v30 = vsub.f32 %v25_v8, %v47_v26  ;;  %v67_v31 = vsel %vm26_vm0, %v56_v27, 0.0  ;;  %v61_v33 = vsel %vm26_vm0, %v54_v29, 0.0 }
  0x9c   :  { %68 = vadd.xlane.f32.xlu0 %v67_v31  ;;  %59 = vadd.xlane.f32.xlu1 %v58_v28 }
  0x9d   :  { %v57_v32 = vmul.f32 %v52_v30, %v52_v30 }
  0x9f   :  { %v70_v34 = vsel %vm26_vm0, %v57_v32, 0.0 }
  0xa0   :  { %71 = vadd.xlane.f32.xlu1 %v70_v34  ;;  %62 = vadd.xlane.f32.xlu0 %v61_v33 }
 0x125   :  { %v66_v38 = vpop.xlane.xlu1 %65 }
 0x126   :  { %v75_v39 = vmul.f32 0.03125, %v66_v38 }
 0x128   :  { %v80_v40 = vadd.f32 1e-05, %v75_v39 }
 0x129   :  { %v69_v41 = vpop.xlane.xlu0 %68  ;;  %v60_v42 = vpop.xlane.xlu1 %59 }
 0x12a   :  { %341 = vrsqrt.f32 %v80_v40  ;;  %v76_v43 = vmul.f32 0.03125, %v69_v41  ;;  %v73_v44 = vmul.f32 0.03125, %v60_v42 }
 0x12c   :  { %v81_v45 = vadd.f32 1e-05, %v76_v43  ;;  %v78_v46 = vadd.f32 1e-05, %v73_v44 }
 0x12d   :  { %v63_v47 = vpop.xlane.xlu0 %62  ;;  %v72_v48 = vpop.xlane.xlu1 %71 }
 0x12e   :  { %343 = vrsqrt.f32 %v81_v45  ;;  %v74_v49 = vmul.f32 0.03125, %v63_v47  ;;  %v77_v50 = vmul.f32 0.03125, %v72_v48 }
 0x12f   :  { %345 = vrsqrt.f32 %v78_v46 }
 0x130   :  { %v79_v51 = vadd.f32 1e-05, %v74_v49  ;;  %v82_v52 = vadd.f32 1e-05, %v77_v50 }
 0x132   :  { %347 = vrsqrt.f32 %v79_v51 }
 0x133   :  { %349 = vrsqrt.f32 %v82_v52 }
 0x134   :  { %v342_v53 = vpop.eup %341 }
 0x135   :  { %v90_v54 = vmul.f32 %v342_v53, %v413_v14  ;;  %v285_v14 = vld [vmem:[%s467_s2] ss:$0 sm:$0xff] }
 0x137   :  { %v102_v59 = vmul.f32 %v283_v55, %v90_v54 }
 0x138   :  { %v344_v56 = vpop.eup %343 }
 0x139   :  { %v346_v57 = vpop.eup %345  ;;  %v91_v58 = vmul.f32 %v344_v56, %v51_v22  ;;  %v114_v2 = vadd.f32 %v284_v61, %v102_v59 }
 0x13a   :  { %v88_v60 = vmul.f32 %v346_v57, %v415_v15 }
 0x13b   :  { %v103_v62 = vmul.f32 %v283_v55, %v91_v58 }
 0x13c   :  { %v348_v63 = vpop.eup %347  ;;  %v100_v4 = vmul.f32 %v283_v55, %v88_v60 }
 0x13d   :  { %v350_v0 = vpop.eup %349  ;;  %v89_v1 = vmul.f32 %v348_v63, %v422_v24  ;;  %v115_v3 = vadd.f32 %v284_v61, %v103_v62 }
 0x13e   :  { %v92_v5 = vmul.f32 %v350_v0, %v52_v30  ;;  %v112_v9 = vadd.f32 %v284_v61, %v100_v4 }
 0x13f   :  { %v118_v6 = vpack.c.bf16 %v115_v3, %v114_v2  ;;  %v101_v7 = vmul.f32 %v283_v55, %v89_v1 }
 0x140   :  { %v104_v8 = vmul.f32 %v283_v55, %v92_v5 }
 0x141   :  { %326 = vmatmul.mubr.msk.bf16.vlgmr.msra.gmra.mrb[0].mxu1 %vm26_vm0, %v118_v6  ;;  %v113_v10 = vadd.f32 %v284_v61, %v101_v7 }
 0x142   :  { %329 = vmatprep.mubr.msk.bf16.mxu1 %vm362_vm1, %v361_v36  ;;  %v116_v12 = vadd.f32 %v284_v61, %v104_v8 }
 0x143   :  { %v117_v11 = vpack.c.bf16 %v113_v10, %v112_v9 }
 0x144   :  { %v119_v13 = vpack.c.bf16 %v116_v12, %v116_v12 }
 0x145   :  { %322 = vmatmul.mubr.msk.bf16.vlgmr.msra.gmra.mrb[0].mxu0 %vm26_vm0, %v117_v11 }
 0x149   :  { %330 = vmatmul.mubr.msk.bf16.gmra.mrb[4].mxu1 %vm26_vm0, %v119_v13 }
 0x214   :  { %v194_v15 = vpop.f32.mrb[0].mxu1 }
 0x215   :  { %v195_v16 = vadd.f32 %v285_v14, %v194_v15  ;;  %v327_v17 = vpop.f32.mrb[1].mxu1 }
 0x216   :  { %v197_v18 = vpop.f32.mrb[2].mxu1 }
 0x217   :  { %v210_v19 = vmul.f32 %v195_v16, %v195_v16  ;;  %v198_v20 = vadd.f32 %v285_v14, %v197_v18  ;;  %v328_v21 = vpop.f32.mrb[3].mxu1 }
 0x218   :  { %v186_v22 = vpop.f32.mrb[0].mxu0 }
 0x219   :  { %v215_v23 = vmul.f32 %v210_v19, %v195_v16  ;;  %v211_v24 = vmul.f32 %v198_v20, %v198_v20  ;;  %v187_v25 = vadd.f32 %v285_v14, %v186_v22  ;;  %v323_v26 = vpop.f32.mrb[1].mxu0 }
 0x21a   :  { %v189_v27 = vpop.f32.mrb[2].mxu0 }
 0x21b   :  { %v220_v28 = vmul.f32 0.044715, %v215_v23  ;;  %v216_v29 = vmul.f32 %v211_v24, %v198_v20  ;;  %v208_v30 = vmul.f32 %v187_v25, %v187_v25  ;;  %v190_v31 = vadd.f32 %v285_v14, %v189_v27  ;;  %v324_v32 = vpop.f32.mrb[3].mxu0 }
 0x21c   :  { %v202_v33 = vpop.f32.mrb[4].mxu1 }
 0x21d   :  { %v225_v34 = vadd.f32 %v220_v28, %v195_v16  ;;  %v221_v35 = vmul.f32 0.044715, %v216_v29  ;;  %v213_v36 = vmul.f32 %v208_v30, %v187_v25  ;;  %v209_v37 = vmul.f32 %v190_v31, %v190_v31  ;;  %v331_v38 = vpop.f32.mrb[5].mxu1 }
 0x21e   :  { %v203_v39 = vadd.f32 %v285_v14, %v202_v33  ;;  %v205_v40 = vpop.f32.mrb[6].mxu1 }
 0x21f   :  { %v230_v41 = vmul.f32 0.7978846, %v225_v34  ;;  %v226_v42 = vadd.f32 %v221_v35, %v198_v20  ;;  %v218_v43 = vmul.f32 0.044715, %v213_v36  ;;  %v214_v44 = vmul.f32 %v209_v37, %v190_v31  ;;  %v332_v45 = vpop.f32.mrb[7].mxu1 }
 0x220   :  { %v212_v46 = vmul.f32 %v203_v39, %v203_v39 }
 0x221   :  { %351 = vtanh.f32 %v230_v41  ;;  %v231_v47 = vmul.f32 0.7978846, %v226_v42  ;;  %v223_v48 = vadd.f32 %v218_v43, %v187_v25  ;;  %v219_v49 = vmul.f32 0.044715, %v214_v44 }
 0x222   :  { %v217_v50 = vmul.f32 %v212_v46, %v203_v39 }
 0x223   :  { %353 = vtanh.f32 %v231_v47  ;;  %v228_v51 = vmul.f32 0.7978846, %v223_v48  ;;  %v224_v52 = vadd.f32 %v219_v49, %v190_v31 }
 0x224   :  { %v222_v53 = vmul.f32 0.044715, %v217_v50 }
 0x225   :  { %355 = vtanh.f32 %v228_v51  ;;  %v229_v54 = vmul.f32 0.7978846, %v224_v52 }
 0x226   :  { %v227_v55 = vadd.f32 %v222_v53, %v203_v39 }
 0x227   :  { %357 = vtanh.f32 %v229_v54 }
 0x228   :  { %v232_v56 = vmul.f32 0.7978846, %v227_v55 }
 0x22a   :  { %359 = vtanh.f32 %v232_v56 }
 0x22b   :  { %v352_v57 = vpop.eup %351 }
 0x22c   :  { %v240_v58 = vadd.f32 1.0, %v352_v57 }
 0x22d   :  { %v354_v59 = vpop.eup %353 }
 0x22e   :  { %v245_v60 = vmul.f32 0.5, %v240_v58  ;;  %v241_v61 = vadd.f32 1.0, %v354_v59 }
 0x22f   :  { %v356_v62 = vpop.eup %355 }
 0x230   :  { %v246_v63 = vmul.f32 0.5, %v241_v61  ;;  %v238_v0 = vadd.f32 1.0, %v356_v62  ;;  %v250_v2 = vmul.f32 %v245_v60, %v195_v16 }
 0x231   :  { %v358_v1 = vpop.eup %357 }
 0x232   :  { %v251_v3 = vmul.f32 %v246_v63, %v198_v20  ;;  %v243_v4 = vmul.f32 0.5, %v238_v0  ;;  %v239_v5 = vadd.f32 1.0, %v358_v1 }
 0x234   :  { %v360_v6 = vpop.eup %359  ;;  %v309_v7 = vpack.c.bf16 %v251_v3, %v250_v2  ;;  %v244_v8 = vmul.f32 0.5, %v239_v5  ;;  %v248_v10 = vmul.f32 %v243_v4, %v187_v25 }
 0x235   :  { %v242_v9 = vadd.f32 1.0, %v360_v6 }
 0x236   :  { %311 = vst [vmem:[%s468_s5 + $0x8] sm:$0xff] %v309_v7   ;;  %v249_v11 = vmul.f32 %v244_v8, %v190_v31 }
 0x237   :  { %v247_v12 = vmul.f32 0.5, %v242_v9 }
 0x238   :  { %v304_v13 = vpack.c.bf16 %v249_v11, %v248_v10 }
 0x239   :  { %v252_v14 = vmul.f32 %v247_v12, %v203_v39 }
 0x23a   :  { %305 = vst [vmem:[%s468_s5] sm:$0xff] %v304_v13  }
 0x23b   :  { %v300_v15 = vpack.c.bf16 %v252_v14, %v252_v14 }
 0x23d   :  { %278 = vst [vmem:[%s468_s5 + $0x10] sm:$0xf] %v300_v15 }

// kernel: pit_forward.22
= control target key start
LH: loop header
LB: loop body
LE: loop exit
PB: predicated region body
PF: predicated region fallthrough
CT: control target
= control target key end

     0   :  { %s996_s15 = smov 0   ;;  %s1290_s0 = inlined_call_operand.vmem [shape: f32[2,9,32,4], index: 0, kind: input, shape index: {}]   ;;  %s1291_s1 = inlined_call_operand.vmem [shape: f32[32,18], index: 1, kind: input, shape index: {}]   ;;  %s1292_s2 = inlined_call_operand.vmem [shape: f32[32,2], index: 2, kind: input, shape index: {}]   ;;  %s1293_s3 = inlined_call_operand.vmem [shape: f32[2,32,4], index: 3, kind: output, shape index: {0}]   ;;  %s1294_s4 = inlined_call_operand.vmem [shape: f32[2,32,4], index: 4, kind: output, shape index: {1}]  }
   0x1 LB: > { %s832_s16 = sadd.s32 4294967295, %s951_s15   ;;  %p836_p0 = scmp.ge.s32.totalorder %s951_s15, 1  ;;  %s951_s15 = sphi %s996_s15, %s15_s15  }
   0x2   : > { %p165_p1 = scmp.lt.s32.totalorder %s951_s15, 3 }
   0x4   : > { %p166_p2 = pnand %p836_p0, %p165_p1 }
   0x5   : > { %v1007_v0 = vld [vmem:[%s1291_s1 + $0x10] sm:$0xff] (!%p166_p2)  ;;  %v1012_v1 = vld [vmem:[%s1291_s1] sm:$0xff] (!%p166_p2)  ;;  %v953_v2 = vmov (!%p166_p2), 0   ;;  %v1021_v3 = vld [vmem:[%s1291_s1 + $0x18] sm:$0xff] (!%p166_p2)  ;;  %v954_v5 = vmov (!%p166_p2), 9   ;;  %v955_v6 = vmov (!%p166_p2), 1  }
   0x6   : > { %169 = sbr.rel (%p166_p2) target bundleno = 349 (0x15d), region = 32  ;;  %906 = vset.pattern.permute.xlu1 (!%p166_p2), %v953_v2  ;;  %905 = vset.pattern.permute.xlu0 (!%p166_p2), %v953_v2  ;;  %v1026_v4 = vld [vmem:[%s1291_s1 + $0x8] sm:$0xff] (!%p166_p2)  ;;  %v956_v7 = vmov (!%p166_p2), 10   ;;  %v957_v8 = vmov (!%p166_p2), 2   ;;  %v958_v9 = vmov (!%p166_p2), 11   ;;  %v959_v10 = vmov (!%p166_p2), 3  }
   0x7   : > { %235 = vperm.xlu1 (!%p166_p2), %906, %v1007_v0   ;;  %225 = vperm.xlu0 (!%p166_p2), %905, %v1012_v1   ;;  %v960_v11 = vmov (!%p166_p2), 12   ;;  %v961_v12 = vmov (!%p166_p2), 4   ;;  %v962_v13 = vmov (!%p166_p2), 13   ;;  %v963_v14 = vmov (!%p166_p2), 5   ;;  %p196_p3 = scmp.lt.s32.totalorder (!%p166_p2), %s832_s16, 1  ;;  %v1098_v23 = vld [vmem:[%s1292_s2 + $0x8] sm:$0xff] (!%p166_p2) }
   0x8   : > { %v964_v15 = vmov (!%p166_p2), 14   ;;  %v965_v16 = vmov (!%p166_p2), 6   ;;  %v966_v17 = vmov (!%p166_p2), 15   ;;  %v967_v18 = vmov (!%p166_p2), 7   ;;  %v1108_v27 = vld [vmem:[%s1292_s2] sm:$0xff] (!%p166_p2)  ;;  %v1122_v30 = vld [vmem:[%s1292_s2 + $0x18] sm:$0xff] (!%p166_p2) }
   0x9   : > { %v968_v19 = vmov (!%p166_p2), 16   ;;  %v969_v20 = vmov (!%p166_p2), 8   ;;  %v970_v21 = vmov (!%p166_p2), 17   ;;  %vm715_vm0 = vcmask (!%p166_p2), 31744  }
   0xb   : > { %240 = vperm.xlu1 (!%p166_p2), %906, %v1021_v3   ;;  %230 = vperm.xlu0 (!%p166_p2), %905, %v1026_v4  }
   0xd   : > { %s1296_s16 = smov (!%p196_p3, %s832_s16), 1 }
   0xe   : > { %s878_s27 = smul.u32 288, %s1296_s16  ;;  %s876_s11 = sshll.u32 %s1296_s16, 5 }
   0xf   : > { %908 = vset.pattern.permute.xlu1 %v954_v5  ;;  %907 = vset.pattern.permute.xlu0 %v954_v5  ;;  %s1251_s14 = scalar_lea.vmem %s1293_s3, %s876_s11  ;;  %s1259_s18 = scalar_lea.vmem %s1294_s4, %s876_s11 }
  0x10   : > { %252 = vperm.xlu1 %908, %v1026_v4   ;;  %248 = vperm.xlu0 %907, %v1012_v1   ;;  %s1113_s6 = scalar_lea.vmem %s1290_s0, %s878_s27 }
  0x11   : > { %v220_v28 = vld [vmem:[%s1113_s6 + $0x8] sm:$0xff]  ;;  %v219_v35 = vld [vmem:[%s1113_s6] sm:$0xff]  ;;  %v221_v44 = vld [vmem:[%s1113_s6 + $0x10] sm:$0xff] }
  0x12   : > { %v842_v36 = vld [vmem:[%s1113_s6 + $0x20] sm:$0xff]  ;;  %v843_v41 = vld [vmem:[%s1113_s6 + $0x28] sm:$0xff]  ;;  %v844_v45 = vld [vmem:[%s1113_s6 + $0x30] sm:$0xff] }
  0x13   : > { %v222_v53 = vld [vmem:[%s1113_s6 + $0x18] sm:$0xff] }
  0x14   : > { %256 = vperm.xlu1 %908, %v1007_v0   ;;  %260 = vperm.xlu0 %907, %v1021_v3   ;;  %v845_v54 = vld [vmem:[%s1113_s6 + $0x38] sm:$0xff] }
  0x18   : > { %909 = vset.pattern.permute.xlu1 %v955_v6  ;;  %910 = vset.pattern.permute.xlu0 %v955_v6 }
  0x19   : > { %273 = vperm.xlu1 %909, %v1012_v1   ;;  %277 = vperm.xlu0 %910, %v1026_v4  }
  0x1d   : > { %281 = vperm.xlu1 %909, %v1007_v0   ;;  %911 = vset.pattern.permute.xlu0 %v956_v7 }
  0x1e   : > { %297 = vperm.xlu0 %911, %v1012_v1  }
  0x21   : > { %285 = vperm.xlu1 %909, %v1021_v3  }
  0x22   : > { %309 = vperm.xlu0 %911, %v1021_v3  }
  0x25   : > { %912 = vset.pattern.permute.xlu1 %v956_v7 }
  0x26   : > { %301 = vperm.xlu1 %912, %v1026_v4   ;;  %914 = vset.pattern.permute.xlu0 %v957_v8 }
  0x27   : > { %330 = vperm.xlu0 %914, %v1026_v4  }
  0x2a   : > { %305 = vperm.xlu1 %912, %v1007_v0  }
  0x2b   : > { %915 = vset.pattern.permute.xlu0 %v958_v9 }
  0x2c   : > { %350 = vperm.xlu0 %915, %v1012_v1  }
  0x2e   : > { %913 = vset.pattern.permute.xlu1 %v957_v8 }
  0x2f   : > { %326 = vperm.xlu1 %913, %v1012_v1  }
  0x30   : > { %362 = vperm.xlu0 %915, %v1021_v3  }
  0x33   : > { %334 = vperm.xlu1 %913, %v1007_v0  }
  0x34   : > { %918 = vset.pattern.permute.xlu0 %v959_v10 }
  0x35   : > { %383 = vperm.xlu0 %918, %v1026_v4  }
  0x37   : > { %338 = vperm.xlu1 %913, %v1021_v3  }
  0x39   : > { %919 = vset.pattern.permute.xlu0 %v960_v11 }
  0x3a   : > { %403 = vperm.xlu0 %919, %v1012_v1  }
  0x3b   : > { %916 = vset.pattern.permute.xlu1 %v958_v9 }
  0x3c   : > { %354 = vperm.xlu1 %916, %v1026_v4  }
  0x3e   : > { %415 = vperm.xlu0 %919, %v1021_v3  }
  0x40   : > { %358 = vperm.xlu1 %916, %v1007_v0  }
  0x42   : > { %922 = vset.pattern.permute.xlu0 %v961_v12 }
  0x43   : > { %436 = vperm.xlu0 %922, %v1026_v4  }
  0x44   : > { %917 = vset.pattern.permute.xlu1 %v959_v10 }
  0x45   : > { %379 = vperm.xlu1 %917, %v1012_v1  }
  0x47   : > { %923 = vset.pattern.permute.xlu0 %v962_v13 }
  0x48   : > { %456 = vperm.xlu0 %923, %v1012_v1  }
  0x49   : > { %387 = vperm.xlu1 %917, %v1007_v0  }
  0x4c   : > { %468 = vperm.xlu0 %923, %v1021_v3  }
  0x4d   : > { %391 = vperm.xlu1 %917, %v1021_v3  }
  0x50   : > { %926 = vset.pattern.permute.xlu0 %v963_v14 }
  0x51   : > { %920 = vset.pattern.permute.xlu1 %v960_v11  ;;  %489 = vperm.xlu0 %926, %v1026_v4   ;;  %v847_v11 = vld [vmem:[%s1113_s6 + $0x48] sm:$0xff] }
  0x52   : > { %407 = vperm.xlu1 %920, %v1026_v4  }
  0x55   : > { %927 = vset.pattern.permute.xlu0 %v964_v15 }
  0x56   : > { %411 = vperm.xlu1 %920, %v1007_v0   ;;  %509 = vperm.xlu0 %927, %v1012_v1  }
  0x5a   : > { %921 = vset.pattern.permute.xlu1 %v961_v12  ;;  %521 = vperm.xlu0 %927, %v1021_v3  }
  0x5b   : > { %432 = vperm.xlu1 %921, %v1012_v1  }
  0x5e   : > { %930 = vset.pattern.permute.xlu0 %v965_v16 }
  0x5f   : > { %440 = vperm.xlu1 %921, %v1007_v0   ;;  %542 = vperm.xlu0 %930, %v1026_v4  }
  0x63   : > { %444 = vperm.xlu1 %921, %v1021_v3   ;;  %931 = vset.pattern.permute.xlu0 %v966_v17 }
  0x64   : > { %562 = vperm.xlu0 %931, %v1012_v1  }
  0x67   : > { %924 = vset.pattern.permute.xlu1 %v962_v13 }
  0x68   : > { %460 = vperm.xlu1 %924, %v1026_v4   ;;  %574 = vperm.xlu0 %931, %v1021_v3  }
  0x6c   : > { %464 = vperm.xlu1 %924, %v1007_v0   ;;  %934 = vset.pattern.permute.xlu0 %v967_v18 }
  0x6d   : > { %595 = vperm.xlu0 %934, %v1026_v4  }
  0x70   : > { %925 = vset.pattern.permute.xlu1 %v963_v14 }
  0x71   : > { %485 = vperm.xlu1 %925, %v1012_v1   ;;  %935 = vset.pattern.permute.xlu0 %v968_v19 }
  0x72   : > { %615 = vperm.xlu0 %935, %v1012_v1  }
  0x75   : > { %493 = vperm.xlu1 %925, %v1007_v0  }
  0x76   : > { %627 = vperm.xlu0 %935, %v1021_v3  }
  0x79   : > { %497 = vperm.xlu1 %925, %v1021_v3  }
  0x7a   : > { %938 = vset.pattern.permute.xlu0 %v969_v20 }
  0x7b   : > { %648 = vperm.xlu0 %938, %v1026_v4  }
  0x7d   : > { %928 = vset.pattern.permute.xlu1 %v964_v15 }
  0x7e   : > { %513 = vperm.xlu1 %928, %v1026_v4  }
  0x7f   : > { %939 = vset.pattern.permute.xlu0 %v970_v21 }
  0x80   : > { %668 = vperm.xlu0 %939, %v1012_v1  }
  0x82   : > { %517 = vperm.xlu1 %928, %v1007_v0  }
  0x84   : > { %680 = vperm.xlu0 %939, %v1021_v3  }
  0x86   : > { %v236_v22 = vpop.permute.xlu1 %235  ;;  %929 = vset.pattern.permute.xlu1 %v965_v16  ;;  %v226_v24 = vpop.permute.xlu0 %225 }
  0x87   : > { %538 = vperm.xlu1 %929, %v1012_v1   ;;  %v243_v37 = vmul.f32 %v226_v24, %v219_v35  ;;  %v245_v50 = vmul.f32 %v236_v22, %v221_v44 }
  0x88   : > { %942 = vset.pattern.permute.xlu0 %v953_v2 }
  0x89   : > { %698 = vperm.xlu0 %942, %v1098_v23  }
  0x8a   : > { %v241_v25 = vpop.permute.xlu1 %240  ;;  %v231_v26 = vpop.permute.xlu0 %230 }
  0x8b   : > { %546 = vperm.xlu1 %929, %v1007_v0   ;;  %v244_v38 = vmul.f32 %v231_v26, %v220_v28  ;;  %v246_v60 = vmul.f32 %v241_v25, %v222_v53 }
  0x8d   : > { %943 = vset.pattern.permute.xlu0 %v955_v6 }
  0x8e   : > { %721 = vperm.xlu0 %943, %v1108_v27  }
  0x8f   : > { %v253_v29 = vpop.permute.xlu1 %252  ;;  %550 = vperm.xlu1 %929, %v1021_v3   ;;  %v249_v31 = vpop.permute.xlu0 %248 }
  0x90   : > { %v264_v32 = vmul.f32 %v253_v29, %v220_v28  ;;  %v263_v48 = vmul.f32 %v249_v31, %v219_v35  ;;  %v849_v31 = vld [vmem:[%s1113_s6 + $0x58] sm:$0xff] }
  0x92   : > { %733 = vperm.xlu0 %943, %v1122_v30  }
  0x93   : > { %v257_v33 = vpop.permute.xlu1 %256  ;;  %932 = vset.pattern.permute.xlu1 %v966_v17  ;;  %v261_v34 = vpop.permute.xlu0 %260 }
  0x94   : > { %566 = vperm.xlu1 %932, %v1026_v4   ;;  %v266_v57 = vmul.f32 %v261_v34, %v222_v53  ;;  %v265_v16 = vmul.f32 %v257_v33, %v221_v44 }
  0x98   : > { %570 = vperm.xlu1 %932, %v1007_v0   ;;  %v274_v39 = vpop.permute.xlu1 %273  ;;  %v278_v40 = vpop.permute.xlu0 %277 }
  0x99   : > { %v288_v42 = vmul.f32 %v842_v36, %v274_v39  ;;  %v289_v43 = vmul.f32 %v843_v41, %v278_v40 }
  0x9b   : > { %v292_v46 = vadd.f32 %v288_v42, %v243_v37  ;;  %v293_v47 = vadd.f32 %v289_v43, %v244_v38 }
  0x9c   : > { %933 = vset.pattern.permute.xlu1 %v967_v18  ;;  %v282_v49 = vpop.permute.xlu1 %281  ;;  %v846_v18 = vld [vmem:[%s1113_s6 + $0x40] sm:$0xff] }
  0x9d   : > { %v290_v51 = vmul.f32 %v844_v45, %v282_v49  ;;  %591 = vperm.xlu1 %933, %v1012_v1   ;;  %v298_v52 = vpop.permute.xlu0 %297 }
  0x9e   : > { %v312_v55 = vmul.f32 %v842_v36, %v298_v52  ;;  %v852_v52 = vld [vmem:[%s1113_s6 + $0x70] sm:$0xff] }
  0x9f   : > { %v294_v56 = vadd.f32 %v290_v51, %v245_v50 }
  0xa0   : > { %v286_v58 = vpop.permute.xlu1 %285  ;;  %v316_v59 = vadd.f32 %v312_v55, %v263_v48  ;;  %v1164_v48 = vld [vmem:[%s1113_s6 + $0x60] sm:$0xff] }
  0xa1   : > { %v291_v61 = vmul.f32 %v845_v54, %v286_v58  ;;  %599 = vperm.xlu1 %933, %v1007_v0   ;;  %v310_v62 = vpop.permute.xlu0 %309 }
  0xa2   : > { %v315_v63 = vmul.f32 %v845_v54, %v310_v62 }
  0xa3   : > { %v295_v5 = vadd.f32 %v291_v61, %v246_v60  ;;  %v851_v60 = vld [vmem:[%s1113_s6 + $0x68] sm:$0xff] }
  0xa4   : > { %v319_v7 = vadd.f32 %v315_v63, %v266_v57 }
  0xa5   : > { %603 = vperm.xlu1 %933, %v1021_v3   ;;  %v302_v8 = vpop.permute.xlu1 %301 }
  0xa6   : > { %v313_v9 = vmul.f32 %v843_v41, %v302_v8  ;;  %v331_v10 = vpop.permute.xlu0 %330 }
  0xa7   : > { %v342_v12 = vmul.f32 %v847_v11, %v331_v10 }
  0xa8   : > { %v317_v13 = vadd.f32 %v313_v9, %v264_v32  ;;  %v848_v32 = vld [vmem:[%s1113_s6 + $0x50] sm:$0xff]  ;;  %v854_v9 = vld [vmem:[%s1113_s6 + $0x80] sm:$0xff] }
  0xa9   : > { %936 = vset.pattern.permute.xlu1 %v968_v19  ;;  %v306_v14 = vpop.permute.xlu1 %305  ;;  %v1140_v15 = vadd.f32 %v342_v12, %v293_v47 }
  0xaa   : > { %v314_v17 = vmul.f32 %v844_v45, %v306_v14  ;;  %619 = vperm.xlu1 %936, %v1026_v4  }
  0xab   : > { %v351_v22 = vpop.permute.xlu0 %350 }
  0xac   : > { %v318_v24 = vadd.f32 %v314_v17, %v265_v16  ;;  %v365_v25 = vmul.f32 %v846_v18, %v351_v22  ;;  %v857_v22 = vld [vmem:[%s1113_s6 + $0x98] sm:$0xff] }
  0xae   : > { %623 = vperm.xlu1 %936, %v1007_v0   ;;  %v327_v26 = vpop.permute.xlu1 %326  ;;  %v1145_v28 = vadd.f32 %v365_v25, %v316_v59 }
  0xaf   : > { %v341_v29 = vmul.f32 %v846_v18, %v327_v26  ;;  %v363_v19 = vpop.permute.xlu0 %362 }
  0xb0   : > { %v368_v34 = vmul.f32 %v849_v31, %v363_v19 }
  0xb1   : > { %v345_v35 = vadd.f32 %v341_v29, %v292_v46  ;;  %v855_v29 = vld [vmem:[%s1113_s6 + $0x88] sm:$0xff] }
  0xb2   : > { %937 = vset.pattern.permute.xlu1 %v969_v20  ;;  %v335_v33 = vpop.permute.xlu1 %334  ;;  %v1150_v36 = vadd.f32 %v368_v34, %v319_v7 }
  0xb3   : > { %v343_v37 = vmul.f32 %v848_v32, %v335_v33  ;;  %644 = vperm.xlu1 %937, %v1012_v1  }
  0xb4   : > { %v1153_v38 = vpop.permute.xlu0 %383 }
  0xb5   : > { %v347_v39 = vadd.f32 %v343_v37, %v294_v56 }
  0xb6   : > { %v339_v40 = vpop.permute.xlu1 %338 }
  0xb7   : > { %v344_v41 = vmul.f32 %v849_v31, %v339_v40  ;;  %652 = vperm.xlu1 %937, %v1007_v0   ;;  %v858_v40 = vld [vmem:[%s1113_s6 + $0xa0] sm:$0xff] }
  0xb9   : > { %v348_v42 = vadd.f32 %v344_v41, %v295_v5  ;;  %v1156_v43 = vpop.permute.xlu0 %403 }
  0xbb   : > { %656 = vperm.xlu1 %937, %v1021_v3   ;;  %v355_v20 = vpop.permute.xlu1 %354 }
  0xbc   : > { %v366_v44 = vmul.f32 %v847_v11, %v355_v20 }
  0xbd   : > { %v1159_v45 = vpop.permute.xlu0 %415 }
  0xbe   : > { %v370_v46 = vadd.f32 %v366_v44, %v317_v13  ;;  %v856_v13 = vld [vmem:[%s1113_s6 + $0x90] sm:$0xff] }
  0xbf   : > { %940 = vset.pattern.permute.xlu1 %v970_v21  ;;  %v359_v1 = vpop.permute.xlu1 %358  ;;  %v860_v44 = vld [vmem:[%s1113_s6 + $0xb0] sm:$0xff] }
  0xc0   : > { %v367_v47 = vmul.f32 %v848_v32, %v359_v1  ;;  %672 = vperm.xlu1 %940, %v1026_v4   ;;  %v1176_v4 = vld [vmem:[%s1113_s6 + $0x78] sm:$0xff] }
  0xc2   : > { %v371_v49 = vadd.f32 %v367_v47, %v318_v24  ;;  %v1166_v50 = vpop.permute.xlu0 %436  ;;  %v395_v47 = vmul.f32 %v851_v60, %v1153_v38  ;;  %v1214_v38 = vld [vmem:[%s1113_s6 + $0xc8] sm:$0xff] }
  0xc4   : > { %676 = vperm.xlu1 %940, %v1007_v0   ;;  %v380_v3 = vpop.permute.xlu1 %379  ;;  %v217_v0 = vld [vmem:[%s1292_s2 + $0x10] sm:$0xff] }
  0xc5   : > { %v394_v51 = vmul.f32 %v1164_v48, %v380_v3 }
  0xc7   : > { %v398_v53 = vadd.f32 %v394_v51, %v345_v35  ;;  %v1171_v54 = vpop.permute.xlu0 %456 }
  0xc8   : > { %941 = vset.pattern.permute.xlu1 %v953_v2  ;;  %v388_v21 = vpop.permute.xlu1 %387 }
  0xc9   : > { %v396_v55 = vmul.f32 %v852_v52, %v388_v21  ;;  %693 = vperm.xlu1 %941, %v1108_v27   ;;  %v399_v21 = vadd.f32 %v395_v47, %v1140_v15 }
  0xcb   : > { %v400_v56 = vadd.f32 %v396_v55, %v347_v39  ;;  %v1181_v57 = vpop.permute.xlu0 %468  ;;  %v448_v55 = vmul.f32 %v855_v29, %v1166_v50 }
  0xcc   : > { %v392_v58 = vpop.permute.xlu1 %391 }
  0xcd   : > { %v397_v59 = vmul.f32 %v1176_v4, %v392_v58  ;;  %703 = vperm.xlu1 %941, %v217_v0   ;;  %v859_v58 = vld [vmem:[%s1113_s6 + $0xa8] sm:$0xff] }
  0xcf   : > { %v401_v2 = vadd.f32 %v397_v59, %v348_v42 }
  0xd0   : > { %v490_v61 = vpop.permute.xlu0 %489 }
  0xd1   : > { %708 = vperm.xlu1 %941, %v1122_v30   ;;  %v408_v27 = vpop.permute.xlu1 %407 }
  0xd2   : > { %v419_v62 = vmul.f32 %v851_v60, %v408_v27  ;;  %v421_v60 = vmul.f32 %v1176_v4, %v1159_v45  ;;  %v452_v27 = vadd.f32 %v448_v55, %v399_v21 }
  0xd4   : > { %v423_v63 = vadd.f32 %v419_v62, %v370_v46  ;;  %v501_v62 = vmul.f32 %v859_v58, %v490_v61  ;;  %v425_v45 = vadd.f32 %v421_v60, %v1150_v36  ;;  %v1229_v61 = vld [vmem:[%s1113_s6 + $0xc0] sm:$0xff] }
  0xd5   : > { %944 = vset.pattern.permute.xlu1 %v955_v6  ;;  %v412_v5 = vpop.permute.xlu1 %411  ;;  %v1187_v7 = vpop.permute.xlu0 %509 }
  0xd6   : > { %v420_v8 = vmul.f32 %v852_v52, %v412_v5  ;;  %725 = vperm.xlu1 %944, %v1098_v23   ;;  %v861_v52 = vld [vmem:[%s1113_s6 + $0xb8] sm:$0xff]  ;;  %v1221_v5 = vld [vmem:[%s1113_s6 + $0xe8] sm:$0xff]  ;;  %v505_v4 = vadd.f32 %v501_v62, %v452_v27 }
  0xd8   : > { %v424_v10 = vadd.f32 %v420_v8, %v371_v49 }
  0xd9   : > { %v1191_v11 = vpop.permute.xlu0 %521 }
  0xda   : > { %729 = vperm.xlu1 %944, %v217_v0   ;;  %v433_v12 = vpop.permute.xlu1 %432 }
  0xdb   : > { %v447_v30 = vmul.f32 %v854_v9, %v433_v12 }
  0xdd   : > { %v451_v14 = vadd.f32 %v447_v30, %v398_v53  ;;  %v474_v30 = vmul.f32 %v857_v22, %v1181_v57 }
  0xde   : > { %v441_v16 = vpop.permute.xlu1 %440  ;;  %v543_v17 = vpop.permute.xlu0 %542 }
  0xdf   : > { %v449_v6 = vmul.f32 %v856_v13, %v441_v16  ;;  %v478_v57 = vadd.f32 %v474_v30, %v425_v45 }
  0xe1   : > { %v453_v18 = vadd.f32 %v449_v6, %v400_v56  ;;  %v418_v56 = vmul.f32 %v1164_v48, %v1156_v43  ;;  %v554_v48 = vmul.f32 %v1214_v38, %v543_v17  ;;  %v866_v17 = vld [vmem:[%s1113_s6 + $0xe0] sm:$0xff] }
  0xe2   : > { %v445_v24 = vpop.permute.xlu1 %444 }
  0xe3   : > { %v450_v25 = vmul.f32 %v857_v22, %v445_v24  ;;  %v563_v23 = vpop.permute.xlu0 %562  ;;  %v422_v50 = vadd.f32 %v418_v56, %v1145_v28  ;;  %v558_v16 = vadd.f32 %v554_v48, %v505_v4 }
  0xe5   : > { %v454_v26 = vadd.f32 %v450_v25, %v401_v2  ;;  %v1240_v25 = vld [vmem:[%s1113_s6 + $0xd8] sm:$0xff] }
  0xe7   : > { %v461_v31 = vpop.permute.xlu1 %460  ;;  %v1196_v19 = vpop.permute.xlu0 %574 }
  0xe8   : > { %v472_v32 = vmul.f32 %v855_v29, %v461_v31  ;;  %v870_v29 = vld [vmem:[%s1113_s6 + $0x100] sm:$0xff] }
  0xea   : > { %v476_v34 = vadd.f32 %v472_v32, %v423_v63  ;;  %v471_v63 = vmul.f32 %v854_v9, %v1171_v54 }
  0xeb   : > { %v465_v35 = vpop.permute.xlu1 %464 }
  0xec   : > { %v473_v33 = vmul.f32 %v856_v13, %v465_v35  ;;  %v596_v37 = vpop.permute.xlu0 %595  ;;  %v475_v9 = vadd.f32 %v471_v63, %v422_v50  ;;  %v524_v13 = vmul.f32 %v858_v40, %v1187_v7  ;;  %v527_v7 = vmul.f32 %v861_v52, %v1191_v11 }
  0xed   : > { %v607_v28 = vmul.f32 %v1221_v5, %v596_v37 }
  0xee   : > { %v477_v39 = vadd.f32 %v473_v33, %v424_v10  ;;  %v1225_v10 = vld [vmem:[%s1113_s6 + $0x108] sm:$0xff]  ;;  %v528_v22 = vadd.f32 %v524_v13, %v475_v9  ;;  %v531_v11 = vadd.f32 %v527_v7, %v478_v57  ;;  %v864_v9 = vld [vmem:[%s1113_s6 + $0xd0] sm:$0xff] }
  0xf0   : > { %v486_v41 = vpop.permute.xlu1 %485 }
  0xf1   : > { %v500_v42 = vmul.f32 %v858_v40, %v486_v41  ;;  %v616_v20 = vpop.permute.xlu0 %615  ;;  %v873_v40 = vld [vmem:[%s1113_s6 + $0x118] sm:$0xff] }
  0xf2   : > { %v630_v31 = vmul.f32 %v866_v17, %v616_v20 }
  0xf3   : > { %v1200_v46 = vadd.f32 %v500_v42, %v451_v14 }
  0xf4   : > { %v494_v1 = vpop.permute.xlu1 %493 }
  0xf5   : > { %v502_v49 = vmul.f32 %v860_v44, %v494_v1  ;;  %v628_v3 = vpop.permute.xlu0 %627 }
  0xf7   : > { %v1203_v51 = vadd.f32 %v502_v49, %v453_v18  ;;  %v577_v18 = vmul.f32 %v1229_v61, %v563_v23  ;;  %v580_v23 = vmul.f32 %v1240_v25, %v1196_v19 }
  0xf8   : > { %v498_v53 = vpop.permute.xlu1 %497 }
  0xf9   : > { %v503_v0 = vmul.f32 %v861_v52, %v498_v53  ;;  %v581_v33 = vadd.f32 %v577_v18, %v528_v22  ;;  %v584_v1 = vadd.f32 %v580_v23, %v531_v11 }
  0xfa   : > { %v649_v59 = vpop.permute.xlu0 %648 }
  0xfb   : > { %v1211_v2 = vadd.f32 %v503_v0, %v454_v26  ;;  %v660_v6 = vmul.f32 %v1225_v10, %v649_v59  ;;  %v611_v26 = vadd.f32 %v607_v28, %v558_v16  ;;  %v634_v42 = vadd.f32 %v630_v31, %v581_v33 }
  0xfd   : > { %v514_v15 = vpop.permute.xlu1 %513  ;;  %v664_v35 = vadd.f32 %v660_v6, %v611_v26  ;;  %v872_v6 = vld [vmem:[%s1113_s6 + $0x110] sm:$0xff] }
  0xfe   : > { %v525_v43 = vmul.f32 %v859_v58, %v514_v15 }
  0xff   : > { %v669_v8 = vpop.permute.xlu0 %668 }
 0x100   : > { %v529_v12 = vadd.f32 %v525_v43, %v476_v34  ;;  %v869_v34 = vld [vmem:[%s1113_s6 + $0xf8] sm:$0xff]  ;;  %v683_v37 = vmul.f32 %v870_v29, %v669_v8 }
 0x101   : > { %v518_v54 = vpop.permute.xlu1 %517  ;;  %v633_v20 = vmul.f32 %v869_v34, %v628_v3 }
 0x102   : > { %v526_v14 = vmul.f32 %v860_v44, %v518_v54  ;;  %v687_v19 = vadd.f32 %v683_v37, %v634_v42 }
 0x103   : > { %v681_v36 = vpop.permute.xlu0 %680  ;;  %v637_v52 = vadd.f32 %v633_v20, %v584_v1 }
 0x104   : > { %v1237_v24 = vadd.f32 %v526_v14, %v477_v39  ;;  %v686_v47 = vmul.f32 %v873_v40, %v681_v36 }
 0x106   : > { %v539_v32 = vpop.permute.xlu1 %538  ;;  %v690_v3 = vadd.f32 %v686_v47, %v637_v52 }
 0x107   : > { %v553_v28 = vmul.f32 %v1229_v61, %v539_v32 }
 0x108   : > { %v699_v39 = vpop.permute.xlu0 %698 }
 0x109   : > { %v712_v41 = vadd.f32 %v699_v39, %v664_v35  ;;  %v557_v30 = vadd.f32 %v553_v28, %v1200_v46 }
 0x10a   : > { %v547_v44 = vpop.permute.xlu1 %546 }
 0x10b   : > { %717 = vst.msk [vmem:[%s1251_s14 + $0x8] sm:$0xff] %vm715_vm0, %v712_v41  ;;  %v555_v13 = vmul.f32 %v864_v9, %v547_v44 }
 0x10d   : > { %v722_v49 = vpop.permute.xlu0 %721  ;;  %v559_v18 = vadd.f32 %v555_v13, %v1203_v51 }
 0x10e   : > { %v736_v53 = vadd.f32 %v722_v49, %v687_v19  ;;  %v551_v21 = vpop.permute.xlu1 %550 }
 0x10f   : > { %v556_v26 = vmul.f32 %v1240_v25, %v551_v21 }
 0x110   : > { %740 = vst.msk [vmem:[%s1259_s18] sm:$0xff] %vm715_vm0, %v736_v53 }
 0x111   : > { %v734_v55 = vpop.permute.xlu0 %733  ;;  %v560_v46 = vadd.f32 %v556_v26, %v1211_v2 }
 0x112   : > { %v739_v0 = vadd.f32 %v734_v55, %v690_v3 }
 0x113   : > { %v567_v56 = vpop.permute.xlu1 %566 }
 0x114   : > { %743 = vst.msk [vmem:[%s1259_s18 + $0x18] sm:$0xff] %vm715_vm0, %v739_v0  ;;  %v578_v58 = vmul.f32 %v1214_v38, %v567_v56 }
 0x116   : > { %v582_v59 = vadd.f32 %v578_v58, %v529_v12  ;;  %v868_v12 = vld [vmem:[%s1113_s6 + $0xf0] sm:$0xff] }
 0x117   : > { %v571_v60 = vpop.permute.xlu1 %570 }
 0x118   : > { %v579_v25 = vmul.f32 %v864_v9, %v571_v60 }
 0x11a   : > { %v583_v2 = vadd.f32 %v579_v25, %v1237_v24 }
 0x11c   : > { %v592_v27 = vpop.permute.xlu1 %591 }
 0x11d   : > { %v606_v38 = vmul.f32 %v866_v17, %v592_v27 }
 0x11f   : > { %v610_v36 = vadd.f32 %v606_v38, %v557_v30 }
 0x120   : > { %v600_v62 = vpop.permute.xlu1 %599 }
 0x124   : > { %v604_v15 = vpop.permute.xlu1 %603 }
 0x125   : > { %v609_v17 = vmul.f32 %v869_v34, %v604_v15 }
 0x127   : > { %v613_v33 = vadd.f32 %v609_v17, %v560_v46 }
 0x129   : > { %v620_v50 = vpop.permute.xlu1 %619 }
 0x12a   : > { %v631_v63 = vmul.f32 %v1221_v5, %v620_v50  ;;  %v608_v5 = vmul.f32 %v868_v12, %v600_v62 }
 0x12c   : > { %v635_v43 = vadd.f32 %v631_v63, %v582_v59  ;;  %v612_v7 = vadd.f32 %v608_v5, %v559_v18 }
 0x12d   : > { %v624_v48 = vpop.permute.xlu1 %623 }
 0x12e   : > { %v632_v41 = vmul.f32 %v868_v12, %v624_v48 }
 0x130   : > { %v636_v20 = vadd.f32 %v632_v41, %v583_v2 }
 0x132   : > { %v645_v8 = vpop.permute.xlu1 %644 }
 0x133   : > { %v659_v14 = vmul.f32 %v870_v29, %v645_v8 }
 0x135   : > { %v663_v61 = vadd.f32 %v659_v14, %v610_v36 }
 0x136   : > { %v653_v45 = vpop.permute.xlu1 %652 }
 0x137   : > { %v661_v57 = vmul.f32 %v872_v6, %v653_v45 }
 0x139   : > { %v665_v29 = vadd.f32 %v661_v57, %v612_v7 }
 0x13a   : > { %v657_v4 = vpop.permute.xlu1 %656 }
 0x13b   : > { %v662_v32 = vmul.f32 %v873_v40, %v657_v4 }
 0x13d   : > { %v666_v51 = vadd.f32 %v662_v32, %v613_v33 }
 0x13f   : > { %v673_v54 = vpop.permute.xlu1 %672 }
 0x140   : > { %v684_v37 = vmul.f32 %v1225_v10, %v673_v54 }
 0x142   : > { %v688_v11 = vadd.f32 %v684_v37, %v635_v43 }
 0x143   : > { %v677_v16 = vpop.permute.xlu1 %676 }
 0x144   : > { %v685_v40 = vmul.f32 %v872_v6, %v677_v16 }
 0x146   : > { %v689_v1 = vadd.f32 %v685_v40, %v636_v20 }
 0x148   : > { %v694_v22 = vpop.permute.xlu1 %693 }
 0x149   : > { %v711_v31 = vadd.f32 %v694_v22, %v663_v61 }
 0x14b   : > { %716 = vst.msk [vmem:[%s1251_s14] sm:$0xff] %vm715_vm0, %v711_v31 }
 0x14c   : > { %v704_v35 = vpop.permute.xlu1 %703 }
 0x14d   : > { %v713_v23 = vadd.f32 %v704_v35, %v665_v29 }
 0x14f   : > { %718 = vst.msk [vmem:[%s1251_s14 + $0x10] sm:$0xff] %vm715_vm0, %v713_v23 }
 0x150   : > { %v709_v34 = vpop.permute.xlu1 %708 }
 0x151   : > { %v714_v39 = vadd.f32 %v709_v34, %v666_v51 }
 0x153   : > { %719 = vst.msk [vmem:[%s1251_s14 + $0x18] sm:$0xff] %vm715_vm0, %v714_v39 }
 0x155   : > { %v726_v42 = vpop.permute.xlu1 %725 }
 0x156   : > { %v737_v44 = vadd.f32 %v726_v42, %v688_v11 }
 0x158   : > { %741 = vst.msk [vmem:[%s1259_s18 + $0x8] sm:$0xff] %vm715_vm0, %v737_v44 }
 0x159   : > { %v730_v47 = vpop.permute.xlu1 %729 }
 0x15a   : > { %v738_v19 = vadd.f32 %v730_v47, %v689_v1 }
 0x15c   : > { %742 = vst.msk [vmem:[%s1259_s18 + $0x10] sm:$0xff] %vm715_vm0, %v738_v19 }
 0x15d PF: > { %s15_s15 = sadd.s32 1, %s951_s15  }
 0x15e   : > { %p12_p4 = scmp.ge.s32.totalorder %s15_s15, 4  }
 0x160   :  { %14 = sbr.rel (!%p12_p4) target bundleno = 1 (0x1), region = 82 }

// kernel: pit_forward.23
= control target key start
LH: loop header
LB: loop body
LE: loop exit
PB: predicated region body
PF: predicated region fallthrough
CT: control target
= control target key end

     0   :  { %v133_v0 = vmov 0.0   ;;  %vm134_vm0 = vmmov 0   ;;  %vm55_vm1 = vcmask 523264   ;;  %s176_s1 = inlined_call_operand.vmem [shape: bf16[64,128], index: 1, kind: input, shape index: {}]   ;;  %s177_s0 = inlined_call_operand.vmem [shape: bf16[8,64], index: 0, kind: input, shape index: {}]   ;;  %s178_s2 = inlined_call_operand.vmem [shape: f32[1,128], index: 2, kind: input, shape index: {}]   ;;  %s179_s3 = inlined_call_operand.vmem [shape: f32[8,128], index: 3, kind: output, shape index: {}]  }
   0x1   :  { %115 = vmatprep.subr.bf16.mxu0 %v133_v0  ;;  %v129_v1 = vld [vmem:[%s176_s1] sm:$0xff]   ;;  %123 = vmatprep.mubr.msk.bf16.mxu0 %vm134_vm0, %v133_v0  ;;  %v130_v2 = vld [vmem:[%s176_s1 + $0x8] sm:$0xff]   ;;  %v131_v3 = vld [vmem:[%s176_s1 + $0x10] sm:$0xff]  }
   0x2   :  { %116 = vmatpush3.bf16.msra.mxu0 %v129_v1  ;;  %v132_v4 = vld [vmem:[%s176_s1 + $0x18] sm:$0xff]   ;;  %v15_v5 = vld [vmem:[%s177_s0] sm:$0xf] }
   0x3   :  { %117 = vmatprep.subr.bf16.mxu0 %v133_v0  ;;  %v104_v6 = vld [vmem:[%s178_s2] ss:$0 sm:$0xff] }
   0x6   :  { %118 = vmatpush3.bf16.msra.mxu0 %v130_v2 }
   0x7   :  { %119 = vmatprep.subr.bf16.mxu0 %v133_v0 }
   0xa   :  { %120 = vmatpush3.bf16.msra.mxu0 %v131_v3 }
   0xb   :  { %121 = vmatprep.subr.bf16.mxu0 %v133_v0 }
   0xe   :  { %122 = vmatpush3.bf16.msra.mxu0 %v132_v4 }
  0x11   :  { %124 = vmatmul.mubr.msk.bf16.vlgmr.msra.gmra.mrb[0].mxu0 %vm55_vm1, %v15_v5 }
  0xe4   :  { %v93_v7 = vpop.f32.mrb[0].mxu0 }
  0xe5   :  { %v94_v8 = vadd.f32 %v104_v6, %v93_v7  ;;  %v125_v9 = vpop.f32.mrb[1].mxu0 }
  0xe6   :  { %v96_v10 = vpop.f32.mrb[2].mxu0 }
  0xe7   :  { %99 = vst [vmem:[%s179_s3] sm:$0xff] %v94_v8  ;;  %v126_v11 = vpop.f32.mrb[3].mxu0 }

// kernel: pit_forward.21
= control target key start
LH: loop header
LB: loop body
LE: loop exit
PB: predicated region body
PF: predicated region fallthrough
CT: control target
= control target key end

     0   :  { %v107_v0 = vmov 0.0   ;;  %vm108_vm0 = vmmov 0   ;;  %vm39_vm1 = vcmask 261120   ;;  %s144_s1 = inlined_call_operand.vmem [shape: bf16[32,128], index: 1, kind: input, shape index: {}]   ;;  %s145_s0 = inlined_call_operand.vmem [shape: bf16[8,32], index: 0, kind: input, shape index: {}]   ;;  %s146_s2 = inlined_call_operand.vmem [shape: f32[1,128], index: 2, kind: input, shape index: {}]   ;;  %s147_s3 = inlined_call_operand.vmem [shape: f32[8,128], index: 3, kind: output, shape index: {}]  }
   0x1   :  { %95 = vmatprep.subr.bf16.mxu0 %v107_v0  ;;  %v105_v1 = vld [vmem:[%s144_s1] sm:$0xff]   ;;  %99 = vmatprep.mubr.msk.bf16.mxu0 %vm108_vm0, %v107_v0  ;;  %v106_v2 = vld [vmem:[%s144_s1 + $0x8] sm:$0xff]  }
   0x2   :  { %96 = vmatpush3.bf16.msra.mxu0 %v105_v1  ;;  %v15_v3 = vld [vmem:[%s145_s0] sm:$0xf] }
   0x3   :  { %97 = vmatprep.subr.bf16.mxu0 %v107_v0  ;;  %v88_v4 = vld [vmem:[%s146_s2] ss:$0 sm:$0xff] }
   0x6   :  { %98 = vmatpush3.bf16.msra.mxu0 %v106_v2 }
   0x9   :  { %100 = vmatmul.mubr.msk.bf16.vlgmr.msra.gmra.mrb[0].mxu0 %vm39_vm1, %v15_v3 }
  0xdc   :  { %v77_v5 = vpop.f32.mrb[0].mxu0 }
  0xdd   :  { %v78_v6 = vadd.f32 %v88_v4, %v77_v5  ;;  %v101_v7 = vpop.f32.mrb[1].mxu0 }
  0xde   :  { %v80_v8 = vpop.f32.mrb[2].mxu0 }
  0xdf   :  { %83 = vst [vmem:[%s147_s3] sm:$0xff] %v78_v6  ;;  %v102_v9 = vpop.f32.mrb[3].mxu0 }

// kernel: pit_forward.24
= control target key start
LH: loop header
LB: loop body
LE: loop exit
PB: predicated region body
PF: predicated region fallthrough
CT: control target
= control target key end

     0   :  { %vm23_vm0 = vcmask 523264   ;;  %v211_v15 = vmov 0.0   ;;  %vm212_vm1 = vmmov 0   ;;  %s278_s0 = inlined_call_operand.vmem [shape: f32[16,64], index: 0, kind: input, shape index: {}]   ;;  %s279_s1 = inlined_call_operand.vmem [shape: bf16[64,128], index: 1, kind: input, shape index: {}]   ;;  %s280_s3 = inlined_call_operand.vmem [shape: f32[1,64], index: 3, kind: input, shape index: {}]   ;;  %s281_s4 = inlined_call_operand.vmem [shape: f32[1,64], index: 4, kind: input, shape index: {}]   ;;  %s282_s2 = inlined_call_operand.vmem [shape: f32[1,128], index: 2, kind: input, shape index: {}]   ;;  %s283_s5 = inlined_call_operand.vmem [shape: bf16[16,128], index: 5, kind: output, shape index: {}]  }
   0x1   :  { %v21_v0 = vld [vmem:[%s278_s0] sm:$0xff]  ;;  %v22_v1 = vld [vmem:[%s278_s0 + $0x8] sm:$0xff]  ;;  %189 = vmatprep.subr.bf16.mxu0 %v211_v15  ;;  %v205_v17 = vld [vmem:[%s279_s1 + $0x10] sm:$0xff]   ;;  %197 = vmatprep.mubr.msk.bf16.mxu0 %vm212_vm1, %v211_v15 }
   0x2   :  { %v24_v2 = vsel %vm23_vm0, %v21_v0, 0.0  ;;  %v27_v3 = vsel %vm23_vm0, %v22_v1, 0.0  ;;  %v203_v14 = vld [vmem:[%s279_s1] sm:$0xff]   ;;  %v204_v16 = vld [vmem:[%s279_s1 + $0x8] sm:$0xff]   ;;  %v206_v18 = vld [vmem:[%s279_s1 + $0x18] sm:$0xff]  }
   0x3   :  { %25 = vadd.xlane.f32.xlu0 %v24_v2  ;;  %190 = vmatpush3.bf16.msra.mxu0 %v203_v14  ;;  %v167_v27 = vld [vmem:[%s280_s3] ss:$0 sm:$0xff] }
   0x4   :  { %191 = vmatprep.subr.bf16.mxu0 %v211_v15  ;;  %v168_v31 = vld [vmem:[%s281_s4] ss:$0 sm:$0xff] }
   0x5   :  { %v169_v36 = vld [vmem:[%s282_s2] ss:$0 sm:$0xff] }
   0x7   :  { %28 = vadd.xlane.f32.xlu0 %v27_v3  ;;  %192 = vmatpush3.bf16.msra.mxu0 %v204_v16 }
   0x8   :  { %193 = vmatprep.subr.bf16.mxu0 %v211_v15 }
   0xb   :  { %194 = vmatpush3.bf16.msra.mxu0 %v205_v17 }
   0xc   :  { %195 = vmatprep.subr.bf16.mxu0 %v211_v15 }
   0xf   :  { %196 = vmatpush3.bf16.msra.mxu0 %v206_v18 }
  0x90   :  { %v26_v4 = vpop.xlane.xlu0 %25 }
  0x91   :  { %v31_v5 = vmul.f32 0.015625, %v26_v4 }
  0x93   :  { %v33_v6 = vsub.f32 %v21_v0, %v31_v5 }
  0x94   :  { %v29_v7 = vpop.xlane.xlu0 %28 }
  0x95   :  { %v32_v8 = vmul.f32 0.015625, %v29_v7  ;;  %v35_v9 = vmul.f32 %v33_v6, %v33_v6 }
  0x97   :  { %v34_v10 = vsub.f32 %v22_v1, %v32_v8  ;;  %v37_v11 = vsel %vm23_vm0, %v35_v9, 0.0 }
  0x98   :  { %38 = vadd.xlane.f32.xlu1 %v37_v11 }
  0x99   :  { %v36_v12 = vmul.f32 %v34_v10, %v34_v10 }
  0x9b   :  { %v40_v13 = vsel %vm23_vm0, %v36_v12, 0.0 }
  0x9c   :  { %41 = vadd.xlane.f32.xlu1 %v40_v13 }
 0x125   :  { %v39_v19 = vpop.xlane.xlu1 %38 }
 0x126   :  { %v43_v20 = vmul.f32 0.015625, %v39_v19 }
 0x128   :  { %v45_v21 = vadd.f32 1e-05, %v43_v20 }
 0x129   :  { %v42_v22 = vpop.xlane.xlu1 %41 }
 0x12a   :  { %207 = vrsqrt.f32 %v45_v21  ;;  %v44_v23 = vmul.f32 0.015625, %v42_v22 }
 0x12c   :  { %v46_v24 = vadd.f32 1e-05, %v44_v23 }
 0x12e   :  { %209 = vrsqrt.f32 %v46_v24 }
 0x134   :  { %v208_v25 = vpop.eup %207 }
 0x135   :  { %v49_v26 = vmul.f32 %v208_v25, %v33_v6 }
 0x137   :  { %v58_v30 = vmul.f32 %v167_v27, %v49_v26 }
 0x138   :  { %v210_v28 = vpop.eup %209 }
 0x139   :  { %v50_v29 = vmul.f32 %v210_v28, %v34_v10  ;;  %v67_v33 = vadd.f32 %v168_v31, %v58_v30 }
 0x13b   :  { %v59_v32 = vmul.f32 %v167_v27, %v50_v29 }
 0x13d   :  { %v68_v34 = vadd.f32 %v168_v31, %v59_v32 }
 0x13f   :  { %v69_v35 = vpack.c.bf16 %v68_v34, %v67_v33 }
 0x141   :  { %198 = vmatmul.mubr.msk.bf16.vlgmr.msra.gmra.mrb[0].mxu0 %vm23_vm0, %v69_v35 }
 0x214   :  { %v146_v37 = vpop.f32.mrb[0].mxu0 }
 0x215   :  { %v199_v38 = vpop.f32.mrb[1].mxu0  ;;  %v147_v40 = vadd.f32 %v169_v36, %v146_v37 }
 0x216   :  { %v149_v39 = vpop.f32.mrb[2].mxu0 }
 0x217   :  { %v150_v41 = vadd.f32 %v169_v36, %v149_v39  ;;  %v200_v42 = vpop.f32.mrb[3].mxu0 }
 0x219   :  { %v182_v43 = vpack.c.bf16 %v150_v41, %v147_v40 }
 0x21b   :  { %183 = vst [vmem:[%s283_s5] sm:$0xff] %v182_v43  }

// kernel: pit_forward.25
= control target key start
LH: loop header
LB: loop body
LE: loop exit
PB: predicated region body
PF: predicated region fallthrough
CT: control target
= control target key end

     0   :  { %s506_s6 = smov 0   ;;  %s552_s0 = inlined_call_operand.vmem [shape: bf16[2,5,96], index: 0, kind: input, shape index: {}]   ;;  %s553_s1 = inlined_call_operand.vmem [shape: bf16[2,5,32], index: 1, kind: output, shape index: {}]  }
   0x1 LB: > { %s407_s7 = sadd.s32 4294967295, %s485_s6   ;;  %p411_p0 = scmp.ge.s32.totalorder %s485_s6, 1  ;;  %s485_s6 = sphi %s506_s6, %s11_s6  }
   0x2   : > { %p86_p1 = scmp.lt.s32.totalorder %s485_s6, 3 }
   0x4   : > { %p87_p2 = pnand %p411_p0, %p86_p1 }
   0x5   : > { %p104_p3 = scmp.lt.s32.totalorder (!%p87_p2), %s407_s7, 1  ;;  %v487_v0 = vmov (!%p87_p2), 0.0   ;;  %vm488_vm0 = vmmov (!%p87_p2), 0   ;;  %s489_s12 = smov (!%p87_p2), 96   ;;  %vm119_vm1 = vcmask (!%p87_p2), 130048   ;;  %vm166_vm2 = vcmask (!%p87_p2), 36864  }
   0x6   : > { %90 = sbr.rel (%p87_p2) target bundleno = 1538 (0x602), region = 24  ;;  %429 = vmatprep.subr.bf16.mxu0 (!%p87_p2), %v487_v0  ;;  %431 = vmatprep.mubr.msk.bf16.mxu0 (!%p87_p2), %vm488_vm0, %v487_v0  ;;  %s490_s13 = smov (!%p87_p2), 64   ;;  %vm185_vm3 = vcmask (!%p87_p2), 1041408   ;;  %vm186_vm4 = vcmask (!%p87_p2), 1042432   ;;  %v491_v11 = vmov (!%p87_p2), 65535   ;;  %vm181_vm5 = vcmask (!%p87_p2), 39936  }
   0x7   : > { %435 = vmatprep.subr.bf16.mxu1 (!%p87_p2), %v487_v0  ;;  %437 = vmatprep.mubr.msk.bf16.mxu1 (!%p87_p2), %vm488_vm0, %v487_v0  ;;  %v187_v12 = vsel (!%p87_p2), %vm185_vm3, 4294967295, %v491_v11  ;;  %s492_s14 = smov (!%p87_p2), 80   ;;  %s493_s15 = smov (!%p87_p2), 112   ;;  %vm348_vm6 = vcmask (!%p87_p2), 256000   ;;  %vm349_vm7 = vsmask.f32 (!%p87_p2), 2304 }
   0x8   : > { %v188_v13 = vsel (!%p87_p2), %vm186_vm4, %v187_v12, 0  ;;  %s494_s16 = smov (!%p87_p2), 48   ;;  %s495_s17 = smov (!%p87_p2), 16   ;;  %vm350_vm8 = vmand (!%p87_p2), %vm348_vm6, %vm349_vm7 }
   0xd   : > { %s555_s7 = smov (!%p104_p3, %s407_s7), 1 }
   0xe   : > { %s412_s8 = sshll.u32 %s555_s7, 2 }
   0xf   : > { %s107_s11 = scalar_lea.vmem %s552_s0, %s412_s8  ;;  %s111_s20 = scalar_lea.vmem %s553_s1, %s412_s8 }
  0x10   : > { %v113_v1 = vld [vmem:[%s107_s11] sm:$0x7] }
  0x11   : > { %v524_v2 = vcombine.low %v113_v1, %v113_v1  ;;  %v351_v52 = vld [vmem:[%s111_s20] sm:$0x7] }
  0x13   : > { %117 = vrot.lane.b32.xlu0 %v524_v2, %s489_s12  ;;  %179 = vrot.lane.b32.xlu1 %v524_v2, %s490_s13 }
  0x85   : > { %v118_v3 = vpop.permute.xlu0 %117  ;;  %v180_v10 = vpop.permute.xlu1 %179 }
  0x86   : > { %v124_v4 = vsel %vm119_vm1, %v118_v3, 0  ;;  %v190_v14 = vand.u32 %v188_v13, %v180_v10 }
  0x87   : > { %430 = vmatpush3.bf16.xpose.msra.mxu0 %v124_v4 }
  0x88   : > { %447 = vmatprep.subr.bf16.mxu0 %v487_v0  ;;  %436 = vmatpush3.bf16.msra.mxu1 %v190_v14 }
  0x89   : > { %441 = vmatprep.subr.bf16.mxu1 %v487_v0 }
  0x8e   : > { %432 = vmatmul.mubr.msk.bf16.vlgmr.msra.gmra.mrb[0].mxu0 %vm119_vm1, %v113_v1 }
  0x8f   : > { %449 = vmatprep.mubr.msk.bf16.mxu0 %vm488_vm0, %v487_v0 }
 0x161   : > { %v160_v5 = vpop.f32.mrb[0].mxu0 }
 0x162   : > { %v433_v6 = vpop.f32.mrb[1].mxu0  ;;  %v167_v7 = vsel %vm166_vm2, %v160_v5, -inf }
 0x163   : > { %168 = vmax.xlane.f32.xlu0 %v167_v7  ;;  %v163_v8 = vpop.f32.mrb[2].mxu0 }
 0x164   : > { %v434_v9 = vpop.f32.mrb[3].mxu0 }
 0x1f0   : > { %v169_v15 = vpop.xlane.xlu0 %168 }
 0x1f1   : > { %v170_v16 = vsub.f32 %v160_v5, %v169_v15 }
 0x1f3   : > { %v171_v17 = vmul.f32 1.442695, %v170_v16 }
 0x1f5   : > { %471 = vpow2.f32 %v171_v17 }
 0x1ff   : > { %v472_v18 = vpop.eup %471 }
 0x200   : > { %v173_v19 = vsel %vm166_vm2, %v472_v18, 0.0 }
 0x201   : > { %174 = vadd.xlane.f32.xlu1 %v173_v19 }
 0x212   : > { %234 = vrot.lane.b32.xlu1 %v524_v2, %s492_s14 }
 0x216   : > { %232 = vrot.lane.b32.xlu1 %v524_v2, %s493_s15 }
 0x28e   : > { %v175_v20 = vpop.xlane.xlu1 %174 }
 0x28f   : > { %473 = vrcp.f32 %v175_v20 }
 0x292   : > { %v235_v22 = vpop.permute.xlu1 %234 }
 0x293   : > { %v240_v24 = vsel %vm119_vm1, %v235_v22, 0 }
 0x296   : > { %v233_v26 = vpop.permute.xlu1 %232 }
 0x299   : > { %v474_v21 = vpop.eup %473 }
 0x29a   : > { %v177_v23 = vmul.f32 %v474_v21, %v472_v18 }
 0x29c   : > { %v178_v25 = vpack.c.bf16 %v177_v23, %v177_v23 }
 0x29e   : > { %438 = vmatmul.mubr.msk.bf16.vlgmr.msra.gmra.mrb[0].mxu1 %vm181_vm5, %v178_v25 }
 0x29f   : > { %442 = vmatpush3.bf16.xpose.msra.mxu1 %v240_v24  ;;  %443 = vmatprep.mubr.msk.bf16.mxu1 %vm488_vm0, %v487_v0 }
 0x2a6   : > { %444 = vmatmul.mubr.msk.bf16.vlgmr.msra.gmra.mrb[4].mxu1 %vm119_vm1, %v233_v26 }
 0x371   : > { %v226_v27 = vpop.f32.mrb[0].mxu1 }
 0x372   : > { %v439_v28 = vpop.f32.mrb[1].mxu1 }
 0x373   : > { %v229_v29 = vpop.f32.mrb[2].mxu1 }
 0x374   : > { %v440_v30 = vpop.f32.mrb[3].mxu1 }
 0x379   : > { %v276_v31 = vpop.f32.mrb[4].mxu1 }
 0x37a   : > { %v445_v32 = vpop.f32.mrb[5].mxu1  ;;  %v282_v33 = vsel %vm166_vm2, %v276_v31, -inf }
 0x37b   : > { %283 = vmax.xlane.f32.xlu1 %v282_v33  ;;  %v279_v34 = vpop.f32.mrb[6].mxu1 }
 0x37c   : > { %v446_v35 = vpop.f32.mrb[7].mxu1 }
 0x408   : > { %v284_v36 = vpop.xlane.xlu1 %283 }
 0x409   : > { %v285_v37 = vsub.f32 %v276_v31, %v284_v36 }
 0x40b   : > { %v286_v38 = vmul.f32 1.442695, %v285_v37 }
 0x40d   : > { %475 = vpow2.f32 %v286_v38 }
 0x417   : > { %v476_v39 = vpop.eup %475 }
 0x418   : > { %v288_v40 = vsel %vm166_vm2, %v476_v39, 0.0 }
 0x419   : > { %289 = vadd.xlane.f32.xlu0 %v288_v40 }
 0x42f   : > { %294 = vrot.lane.b32.xlu0 %v524_v2, %s494_s16 }
 0x4a6   : > { %v290_v41 = vpop.xlane.xlu0 %289 }
 0x4a7   : > { %477 = vrcp.f32 %v290_v41 }
 0x4aa   : > { %v295_v42 = vpop.permute.xlu0 %294 }
 0x4ab   : > { %v300_v43 = vand.u32 %v295_v42, %v188_v13 }
 0x4ad   : > { %448 = vmatpush3.bf16.msra.mxu0 %v300_v43 }
 0x4b1   : > { %v478_v44 = vpop.eup %477 }
 0x4b2   : > { %v292_v45 = vmul.f32 %v478_v44, %v476_v39 }
 0x4b4   : > { %v293_v46 = vpack.c.bf16 %v292_v45, %v292_v45 }
 0x4b6   : > { %450 = vmatmul.mubr.msk.bf16.vlgmr.msra.gmra.mrb[4].mxu0 %vm181_vm5, %v293_v46 }
 0x589   : > { %v336_v47 = vpop.f32.mrb[4].mxu0 }
 0x58a   : > { %343 = vrot.lane.b32.xlu0 %v336_v47, %s495_s17  ;;  %v451_v48 = vpop.f32.mrb[5].mxu0 }
 0x58b   : > { %v339_v49 = vpop.f32.mrb[6].mxu0 }
 0x58c   : > { %v452_v50 = vpop.f32.mrb[7].mxu0 }
 0x5fc   : > { %v344_v51 = vpop.permute.xlu0 %343 }
 0x5fd   : > { %v346_v53 = vsel %vm119_vm1, %v226_v27, %v344_v51 }
 0x5fe   : > { %v347_v54 = vpack.c.bf16 %v346_v53, %v346_v53 }
 0x600   : > { %v352_v55 = vsel %vm350_vm8, %v347_v54, %v351_v52 }
 0x601   : > { %353 = vst [vmem:[%s111_s20] sm:$0x7] %v352_v55 }
 0x602 PF: > { %s11_s6 = sadd.s32 1, %s485_s6  }
 0x603   : > { %p8_p4 = scmp.ge.s32.totalorder %s11_s6, 4  }
 0x605   :  { %10 = sbr.rel (!%p8_p4) target bundleno = 1 (0x1), region = 54 }

// kernel: pit_forward.26
= control target key start
LH: loop header
LB: loop body
LE: loop exit
PB: predicated region body
PF: predicated region fallthrough
CT: control target
= control target key end

     0   :  { %v124_v0 = vmov 0.0   ;;  %vm125_vm0 = vmmov 0   ;;  %vm48_vm1 = vcmask 261120   ;;  %s175_s1 = inlined_call_operand.vmem [shape: bf16[32,128], index: 1, kind: input, shape index: {}]   ;;  %s176_s0 = inlined_call_operand.vmem [shape: bf16[16,32], index: 0, kind: input, shape index: {}]   ;;  %s177_s2 = inlined_call_operand.vmem [shape: f32[1,128], index: 2, kind: input, shape index: {}]   ;;  %s178_s3 = inlined_call_operand.vmem [shape: f32[16,128], index: 3, kind: input, shape index: {}]   ;;  %s179_s4 = inlined_call_operand.vmem [shape: f32[16,128], index: 4, kind: output, shape index: {}]  }
   0x1   :  { %111 = vmatprep.subr.bf16.mxu0 %v124_v0  ;;  %v121_v1 = vld [vmem:[%s175_s1] sm:$0xff]   ;;  %115 = vmatprep.mubr.msk.bf16.mxu0 %vm125_vm0, %v124_v0  ;;  %v122_v2 = vld [vmem:[%s175_s1 + $0x8] sm:$0xff]  }
   0x2   :  { %112 = vmatpush3.bf16.msra.mxu0 %v121_v1  ;;  %v123_v3 = vld [vmem:[%s176_s0] sm:$0xff]   ;;  %v94_v10 = vld [vmem:[%s178_s3 + $0x8] sm:$0xff] }
   0x3   :  { %113 = vmatprep.subr.bf16.mxu0 %v124_v0  ;;  %v103_v4 = vld [vmem:[%s177_s2] ss:$0 sm:$0xff] }
   0x4   :  { %v93_v6 = vld [vmem:[%s178_s3] sm:$0xff] }
   0x6   :  { %114 = vmatpush3.bf16.msra.mxu0 %v122_v2 }
   0x9   :  { %116 = vmatmul.mubr.msk.bf16.vlgmr.msra.gmra.mrb[0].mxu0 %vm48_vm1, %v123_v3 }
  0xdc   :  { %v86_v5 = vpop.f32.mrb[0].mxu0 }
  0xdd   :  { %v87_v7 = vadd.f32 %v103_v4, %v86_v5  ;;  %v117_v8 = vpop.f32.mrb[1].mxu0 }
  0xde   :  { %v89_v9 = vpop.f32.mrb[2].mxu0 }
  0xdf   :  { %v95_v11 = vadd.f32 %v93_v6, %v87_v7  ;;  %v90_v12 = vadd.f32 %v103_v4, %v89_v9  ;;  %v118_v13 = vpop.f32.mrb[3].mxu0 }
  0xe1   :  { %97 = vst [vmem:[%s179_s4] sm:$0xff] %v95_v11  ;;  %v96_v14 = vadd.f32 %v94_v10, %v90_v12 }
  0xe3   :  { %98 = vst [vmem:[%s179_s4 + $0x8] sm:$0xff] %v96_v14 }

// kernel: pit_forward.27
= control target key start
LH: loop header
LB: loop body
LE: loop exit
PB: predicated region body
PF: predicated region fallthrough
CT: control target
= control target key end

     0   :  { %vm23_vm0 = vcmask 523264   ;;  %v233_v15 = vmov 0.0   ;;  %vm234_vm1 = vmmov 0   ;;  %s300_s0 = inlined_call_operand.vmem [shape: f32[16,64], index: 0, kind: input, shape index: {}]   ;;  %s301_s1 = inlined_call_operand.vmem [shape: bf16[64,128], index: 1, kind: input, shape index: {}]   ;;  %s302_s3 = inlined_call_operand.vmem [shape: f32[1,64], index: 3, kind: input, shape index: {}]   ;;  %s303_s4 = inlined_call_operand.vmem [shape: f32[1,64], index: 4, kind: input, shape index: {}]   ;;  %s304_s2 = inlined_call_operand.vmem [shape: f32[1,128], index: 2, kind: input, shape index: {}]   ;;  %s305_s5 = inlined_call_operand.vmem [shape: bf16[16,128], index: 5, kind: output, shape index: {}]  }
   0x1   :  { %v21_v0 = vld [vmem:[%s300_s0] sm:$0xff]  ;;  %v22_v1 = vld [vmem:[%s300_s0 + $0x8] sm:$0xff]  ;;  %207 = vmatprep.subr.bf16.mxu0 %v233_v15  ;;  %v223_v17 = vld [vmem:[%s301_s1 + $0x10] sm:$0xff]   ;;  %215 = vmatprep.mubr.msk.bf16.mxu0 %vm234_vm1, %v233_v15 }
   0x2   :  { %v24_v2 = vsel %vm23_vm0, %v21_v0, 0.0  ;;  %v27_v3 = vsel %vm23_vm0, %v22_v1, 0.0  ;;  %v221_v14 = vld [vmem:[%s301_s1] sm:$0xff]   ;;  %v222_v16 = vld [vmem:[%s301_s1 + $0x8] sm:$0xff]   ;;  %v224_v18 = vld [vmem:[%s301_s1 + $0x18] sm:$0xff]  }
   0x3   :  { %25 = vadd.xlane.f32.xlu0 %v24_v2  ;;  %208 = vmatpush3.bf16.msra.mxu0 %v221_v14  ;;  %v185_v27 = vld [vmem:[%s302_s3] ss:$0 sm:$0xff] }
   0x4   :  { %209 = vmatprep.subr.bf16.mxu0 %v233_v15  ;;  %v186_v31 = vld [vmem:[%s303_s4] ss:$0 sm:$0xff] }
   0x5   :  { %v187_v36 = vld [vmem:[%s304_s2] ss:$0 sm:$0xff] }
   0x7   :  { %28 = vadd.xlane.f32.xlu0 %v27_v3  ;;  %210 = vmatpush3.bf16.msra.mxu0 %v222_v16 }
   0x8   :  { %211 = vmatprep.subr.bf16.mxu0 %v233_v15 }
   0xb   :  { %212 = vmatpush3.bf16.msra.mxu0 %v223_v17 }
   0xc   :  { %213 = vmatprep.subr.bf16.mxu0 %v233_v15 }
   0xf   :  { %214 = vmatpush3.bf16.msra.mxu0 %v224_v18 }
  0x90   :  { %v26_v4 = vpop.xlane.xlu0 %25 }
  0x91   :  { %v31_v5 = vmul.f32 0.015625, %v26_v4 }
  0x93   :  { %v33_v6 = vsub.f32 %v21_v0, %v31_v5 }
  0x94   :  { %v29_v7 = vpop.xlane.xlu0 %28 }
  0x95   :  { %v32_v8 = vmul.f32 0.015625, %v29_v7  ;;  %v35_v9 = vmul.f32 %v33_v6, %v33_v6 }
  0x97   :  { %v34_v10 = vsub.f32 %v22_v1, %v32_v8  ;;  %v37_v11 = vsel %vm23_vm0, %v35_v9, 0.0 }
  0x98   :  { %38 = vadd.xlane.f32.xlu1 %v37_v11 }
  0x99   :  { %v36_v12 = vmul.f32 %v34_v10, %v34_v10 }
  0x9b   :  { %v40_v13 = vsel %vm23_vm0, %v36_v12, 0.0 }
  0x9c   :  { %41 = vadd.xlane.f32.xlu1 %v40_v13 }
 0x125   :  { %v39_v19 = vpop.xlane.xlu1 %38 }
 0x126   :  { %v43_v20 = vmul.f32 0.015625, %v39_v19 }
 0x128   :  { %v45_v21 = vadd.f32 1e-05, %v43_v20 }
 0x129   :  { %v42_v22 = vpop.xlane.xlu1 %41 }
 0x12a   :  { %225 = vrsqrt.f32 %v45_v21  ;;  %v44_v23 = vmul.f32 0.015625, %v42_v22 }
 0x12c   :  { %v46_v24 = vadd.f32 1e-05, %v44_v23 }
 0x12e   :  { %227 = vrsqrt.f32 %v46_v24 }
 0x134   :  { %v226_v25 = vpop.eup %225 }
 0x135   :  { %v49_v26 = vmul.f32 %v226_v25, %v33_v6 }
 0x137   :  { %v58_v30 = vmul.f32 %v185_v27, %v49_v26 }
 0x138   :  { %v228_v28 = vpop.eup %227 }
 0x139   :  { %v50_v29 = vmul.f32 %v228_v28, %v34_v10  ;;  %v67_v33 = vadd.f32 %v186_v31, %v58_v30 }
 0x13b   :  { %v59_v32 = vmul.f32 %v185_v27, %v50_v29 }
 0x13d   :  { %v68_v34 = vadd.f32 %v186_v31, %v59_v32 }
 0x13f   :  { %v69_v35 = vpack.c.bf16 %v68_v34, %v67_v33 }
 0x141   :  { %216 = vmatmul.mubr.msk.bf16.vlgmr.msra.gmra.mrb[0].mxu0 %vm23_vm0, %v69_v35 }
 0x214   :  { %v146_v37 = vpop.f32.mrb[0].mxu0 }
 0x215   :  { %v147_v38 = vadd.f32 %v187_v36, %v146_v37  ;;  %v217_v39 = vpop.f32.mrb[1].mxu0 }
 0x216   :  { %v149_v40 = vpop.f32.mrb[2].mxu0 }
 0x217   :  { %v153_v41 = vmul.f32 %v147_v38, %v147_v38  ;;  %v150_v42 = vadd.f32 %v187_v36, %v149_v40  ;;  %v218_v43 = vpop.f32.mrb[3].mxu0 }
 0x219   :  { %v155_v44 = vmul.f32 %v153_v41, %v147_v38  ;;  %v154_v45 = vmul.f32 %v150_v42, %v150_v42 }
 0x21b   :  { %v157_v46 = vmul.f32 0.044715, %v155_v44  ;;  %v156_v47 = vmul.f32 %v154_v45, %v150_v42 }
 0x21d   :  { %v159_v48 = vadd.f32 %v157_v46, %v147_v38  ;;  %v158_v49 = vmul.f32 0.044715, %v156_v47 }
 0x21f   :  { %v161_v50 = vmul.f32 0.7978846, %v159_v48  ;;  %v160_v51 = vadd.f32 %v158_v49, %v150_v42 }
 0x221   :  { %229 = vtanh.f32 %v161_v50  ;;  %v162_v52 = vmul.f32 0.7978846, %v160_v51 }
 0x223   :  { %231 = vtanh.f32 %v162_v52 }
 0x22b   :  { %v230_v53 = vpop.eup %229 }
 0x22c   :  { %v165_v54 = vadd.f32 1.0, %v230_v53 }
 0x22d   :  { %v232_v55 = vpop.eup %231 }
 0x22e   :  { %v167_v56 = vmul.f32 0.5, %v165_v54  ;;  %v166_v57 = vadd.f32 1.0, %v232_v55 }
 0x230   :  { %v168_v58 = vmul.f32 0.5, %v166_v57  ;;  %v169_v59 = vmul.f32 %v167_v56, %v147_v38 }
 0x232   :  { %v170_v60 = vmul.f32 %v168_v58, %v150_v42 }
 0x234   :  { %v200_v61 = vpack.c.bf16 %v170_v60, %v169_v59 }
 0x236   :  { %201 = vst [vmem:[%s305_s5] sm:$0xff] %v200_v61  }

// kernel: pit_forward.28
= control target key start
LH: loop header
LB: loop body
LE: loop exit
PB: predicated region body
PF: predicated region fallthrough
CT: control target
= control target key end

     0   :  { %v198_v0 = vmov 0.0   ;;  %vm199_vm0 = vmmov 0   ;;  %s267_s1 = inlined_call_operand.vmem [shape: bf16[128,128], index: 1, kind: input, shape index: {}]   ;;  %s268_s0 = inlined_call_operand.vmem [shape: bf16[16,128], index: 0, kind: input, shape index: {}]   ;;  %s269_s2 = inlined_call_operand.vmem [shape: f32[1,128], index: 2, kind: input, shape index: {}]   ;;  %s270_s3 = inlined_call_operand.vmem [shape: f32[16,128], index: 3, kind: input, shape index: {}]   ;;  %s271_s4 = inlined_call_operand.vmem [shape: f32[16,128], index: 4, kind: output, shape index: {}]  }
   0x1   :  { %167 = vmatprep.subr.bf16.mxu0 %v198_v0  ;;  %v189_v1 = vld [vmem:[%s267_s1] sm:$0xff]   ;;  %183 = vmatprep.mubr.msk.bf16.mxu0 %vm199_vm0, %v198_v0  ;;  %v190_v2 = vld [vmem:[%s267_s1 + $0x8] sm:$0xff]   ;;  %v191_v3 = vld [vmem:[%s267_s1 + $0x10] sm:$0xff]  }
   0x2   :  { %168 = vmatpush3.bf16.msra.mxu0 %v189_v1  ;;  %v192_v4 = vld [vmem:[%s267_s1 + $0x18] sm:$0xff]   ;;  %v193_v5 = vld [vmem:[%s267_s1 + $0x20] sm:$0xff]   ;;  %v194_v6 = vld [vmem:[%s267_s1 + $0x28] sm:$0xff]  }
   0x3   :  { %169 = vmatprep.subr.bf16.mxu0 %v198_v0  ;;  %v195_v7 = vld [vmem:[%s267_s1 + $0x30] sm:$0xff]   ;;  %v196_v8 = vld [vmem:[%s267_s1 + $0x38] sm:$0xff]   ;;  %v197_v9 = vld [vmem:[%s268_s0] sm:$0xff]  }
   0x4   :  { %v148_v10 = vld [vmem:[%s269_s2] ss:$0 sm:$0xff]  ;;  %v139_v16 = vld [vmem:[%s270_s3 + $0x8] sm:$0xff] }
   0x5   :  { %v138_v12 = vld [vmem:[%s270_s3] sm:$0xff] }
   0x6   :  { %170 = vmatpush3.bf16.msra.mxu0 %v190_v2 }
   0x7   :  { %171 = vmatprep.subr.bf16.mxu0 %v198_v0 }
   0xa   :  { %172 = vmatpush3.bf16.msra.mxu0 %v191_v3 }
   0xb   :  { %173 = vmatprep.subr.bf16.mxu0 %v198_v0 }
   0xe   :  { %174 = vmatpush3.bf16.msra.mxu0 %v192_v4 }
   0xf   :  { %175 = vmatprep.subr.bf16.mxu0 %v198_v0 }
  0x12   :  { %176 = vmatpush3.bf16.msra.mxu0 %v193_v5 }
  0x13   :  { %177 = vmatprep.subr.bf16.mxu0 %v198_v0 }
  0x16   :  { %178 = vmatpush3.bf16.msra.mxu0 %v194_v6 }
  0x17   :  { %179 = vmatprep.subr.bf16.mxu0 %v198_v0 }
  0x1a   :  { %180 = vmatpush3.bf16.msra.mxu0 %v195_v7 }
  0x1b   :  { %181 = vmatprep.subr.bf16.mxu0 %v198_v0 }
  0x1e   :  { %182 = vmatpush3.bf16.msra.mxu0 %v196_v8 }
  0x21   :  { %184 = vmatmul.mubr.bf16.vlgmr.msra.gmra.mrb[0].mxu0 %v197_v9 }
  0xf4   :  { %v131_v11 = vpop.f32.mrb[0].mxu0 }
  0xf5   :  { %v132_v13 = vadd.f32 %v148_v10, %v131_v11  ;;  %v185_v14 = vpop.f32.mrb[1].mxu0 }
  0xf6   :  { %v134_v15 = vpop.f32.mrb[2].mxu0 }
  0xf7   :  { %v140_v17 = vadd.f32 %v138_v12, %v132_v13  ;;  %v135_v18 = vadd.f32 %v148_v10, %v134_v15  ;;  %v186_v19 = vpop.f32.mrb[3].mxu0 }
  0xf9   :  { %142 = vst [vmem:[%s271_s4] sm:$0xff] %v140_v17  ;;  %v141_v20 = vadd.f32 %v139_v16, %v135_v18 }
  0xfb   :  { %143 = vst [vmem:[%s271_s4 + $0x8] sm:$0xff] %v141_v20 }

// kernel: pit_forward.29
= control target key start
LH: loop header
LB: loop body
LE: loop exit
PB: predicated region body
PF: predicated region fallthrough
CT: control target
= control target key end

     0   :  { %vm21_vm0 = vcmask 523264   ;;  %v194_v12 = vmov 0.0|0.0   ;;  %vm195_vm1 = vmmov 0   ;;  %v196_v13 = vmov 0.0   ;;  %s269_s0 = inlined_call_operand.vmem [shape: f32[8,64], index: 0, kind: input, shape index: {}]   ;;  %s270_s1 = inlined_call_operand.vmem [shape: f32[64,128], index: 1, kind: input, shape index: {}]   ;;  %s271_s3 = inlined_call_operand.vmem [shape: f32[1,64], index: 3, kind: input, shape index: {}]   ;;  %s272_s4 = inlined_call_operand.vmem [shape: f32[1,64], index: 4, kind: input, shape index: {}]   ;;  %s273_s2 = inlined_call_operand.vmem [shape: f32[1,128], index: 2, kind: input, shape index: {}]   ;;  %s274_s5 = inlined_call_operand.vmem [shape: f32[8,128], index: 5, kind: output, shape index: {}]  }
   0x1   :  { %v20_v0 = vld [vmem:[%s269_s0] sm:$0xff]  ;;  %v53_v8 = vld [vmem:[%s270_s1 + $0x8] sm:$0xff]  ;;  %v54_v10 = vld [vmem:[%s270_s1 + $0x10] sm:$0xff]  ;;  %177 = vmatprep.subr.bf16.mxu0 %v194_v12  ;;  %174 = vmatprep.mubr.msk.f32.mxu0 %vm195_vm1, %v196_v13 }
   0x2   :  { %v22_v1 = vsel %vm21_vm0, %v20_v0, 0.0  ;;  %v52_v7 = vld [vmem:[%s270_s1] sm:$0xff]  ;;  %v55_v11 = vld [vmem:[%s270_s1 + $0x18] sm:$0xff]  ;;  %v57_v16 = vld [vmem:[%s270_s1 + $0x28] sm:$0xff] }
   0x3   :  { %23 = vadd.xlane.f32.xlu0 %v22_v1  ;;  %v178_v9 = vpack.c.bf16 %v53_v8, %v52_v7  ;;  %v181_v14 = vpack.c.bf16 %v55_v11, %v54_v10  ;;  %v56_v15 = vld [vmem:[%s270_s1 + $0x20] sm:$0xff]  ;;  %v58_v18 = vld [vmem:[%s270_s1 + $0x30] sm:$0xff]  ;;  %v59_v19 = vld [vmem:[%s270_s1 + $0x38] sm:$0xff] }
   0x4   :  { %v184_v17 = vpack.c.bf16 %v57_v16, %v56_v15  ;;  %v187_v20 = vpack.c.bf16 %v59_v19, %v58_v18  ;;  %v145_v25 = vld [vmem:[%s271_s3] ss:$0 sm:$0xff] }
   0x5   :  { %179 = vmatpush3.bf16.msra.mxu0 %v178_v9  ;;  %v146_v27 = vld [vmem:[%s272_s4] ss:$0 sm:$0xff] }
   0x6   :  { %180 = vmatprep.subr.bf16.mxu0 %v194_v12  ;;  %v147_v30 = vld [vmem:[%s273_s2] ss:$0 sm:$0xff] }
   0x9   :  { %182 = vmatpush3.bf16.msra.mxu0 %v181_v14 }
   0xa   :  { %183 = vmatprep.subr.bf16.mxu0 %v194_v12 }
   0xd   :  { %185 = vmatpush3.bf16.msra.mxu0 %v184_v17 }
   0xe   :  { %186 = vmatprep.subr.bf16.mxu0 %v194_v12 }
  0x11   :  { %188 = vmatpush3.bf16.msra.mxu0 %v187_v20 }
  0x90   :  { %v24_v2 = vpop.xlane.xlu0 %23 }
  0x91   :  { %v26_v3 = vmul.f32 0.015625, %v24_v2 }
  0x93   :  { %v27_v4 = vsub.f32 %v20_v0, %v26_v3 }
  0x95   :  { %v28_v5 = vmul.f32 %v27_v4, %v27_v4 }
  0x97   :  { %v29_v6 = vsel %vm21_vm0, %v28_v5, 0.0 }
  0x98   :  { %30 = vadd.xlane.f32.xlu0 %v29_v6 }
 0x125   :  { %v31_v21 = vpop.xlane.xlu0 %30 }
 0x126   :  { %v32_v22 = vmul.f32 0.015625, %v31_v21 }
 0x128   :  { %v33_v23 = vadd.f32 1e-05, %v32_v22 }
 0x12a   :  { %192 = vrsqrt.f32 %v33_v23 }
 0x134   :  { %v193_v24 = vpop.eup %192 }
 0x135   :  { %v35_v26 = vmul.f32 %v193_v24, %v27_v4 }
 0x137   :  { %v43_v28 = vmul.f32 %v145_v25, %v35_v26 }
 0x139   :  { %v51_v29 = vadd.f32 %v146_v27, %v43_v28 }
 0x13b   :  { %175 = vmatmul.mubr.msk.f32.vlgmr.msra.gmra.mrb[0].mxu0 %vm21_vm0, %v51_v29 }
 0x20e   :  { %v136_v31 = vpop.f32.mrb[0].mxu0 }
 0x20f   :  { %v137_v32 = vadd.f32 %v147_v30, %v136_v31  ;;  %v176_v33 = vpop.f32.mrb[1].mxu0 }
 0x211   :  { %140 = vst [vmem:[%s274_s5] sm:$0xff] %v137_v32 }

</bundles_post_ra>
